<compile_context>
chip_gen: v6e
topology: v6e:2x2x1
jax: 0.10.0
libtpu: 0.0.40
codegen_flags: <defaults>
</compile_context>

<pallas_src>
import functools

import jax
import jax.numpy as jnp
from jax.experimental import pallas as pl
from jax.experimental.pallas import tpu as pltpu

# 48 MiB: safe on v7x (64 MiB per-TC physical); can be raised to ~100 MiB on v5e/v6e.
VMEM_LIMIT = 48 * 1024 * 1024

_RESIDENT = pl.BlockSpec(memory_space=pltpu.MemorySpace.VMEM)  # whole-array VMEM resident


def _pick_tile(dim, target):
    """Largest divisor of `dim` that is <= target (demo dims are 8/128-aligned)."""
    t = min(dim, target)
    while dim % t:
        t -= 1
    return t


# ----------------------------------------------------------------------------
# Tiled linear (+ optional ReLU): y = relu?(x @ W + b)
# Grid is (cols, rows): the row axis is the fastest-varying, so the (D, tn)
# weight tile index is constant across it and W is streamed from HBM only once
# per column tile (critical for the big vocab projection / cls_w2).
# ----------------------------------------------------------------------------
def _linear_kernel(x_ref, w_ref, b_ref, o_ref, *, relu):
    y = jnp.dot(x_ref[...], w_ref[...].astype(jnp.float32),
                preferred_element_type=jnp.float32)
    y = y + b_ref[...]
    if relu:
        y = jnp.maximum(y, 0.0)
    o_ref[...] = y


def linear(x, w, b, relu=False, tm=512, tn=512):
    M, D = x.shape
    _, N = w.shape
    tm = _pick_tile(M, tm)
    tn = _pick_tile(N, tn)
    grid = (N // tn, M // tm)  # rows fastest -> weight tile reused across row tiles
    return pl.pallas_call(
        functools.partial(_linear_kernel, relu=relu),
        out_shape=jax.ShapeDtypeStruct((M, N), jnp.float32),
        grid=grid,
        in_specs=[
            pl.BlockSpec((tm, D), lambda j, i: (i, 0)),
            pl.BlockSpec((D, tn), lambda j, i: (0, j)),
            pl.BlockSpec((1, tn), lambda j, i: (0, j)),
        ],
        out_specs=pl.BlockSpec((tm, tn), lambda j, i: (i, j)),
        compiler_params=pltpu.CompilerParams(
            dimension_semantics=("parallel", "parallel"),
            vmem_limit_bytes=VMEM_LIMIT),
    )(x, w, b.reshape(1, N))


# ----------------------------------------------------------------------------
# Fused attention pooling + q_net/v_net + classifier layer 1 (batch-tiled):
#   vh = relu(v @ Wv + bv); qh = relu(q @ Wq + bq)
#   logits = sum_h vh * (qh * att_w)          (att bias cancels in softmax)
#   att = softmax_K(logits); v_emb = sum_K att * v      (VPU weighted sum)
#   q_repr = relu(q @ Wqn + bqn); v_repr = relu(v_emb @ Wvn + bvn)
#   joint  = q_repr * v_repr
#   h1     = relu(joint @ W1 + b1)
# The large classifier layer 2 runs outside as a separate tiled linear().
# All weights/biases are whole-array VMEM residents (single-buffered).
# ----------------------------------------------------------------------------
def _att_head_kernel(v_ref, q_ref, vpw_ref, vpb_ref, qpw_ref, qpb_ref, aw_ref,
                     qnw_ref, qnb_ref, vnw_ref, vnb_ref, c1w_ref, c1b_ref,
                     joint_ref, h1_ref):
    f32 = jnp.float32
    v = v_ref[...]                                        # (tb, K, V)
    q = q_ref[...]                                        # (tb, Q)

    vh = jax.lax.dot_general(
        v, vpw_ref[...].astype(f32),
        dimension_numbers=(((2,), (0,)), ((), ())),
        preferred_element_type=f32)                       # (tb, K, Ha)
    vh = jnp.maximum(vh + vpb_ref[...], 0.0)

    qh = jnp.dot(q, qpw_ref[...].astype(f32), preferred_element_type=f32)
    qh = jnp.maximum(qh + qpb_ref[...], 0.0)              # (tb, Ha)

    # attention logits: fold att_w into qh (VPU mul) + lane reduce (XLU).
    # NOTE: att_b is a per-row scalar constant and cancels exactly in softmax.
    qhw = qh * aw_ref[...].astype(f32)                    # (tb, Ha)
    logits = jnp.sum(vh * qhw[:, None, :], axis=-1)       # (tb, K)

    m = jnp.max(logits, axis=-1, keepdims=True)
    e = jnp.exp(logits - m)
    att = e / jnp.sum(e, axis=-1, keepdims=True)          # exact division

    # weighted pooling over objects (VPU mul + sublane reduce; MXU stays free)
    v_emb = jnp.sum(att[:, :, None] * v, axis=1)          # (tb, V)

    q_repr = jnp.maximum(
        jnp.dot(q, qnw_ref[...].astype(f32), preferred_element_type=f32)
        + qnb_ref[...], 0.0)
    v_repr = jnp.maximum(
        jnp.dot(v_emb, vnw_ref[...].astype(f32), preferred_element_type=f32)
        + vnb_ref[...], 0.0)
    jr = q_repr * v_repr                                  # (tb, H)

    h1 = jnp.maximum(
        jnp.dot(jr, c1w_ref[...].astype(f32), preferred_element_type=f32)
        + c1b_ref[...], 0.0)                              # (tb, H2)

    joint_ref[...] = jr
    h1_ref[...] = h1


def attention_vqa_head(v, q_emb, p, tb=None):
    B, K, V = v.shape
    Qd = q_emb.shape[1]
    Ha = p["att_vpw"].shape[1]
    H = p["qnet_w"].shape[1]
    H2 = p["cls_w1"].shape[1]
    # v5e/v6e: tb=B (one grid step). v7x: pass tb=B//2 (multiple of 8) so the
    # 'parallel' batch axis has 2 steps and both TensorCores are engaged.
    if tb is None:
        tb = B
    assert B % tb == 0 and (tb % 8 == 0 or tb == B)

    joint, h1 = pl.pallas_call(
        _att_head_kernel,
        out_shape=(jax.ShapeDtypeStruct((B, H), jnp.float32),
                   jax.ShapeDtypeStruct((B, H2), jnp.float32)),
        grid=(B // tb,),
        in_specs=[
            pl.BlockSpec((tb, K, V), lambda i: (i, 0, 0)),
            pl.BlockSpec((tb, Qd), lambda i: (i, 0)),
        ] + [_RESIDENT] * 11,
        out_specs=(pl.BlockSpec((tb, H), lambda i: (i, 0)),
                   pl.BlockSpec((tb, H2), lambda i: (i, 0))),
        compiler_params=pltpu.CompilerParams(
            dimension_semantics=("parallel",),
            vmem_limit_bytes=VMEM_LIMIT),
    )(v, q_emb,
      p["att_vpw"], p["att_vpb"].reshape(1, Ha),
      p["att_qpw"], p["att_qpb"].reshape(1, Ha),
      p["att_w"].reshape(1, Ha),
      p["qnet_w"], p["qnet_b"].reshape(1, H),
      p["vnet_w"], p["vnet_b"].reshape(1, H),
      p["cls_w1"], p["cls_b1"].reshape(1, H2))
    return joint, h1


# ----------------------------------------------------------------------------
# GRU recurrence (question encoder). Input gates gi = x@W_ih + b_ih are hoisted
# (one big matmul for all T); only h@W_hh runs per step. Gate order r,z,n.
# grid=(B//tb, T): batch tiles 'parallel' (megacore on v7x), time 'arbitrary'.
# ----------------------------------------------------------------------------
def _gru_kernel(gi_ref, whh_ref, bhh_ref, o_ref, h_ref):
    t = pl.program_id(1)

    @pl.when(t == 0)
    def _():
        h_ref[...] = jnp.zeros_like(h_ref)

    gi = jnp.squeeze(gi_ref[...], axis=0)                 # (tb, 3H), includes b_ih
    h = h_ref[...]                                        # (tb, H)
    H = h.shape[-1]

    gh = jnp.dot(h, whh_ref[...].astype(jnp.float32),
                 preferred_element_type=jnp.float32) + bhh_ref[...]

    r = jax.nn.sigmoid(gi[:, :H] + gh[:, :H])
    z = jax.nn.sigmoid(gi[:, H:2 * H] + gh[:, H:2 * H])
    n = jnp.tanh(gi[:, 2 * H:] + r * gh[:, 2 * H:])
    h_new = (1.0 - z) * n + z * h
    h_ref[...] = h_new

    @pl.when(t == pl.num_programs(1) - 1)
    def _():
        o_ref[...] = h_new


def gru_last_hidden(gi_tm, whh, bhh, tb=None):
    # gi_tm: time-major precomputed input gates (T, B, 3H); returns last hidden (B, H).
    T, B, G = gi_tm.shape
    H = whh.shape[0]
    if tb is None:
        tb = B
    assert B % tb == 0 and (tb % 8 == 0 or tb == B)
    return pl.pallas_call(
        _gru_kernel,
        out_shape=jax.ShapeDtypeStruct((B, H), jnp.float32),
        grid=(B // tb, T),
        in_specs=[
            pl.BlockSpec((1, tb, G), lambda b, t: (t, b, 0)),
            _RESIDENT,   # W_hh resident (bf16)
            _RESIDENT,   # b_hh resident
        ],
        out_specs=pl.BlockSpec((tb, H), lambda b, t: (b, 0)),
        scratch_shapes=[pltpu.VMEM((tb, H), jnp.float32)],
        compiler_params=pltpu.CompilerParams(
            dimension_semantics=("parallel", "arbitrary"),
            vmem_limit_bytes=VMEM_LIMIT),
    )(gi_tm, whh, bhh.reshape(1, G))


# ----------------------------------------------------------------------------
# LSTM recurrence (caption generator). Input gates precomputed (hoisted);
# gate order i,f,g,o. Emits hidden at every step. Same batch/time grid as GRU.
# ----------------------------------------------------------------------------
def _lstm_kernel(gi_ref, whh_ref, bhh_ref, o_ref, h_ref, c_ref):
    t = pl.program_id(1)

    @pl.when(t == 0)
    def _():
        h_ref[...] = jnp.zeros_like(h_ref)
        c_ref[...] = jnp.zeros_like(c_ref)

    gi = jnp.squeeze(gi_ref[...], axis=0)                 # (tb, 4H), includes b_ih
    h = h_ref[...]
    c = c_ref[...]
    H = h.shape[-1]

    g = gi + jnp.dot(h, whh_ref[...].astype(jnp.float32),
                     preferred_element_type=jnp.float32) + bhh_ref[...]

    i = jax.nn.sigmoid(g[:, :H])
    f = jax.nn.sigmoid(g[:, H:2 * H])
    gg = jnp.tanh(g[:, 2 * H:3 * H])
    o = jax.nn.sigmoid(g[:, 3 * H:])

    c_new = f * c + i * gg
    h_new = o * jnp.tanh(c_new)
    h_ref[...] = h_new
    c_ref[...] = c_new
    o_ref[...] = h_new[None, :, :]


def lstm_all_hidden(gi_tm, whh, bhh, tb=None):
    # gi_tm: time-major precomputed input gates (T, B, 4H); returns hiddens (T, B, H).
    T, B, G = gi_tm.shape
    H = whh.shape[0]
    if tb is None:
        tb = B
    assert B % tb == 0 and (tb % 8 == 0 or tb == B)
    return pl.pallas_call(
        _lstm_kernel,
        out_shape=jax.ShapeDtypeStruct((T, B, H), jnp.float32),
        grid=(B // tb, T),
        in_specs=[
            pl.BlockSpec((1, tb, G), lambda b, t: (t, b, 0)),
            _RESIDENT,   # W_hh resident (bf16)
            _RESIDENT,   # b_hh resident
        ],
        out_specs=pl.BlockSpec((1, tb, H), lambda b, t: (t, b, 0)),
        scratch_shapes=[pltpu.VMEM((tb, H), jnp.float32),
                        pltpu.VMEM((tb, H), jnp.float32)],
        compiler_params=pltpu.CompilerParams(
            dimension_semantics=("parallel", "arbitrary"),
            vmem_limit_bytes=VMEM_LIMIT),
    )(gi_tm, whh, bhh.reshape(1, G))


# ----------------------------------------------------------------------------
# VQAE forward
# ----------------------------------------------------------------------------
def vqae_forward(params, v, q, gt, lengths, max_len):
    p = params
    del lengths  # TODO(synk): pack_padded_sequence semantics not reproduced.

    B, Tq = q.shape
    E = p["w_emb"].shape[1]
    Qd = p["gru_whh"].shape[0]
    Hd = p["lstm_whh"].shape[0]

    # ---- question encoder ---------------------------------------------------
    w_emb = jnp.take(p["w_emb"], q, axis=0)                      # (B, Tq, E)
    w_emb_tm = jnp.transpose(w_emb, (1, 0, 2))                   # (Tq, B, E)
    # hoisted input projection for all timesteps (one tiled MXU matmul)
    gi = linear(w_emb_tm.reshape(Tq * B, E), p["gru_wih"], p["gru_bih"])
    q_emb = gru_last_hidden(gi.reshape(Tq, B, 3 * Qd),
                            p["gru_whh"], p["gru_bhh"])          # (B, Qd)

    # ---- fused attention pooling + q_net/v_net + classifier layer 1 ---------
    joint_repr, h1 = attention_vqa_head(v, q_emb, p)             # (B,H), (B,2H)
    # classifier layer 2 (largest weight) as a separate lane-dense tiled linear
    vqa_logits = linear(h1, p["cls_w2"], p["cls_b2"], tn=512)    # (B, A)

    # ---- caption generator ---------------------------------------------------
    gt_emb = jnp.take(p["gen_emb"], gt, axis=0)                  # (B, L-1, Hd)
    seq = jnp.concatenate([joint_repr[:, None, :], gt_emb], axis=1)
    assert seq.shape[1] == max_len
    seq_tm = jnp.transpose(seq, (1, 0, 2))                       # (L, B, Hd)
    # hoisted LSTM input projection for all timesteps
    gl = linear(seq_tm.reshape(max_len * B, Hd), p["lstm_wih"], p["lstm_bih"])
    hiddens = lstm_all_hidden(gl.reshape(max_len, B, 4 * Hd),
                              p["lstm_whh"], p["lstm_bhh"])      # (L, B, Hd)

    # transpose the SMALL hiddens tensor to batch-major before the big vocab
    # projection, so the huge logits tensor is written batch-major directly.
    hb = jnp.transpose(hiddens, (1, 0, 2)).reshape(B * max_len, Hd)
    logits = linear(hb, p["gen_ow"], p["gen_ob"], tm=512, tn=1024)
    vqe_logits = logits.reshape(B, max_len, -1)                  # (B, L, vocab)

    return vqa_logits, vqe_logits


# ----------------------------------------------------------------------------
# Pure-JAX reference (for a correctness sanity check)
# ----------------------------------------------------------------------------
def vqae_reference(p, v, q, gt, max_len):
    B = q.shape[0]
    Qd = p["gru_whh"].shape[0]
    Hd = p["lstm_whh"].shape[0]
    f32 = jnp.float32

    w_emb = jnp.take(p["w_emb"], q, axis=0)
    x_tm = jnp.transpose(w_emb, (1, 0, 2))

    def gru_step(h, x):
        gi = x @ p["gru_wih"].astype(f32) + p["gru_bih"]
        gh = h @ p["gru_whh"].astype(f32) + p["gru_bhh"]
        r = jax.nn.sigmoid(gi[:, :Qd] + gh[:, :Qd])
        z = jax.nn.sigmoid(gi[:, Qd:2 * Qd] + gh[:, Qd:2 * Qd])
        n = jnp.tanh(gi[:, 2 * Qd:] + r * gh[:, 2 * Qd:])
        return (1.0 - z) * n + z * h, None

    q_emb, _ = jax.lax.scan(gru_step, jnp.zeros((B, Qd), f32), x_tm)

    vh = jax.nn.relu(jnp.einsum('bkv,vh->bkh', v, p["att_vpw"].astype(f32)) + p["att_vpb"])
    qh = jax.nn.relu(q_emb @ p["att_qpw"].astype(f32) + p["att_qpb"])
    joint = vh * qh[:, None, :]
    logits = jnp.einsum('bkh,h->bk', joint, p["att_w"].astype(f32)[:, 0]) + p["att_b"][0]
    att = jax.nn.softmax(logits, axis=1)
    v_emb = jnp.einsum('bk,bkv->bv', att, v)

    q_repr = jax.nn.relu(q_emb @ p["qnet_w"].astype(f32) + p["qnet_b"])
    v_repr = jax.nn.relu(v_emb @ p["vnet_w"].astype(f32) + p["vnet_b"])
    joint_repr = q_repr * v_repr
    h1 = jax.nn.relu(joint_repr @ p["cls_w1"].astype(f32) + p["cls_b1"])
    vqa_logits = h1 @ p["cls_w2"].astype(f32) + p["cls_b2"]

    gt_emb = jnp.take(p["gen_emb"], gt, axis=0)
    seq = jnp.concatenate([joint_repr[:, None, :], gt_emb], axis=1)
    seq_tm = jnp.transpose(seq, (1, 0, 2))

    def lstm_step(carry, x):
        h, c = carry
        g = (x @ p["lstm_wih"].astype(f32) + p["lstm_bih"]
             + h @ p["lstm_whh"].astype(f32) + p["lstm_bhh"])
        i = jax.nn.sigmoid(g[:, :Hd])
        f = jax.nn.sigmoid(g[:, Hd:2 * Hd])
        gg = jnp.tanh(g[:, 2 * Hd:3 * Hd])
        o = jax.nn.sigmoid(g[:, 3 * Hd:])
        c = f * c + i * gg
        h = o * jnp.tanh(c)
        return (h, c), h

    init = (jnp.zeros((B, Hd), f32), jnp.zeros((B, Hd), f32))
    _, hs = jax.lax.scan(lstm_step, init, seq_tm)
    hb = jnp.transpose(hs, (1, 0, 2)).reshape(B * max_len, Hd)
    logits_flat = hb @ p["gen_ow"].astype(f32) + p["gen_ob"]
    vqe_logits = logits_flat.reshape(B, max_len, -1)
    return vqa_logits, vqe_logits


# ----------------------------------------------------------------------------
# Deterministic parameter construction + demo
# ----------------------------------------------------------------------------
def make_params(key, *, ntoken, emb_dim, q_dim, v_dim, hid, num_ans, gen_vocab):
    ks = jax.random.split(key, 24)
    s = 0.1
    f32, bf16 = jnp.float32, jnp.bfloat16

    def rn(k, shape, dt=f32):
        return (s * jax.random.normal(k, shape)).astype(dt)

    return {
        # embeddings kept f32 (gathered outside the kernels)
        "w_emb": rn(ks[0], (ntoken, emb_dim)),
        # GRU (gate order r,z,n): matrices bf16, biases f32
        "gru_wih": rn(ks[1], (emb_dim, 3 * q_dim), bf16),
        "gru_whh": rn(ks[2], (q_dim, 3 * q_dim), bf16),
        "gru_bih": rn(ks[3], (3 * q_dim,)),
        "gru_bhh": rn(ks[4], (3 * q_dim,)),
        # attention
        "att_vpw": rn(ks[5], (v_dim, hid), bf16),
        "att_vpb": rn(ks[6], (hid,)),
        "att_qpw": rn(ks[7], (q_dim, hid), bf16),
        "att_qpb": rn(ks[8], (hid,)),
        "att_w": rn(ks[9], (hid, 1), bf16),
        "att_b": rn(ks[10], (1,)),   # per-row constant; cancels exactly in softmax
        # q_net / v_net
        "qnet_w": rn(ks[11], (q_dim, hid), bf16),
        "qnet_b": rn(ks[12], (hid,)),
        "vnet_w": rn(ks[13], (v_dim, hid), bf16),
        "vnet_b": rn(ks[14], (hid,)),
        # classifier (num_ans should be padded to a 128-multiple at production)
        "cls_w1": rn(ks[15], (hid, 2 * hid), bf16),
        "cls_b1": rn(ks[16], (2 * hid,)),
        "cls_w2": rn(ks[17], (2 * hid, num_ans), bf16),
        "cls_b2": rn(ks[18], (num_ans,)),
        # generator (embedding dim == hid so joint_repr is the step-0 input)
        "gen_emb": rn(ks[19], (gen_vocab, hid)),
        "lstm_wih": rn(ks[20], (hid, 4 * hid), bf16),
        "lstm_whh": rn(ks[21], (hid, 4 * hid), bf16),
        "lstm_bih": rn(ks[22], (4 * hid,)),
        "lstm_bhh": rn(ks[23], (4 * hid,)),
        "gen_ow": rn(jax.random.fold_in(key, 100), (hid, gen_vocab), bf16),
        "gen_ob": rn(jax.random.fold_in(key, 101), (gen_vocab,)),
    }


if __name__ == "__main__":
    # (8,128)-aligned small demo shapes: batch multiple of 8, features multiple of 128.
    B, T, K = 8, 8, 8            # batch, question length, num objects
    E, Q, V, H = 128, 128, 128, 128
    NTOKEN, NUM_ANS, GVOCAB = 64, 128, 256
    MAX_LEN = 8

    key = jax.random.PRNGKey(0)
    kp, kv, kq, kg = jax.random.split(key, 4)

    params = make_params(kp, ntoken=NTOKEN, emb_dim=E, q_dim=Q, v_dim=V,
                         hid=H, num_ans=NUM_ANS, gen_vocab=GVOCAB)

    v = jax.random.normal(kv, (B, K, V), dtype=jnp.float32)      # visual features
    q = jax.random.randint(kq, (B, T), 0, NTOKEN)                # question tokens
    gt = jax.random.randint(kg, (B, MAX_LEN - 1), 0, GVOCAB)     # caption tokens
    lengths = jnp.full((B,), MAX_LEN, dtype=jnp.int32)

    fwd = jax.jit(functools.partial(vqae_forward, max_len=MAX_LEN))
    vqa_logits, vqe_logits = fwd(params, v, q, gt, lengths)
    jax.block_until_ready((vqa_logits, vqe_logits))

    assert vqa_logits.shape == (B, NUM_ANS)
    assert vqe_logits.shape == (B, MAX_LEN, GVOCAB)
    assert jnp.all(jnp.isfinite(vqa_logits)) and jnp.all(jnp.isfinite(vqe_logits))

    # Sanity check against a pure-JAX reference (same bf16-stored weights;
    # tolerance covers MXU precision differences only).
    ref_vqa, ref_vqe = vqae_reference(params, v, q, gt, MAX_LEN)
    assert jnp.allclose(vqa_logits, ref_vqa, atol=5e-2, rtol=5e-2)
    assert jnp.allclose(vqe_logits, ref_vqe, atol=5e-2, rtol=5e-2)

    print("KERNEL_OK")
</pallas_src>

<mosaic_0001>
module attributes {stable_mosaic.version = 11 : i64} {
  func.func @_linear_kernel(%arg0: i32, %arg1: i32, %arg2: memref<64x128xf32, #tpu.memory_space<vmem>>, %arg3: memref<128x384xbf16, #tpu.memory_space<vmem>>, %arg4: memref<1x384xf32, #tpu.memory_space<vmem>>, %arg5: memref<64x384xf32, #tpu.memory_space<vmem>>) attributes {dimension_semantics = [#tpu.dimension_semantics<parallel>, #tpu.dimension_semantics<parallel>], iteration_bounds = array<i64: 1, 1>, scalar_prefetch = 0 : i64, scratch_operands = 0 : i64, tpu.core_type = #tpu.core_type<tc>, window_params = [{transform_indices = @transform_0, window_bounds = array<i64: 64, 128>}, {transform_indices = @transform_1, window_bounds = array<i64: 128, 384>}, {transform_indices = @transform_2, window_bounds = array<i64: 1, 384>}, {transform_indices = @transform_3, window_bounds = array<i64: 64, 384>}]} {
    %c0 = arith.constant 0 : index
    %c0_0 = arith.constant 0 : index
    %0 = vector.load %arg2[%c0, %c0_0] : memref<64x128xf32, #tpu.memory_space<vmem>>, vector<64x128xf32>
    %c0_1 = arith.constant 0 : index
    %c0_2 = arith.constant 0 : index
    %1 = vector.load %arg3[%c0_1, %c0_2] : memref<128x384xbf16, #tpu.memory_space<vmem>>, vector<128x384xbf16>
    %2 = arith.extf %1 : vector<128x384xbf16> to vector<128x384xf32>
    %cst = arith.constant dense<0.000000e+00> : vector<64x384xf32>
    %3 = tpu.matmul %0, %2, %cst {dimension_numbers = #tpu.dot_dimension_numbers<[1], [0], [0], [1], [0, 0, 1, 1], [], []>} : vector<64x128xf32>, vector<128x384xf32>, vector<64x384xf32> -> vector<64x384xf32>
    %c0_3 = arith.constant 0 : index
    %c0_4 = arith.constant 0 : index
    %4 = vector.load %arg4[%c0_3, %c0_4] : memref<1x384xf32, #tpu.memory_space<vmem>>, vector<1x384xf32>
    %5 = vector.broadcast %4 : vector<1x384xf32> to vector<64x384xf32>
    %6 = arith.addf %3, %5 : vector<64x384xf32>
    %c0_5 = arith.constant 0 : index
    %c0_6 = arith.constant 0 : index
    %7 = vector.load %arg5[%c0_5, %c0_6] : memref<64x384xf32, #tpu.memory_space<vmem>>, vector<64x384xf32>
    tpu.vector_store %arg5[%c0_5, %c0_6], %6 {strides = array<i32>} : memref<64x384xf32, #tpu.memory_space<vmem>>, vector<64x384xf32>,
    return
  }
  func.func @transform_0(%arg0: i32, %arg1: i32) -> (i32, i32) {
    %c0_i32 = arith.constant 0 : i32
    %c0_i32_0 = arith.constant 0 : i32
    return %arg1, %c0_i32 : i32, i32
  }
  func.func @transform_1(%arg0: i32, %arg1: i32) -> (i32, i32) {
    %c0_i32 = arith.constant 0 : i32
    %c0_i32_0 = arith.constant 0 : i32
    return %c0_i32, %arg0 : i32, i32
  }
  func.func @transform_2(%arg0: i32, %arg1: i32) -> (i32, i32) {
    %c0_i32 = arith.constant 0 : i32
    %c0_i32_0 = arith.constant 0 : i32
    return %c0_i32, %arg0 : i32, i32
  }
  func.func @transform_3(%arg0: i32, %arg1: i32) -> (i32, i32) {
    %c0_i32 = arith.constant 0 : i32
    return %arg1, %arg0 : i32, i32
  }
}

module attributes {stable_mosaic.version = 11 : i64} {
  func.func @_gru_kernel(%arg0: i32, %arg1: i32, %arg2: memref<1x8x384xf32, #tpu.memory_space<vmem>>, %arg3: memref<128x384xbf16, #tpu.memory_space<vmem>>, %arg4: memref<1x384xf32, #tpu.memory_space<vmem>>, %arg5: memref<8x128xf32, #tpu.memory_space<vmem>>, %arg6: memref<8x128xf32, #tpu.memory_space<vmem>>) attributes {dimension_semantics = [#tpu.dimension_semantics<parallel>, #tpu.dimension_semantics<arbitrary>], iteration_bounds = array<i64: 1, 8>, scalar_prefetch = 0 : i64, scratch_operands = 1 : i64, tpu.core_type = #tpu.core_type<tc>, window_params = [{transform_indices = @transform_0, window_bounds = array<i64: 1, 8, 384>}, {pipeline_mode = #tpu.pipeline_mode<synchronous>, transform_indices = @transform_1, window_bounds = array<i64: 128, 384>}, {pipeline_mode = #tpu.pipeline_mode<synchronous>, transform_indices = @transform_2, window_bounds = array<i64: 1, 384>}, {transform_indices = @transform_3, window_bounds = array<i64: 8, 128>}]} {
    %c0_i32 = arith.constant 0 : i32
    %0 = arith.cmpi eq, %arg1, %c0_i32 : i32
    %1 = arith.extui %0 : i1 to i32
    %c0_i32_0 = arith.constant 0 : i32
    %2 = arith.cmpi ne, %1, %c0_i32_0 : i32
    scf.if %2 {
      %cst_15 = arith.constant 0.000000e+00 : f32
      %42 = vector.broadcast %cst_15 : f32 to vector<8x128xf32>
      %c0_16 = arith.constant 0 : index
      %c0_17 = arith.constant 0 : index
      %43 = vector.load %arg6[%c0_16, %c0_17] : memref<8x128xf32, #tpu.memory_space<vmem>>, vector<8x128xf32>
      tpu.vector_store %arg6[%c0_16, %c0_17], %42 {strides = array<i32>} : memref<8x128xf32, #tpu.memory_space<vmem>>, vector<8x128xf32>,
    } else {
    }
    %c0 = arith.constant 0 : index
    %c0_1 = arith.constant 0 : index
    %c0_2 = arith.constant 0 : index
    %3 = vector.load %arg2[%c0, %c0_1, %c0_2] : memref<1x8x384xf32, #tpu.memory_space<vmem>>, vector<1x8x384xf32>
    %4 = vector.shape_cast %3 : vector<1x8x384xf32> to vector<8x384xf32>
    %c0_3 = arith.constant 0 : index
    %c0_4 = arith.constant 0 : index
    %5 = vector.load %arg6[%c0_3, %c0_4] : memref<8x128xf32, #tpu.memory_space<vmem>>, vector<8x128xf32>
    %c0_5 = arith.constant 0 : index
    %c0_6 = arith.constant 0 : index
    %6 = vector.load %arg3[%c0_5, %c0_6] : memref<128x384xbf16, #tpu.memory_space<vmem>>, vector<128x384xbf16>
    %7 = arith.extf %6 : vector<128x384xbf16> to vector<128x384xf32>
    %cst = arith.constant dense<0.000000e+00> : vector<8x384xf32>
    %8 = tpu.matmul %5, %7, %cst {dimension_numbers = #tpu.dot_dimension_numbers<[1], [0], [0], [1], [0, 0, 1, 1], [], []>} : vector<8x128xf32>, vector<128x384xf32>, vector<8x384xf32> -> vector<8x384xf32>
    %c0_7 = arith.constant 0 : index
    %c0_8 = arith.constant 0 : index
    %9 = vector.load %arg4[%c0_7, %c0_8] : memref<1x384xf32, #tpu.memory_space<vmem>>, vector<1x384xf32>
    %10 = vector.broadcast %9 : vector<1x384xf32> to vector<8x384xf32>
    %11 = arith.addf %8, %10 : vector<8x384xf32>
    %12 = vector.extract_strided_slice %4 {offsets = [0, 0], sizes = [8, 128], strides = [1, 1]} : vector<8x384xf32> to vector<8x128xf32>
    %13 = vector.extract_strided_slice %11 {offsets = [0, 0], sizes = [8, 128], strides = [1, 1]} : vector<8x384xf32> to vector<8x128xf32>
    %14 = arith.addf %12, %13 : vector<8x128xf32>
    %15 = arith.negf %14 : vector<8x128xf32>
    %16 = math.exp %15 : vector<8x128xf32>
    %cst_9 = arith.constant 1.000000e+00 : f32
    %17 = vector.broadcast %cst_9 : f32 to vector<8x128xf32>
    %18 = arith.addf %17, %16 : vector<8x128xf32>
    %19 = arith.divf %17, %18 : vector<8x128xf32>
    %20 = vector.extract_strided_slice %4 {offsets = [0, 128], sizes = [8, 128], strides = [1, 1]} : vector<8x384xf32> to vector<8x128xf32>
    %21 = vector.extract_strided_slice %11 {offsets = [0, 128], sizes = [8, 128], strides = [1, 1]} : vector<8x384xf32> to vector<8x128xf32>
    %22 = arith.addf %20, %21 : vector<8x128xf32>
    %23 = arith.negf %22 : vector<8x128xf32>
    %24 = math.exp %23 : vector<8x128xf32>
    %cst_10 = arith.constant 1.000000e+00 : f32
    %25 = vector.broadcast %cst_10 : f32 to vector<8x128xf32>
    %26 = arith.addf %25, %24 : vector<8x128xf32>
    %27 = arith.divf %25, %26 : vector<8x128xf32>
    %28 = vector.extract_strided_slice %4 {offsets = [0, 256], sizes = [8, 128], strides = [1, 1]} : vector<8x384xf32> to vector<8x128xf32>
    %29 = vector.extract_strided_slice %11 {offsets = [0, 256], sizes = [8, 128], strides = [1, 1]} : vector<8x384xf32> to vector<8x128xf32>
    %30 = arith.mulf %19, %29 : vector<8x128xf32>
    %31 = arith.addf %28, %30 : vector<8x128xf32>
    %32 = math.tanh %31 : vector<8x128xf32>
    %cst_11 = arith.constant 1.000000e+00 : f32
    %33 = vector.broadcast %cst_11 : f32 to vector<8x128xf32>
    %34 = arith.subf %33, %27 : vector<8x128xf32>
    %35 = arith.mulf %34, %32 : vector<8x128xf32>
    %36 = arith.mulf %27, %5 : vector<8x128xf32>
    %37 = arith.addf %35, %36 : vector<8x128xf32>
    %c0_12 = arith.constant 0 : index
    %c0_13 = arith.constant 0 : index
    %38 = vector.load %arg6[%c0_12, %c0_13] : memref<8x128xf32, #tpu.memory_space<vmem>>, vector<8x128xf32>
    tpu.vector_store %arg6[%c0_12, %c0_13], %37 {strides = array<i32>} : memref<8x128xf32, #tpu.memory_space<vmem>>, vector<8x128xf32>,
    %c7_i32 = arith.constant 7 : i32
    %39 = arith.cmpi eq, %arg1, %c7_i32 : i32
    %40 = arith.extui %39 : i1 to i32
    %c0_i32_14 = arith.constant 0 : i32
    %41 = arith.cmpi ne, %40, %c0_i32_14 : i32
    scf.if %41 {
      %c0_15 = arith.constant 0 : index
      %c0_16 = arith.constant 0 : index
      %42 = vector.load %arg5[%c0_15, %c0_16] : memref<8x128xf32, #tpu.memory_space<vmem>>, vector<8x128xf32>
      tpu.vector_store %arg5[%c0_15, %c0_16], %37 {strides = array<i32>} : memref<8x128xf32, #tpu.memory_space<vmem>>, vector<8x128xf32>,
    } else {
    }
    return
  }
  func.func @transform_0(%arg0: i32, %arg1: i32) -> (i32, i32, i32) {
    %c0_i32 = arith.constant 0 : i32
    %c0_i32_0 = arith.constant 0 : i32
    return %arg1, %arg0, %c0_i32 : i32, i32, i32
  }
  func.func @transform_1(%arg0: i32, %arg1: i32) -> (i32, i32) {
    %c0_i32 = arith.constant 0 : i32
    %c0_i32_0 = arith.constant 0 : i32
    %c0_i32_1 = arith.constant 0 : i32
    return %c0_i32, %c0_i32_0 : i32, i32
  }
  func.func @transform_2(%arg0: i32, %arg1: i32) -> (i32, i32) {
    %c0_i32 = arith.constant 0 : i32
    %c0_i32_0 = arith.constant 0 : i32
    %c0_i32_1 = arith.constant 0 : i32
    return %c0_i32, %c0_i32_0 : i32, i32
  }
  func.func @transform_3(%arg0: i32, %arg1: i32) -> (i32, i32) {
    %c0_i32 = arith.constant 0 : i32
    %c0_i32_0 = arith.constant 0 : i32
    return %arg0, %c0_i32 : i32, i32
  }
}

module attributes {stable_mosaic.version = 11 : i64} {
  func.func @_att_head_kernel(%arg0: i32, %arg1: memref<8x8x128xf32, #tpu.memory_space<vmem>>, %arg2: memref<8x128xf32, #tpu.memory_space<vmem>>, %arg3: memref<128x128xbf16, #tpu.memory_space<vmem>>, %arg4: memref<1x128xf32, #tpu.memory_space<vmem>>, %arg5: memref<128x128xbf16, #tpu.memory_space<vmem>>, %arg6: memref<1x128xf32, #tpu.memory_space<vmem>>, %arg7: memref<1x128xbf16, #tpu.memory_space<vmem>>, %arg8: memref<128x128xbf16, #tpu.memory_space<vmem>>, %arg9: memref<1x128xf32, #tpu.memory_space<vmem>>, %arg10: memref<128x128xbf16, #tpu.memory_space<vmem>>, %arg11: memref<1x128xf32, #tpu.memory_space<vmem>>, %arg12: memref<128x256xbf16, #tpu.memory_space<vmem>>, %arg13: memref<1x256xf32, #tpu.memory_space<vmem>>, %arg14: memref<8x128xf32, #tpu.memory_space<vmem>>, %arg15: memref<8x256xf32, #tpu.memory_space<vmem>>) attributes {dimension_semantics = [#tpu.dimension_semantics<parallel>], iteration_bounds = array<i64: 1>, scalar_prefetch = 0 : i64, scratch_operands = 0 : i64, tpu.core_type = #tpu.core_type<tc>, window_params = [{transform_indices = @transform_0, window_bounds = array<i64: 8, 8, 128>}, {transform_indices = @transform_1, window_bounds = array<i64: 8, 128>}, {pipeline_mode = #tpu.pipeline_mode<synchronous>, transform_indices = @transform_2, window_bounds = array<i64: 128, 128>}, {pipeline_mode = #tpu.pipeline_mode<synchronous>, transform_indices = @transform_3, window_bounds = array<i64: 1, 128>}, {pipeline_mode = #tpu.pipeline_mode<synchronous>, transform_indices = @transform_4, window_bounds = array<i64: 128, 128>}, {pipeline_mode = #tpu.pipeline_mode<synchronous>, transform_indices = @transform_5, window_bounds = array<i64: 1, 128>}, {pipeline_mode = #tpu.pipeline_mode<synchronous>, transform_indices = @transform_6, window_bounds = array<i64: 1, 128>}, {pipeline_mode = #tpu.pipeline_mode<synchronous>, transform_indices = @transform_7, window_bounds = array<i64: 128, 128>}, {pipeline_mode = #tpu.pipeline_mode<synchronous>, transform_indices = @transform_8, window_bounds = array<i64: 1, 128>}, {pipeline_mode = #tpu.pipeline_mode<synchronous>, transform_indices = @transform_9, window_bounds = array<i64: 128, 128>}, {pipeline_mode = #tpu.pipeline_mode<synchronous>, transform_indices = @transform_10, window_bounds = array<i64: 1, 128>}, {pipeline_mode = #tpu.pipeline_mode<synchronous>, transform_indices = @transform_11, window_bounds = array<i64: 128, 256>}, {pipeline_mode = #tpu.pipeline_mode<synchronous>, transform_indices = @transform_12, window_bounds = array<i64: 1, 256>}, {transform_indices = @transform_13, window_bounds = array<i64: 8, 128>}, {transform_indices = @transform_14, window_bounds = array<i64: 8, 256>}]} {
    %c0 = arith.constant 0 : index
    %c0_0 = arith.constant 0 : index
    %c0_1 = arith.constant 0 : index
    %0 = vector.load %arg1[%c0, %c0_0, %c0_1] : memref<8x8x128xf32, #tpu.memory_space<vmem>>, vector<8x8x128xf32>
    %c0_2 = arith.constant 0 : index
    %c0_3 = arith.constant 0 : index
    %1 = vector.load %arg2[%c0_2, %c0_3] : memref<8x128xf32, #tpu.memory_space<vmem>>, vector<8x128xf32>
    %c0_4 = arith.constant 0 : index
    %c0_5 = arith.constant 0 : index
    %2 = vector.load %arg3[%c0_4, %c0_5] : memref<128x128xbf16, #tpu.memory_space<vmem>>, vector<128x128xbf16>
    %3 = arith.extf %2 : vector<128x128xbf16> to vector<128x128xf32>
    %cst = arith.constant dense<0.000000e+00> : vector<8x8x128xf32>
    %4 = tpu.matmul %0, %3, %cst {dimension_numbers = #tpu.dot_dimension_numbers<[2], [0], [0, 1], [1], [0, 0, 0, 1, 1, 1], [], []>} : vector<8x8x128xf32>, vector<128x128xf32>, vector<8x8x128xf32> -> vector<8x8x128xf32>
    %c0_6 = arith.constant 0 : index
    %c0_7 = arith.constant 0 : index
    %5 = vector.load %arg4[%c0_6, %c0_7] : memref<1x128xf32, #tpu.memory_space<vmem>>, vector<1x128xf32>
    %6 = vector.shape_cast %5 : vector<1x128xf32> to vector<1x1x128xf32>
    %7 = vector.broadcast %6 : vector<1x1x128xf32> to vector<8x8x128xf32>
    %8 = arith.addf %4, %7 : vector<8x8x128xf32>
    %cst_8 = arith.constant 0.000000e+00 : f32
    %9 = vector.broadcast %cst_8 : f32 to vector<8x8x128xf32>
    %10 = arith.maximumf %8, %9 : vector<8x8x128xf32>
    %c0_9 = arith.constant 0 : index
    %c0_10 = arith.constant 0 : index
    %11 = vector.load %arg5[%c0_9, %c0_10] : memref<128x128xbf16, #tpu.memory_space<vmem>>, vector<128x128xbf16>
    %12 = arith.extf %11 : vector<128x128xbf16> to vector<128x128xf32>
    %cst_11 = arith.constant dense<0.000000e+00> : vector<8x128xf32>
    %13 = tpu.matmul %1, %12, %cst_11 {dimension_numbers = #tpu.dot_dimension_numbers<[1], [0], [0], [1], [0, 0, 1, 1], [], []>} : vector<8x128xf32>, vector<128x128xf32>, vector<8x128xf32> -> vector<8x128xf32>
    %c0_12 = arith.constant 0 : index
    %c0_13 = arith.constant 0 : index
    %14 = vector.load %arg6[%c0_12, %c0_13] : memref<1x128xf32, #tpu.memory_space<vmem>>, vector<1x128xf32>
    %15 = vector.broadcast %14 : vector<1x128xf32> to vector<8x128xf32>
    %16 = arith.addf %13, %15 : vector<8x128xf32>
    %cst_14 = arith.constant 0.000000e+00 : f32
    %17 = vector.broadcast %cst_14 : f32 to vector<8x128xf32>
    %18 = arith.maximumf %16, %17 : vector<8x128xf32>
    %c0_15 = arith.constant 0 : index
    %c0_16 = arith.constant 0 : index
    %19 = vector.load %arg7[%c0_15, %c0_16] : memref<1x128xbf16, #tpu.memory_space<vmem>>, vector<1x128xbf16>
    %20 = arith.extf %19 : vector<1x128xbf16> to vector<1x128xf32>
    %21 = vector.broadcast %20 : vector<1x128xf32> to vector<8x128xf32>
    %22 = arith.mulf %18, %21 : vector<8x128xf32>
    %23 = vector.shape_cast %22 : vector<8x128xf32> to vector<8x1x128xf32>
    %24 = vector.broadcast %23 : vector<8x1x128xf32> to vector<8x8x128xf32>
    %25 = arith.mulf %10, %24 : vector<8x8x128xf32>
    %cst_17 = arith.constant dense<0.000000e+00> : vector<8x8xf32>
    %26 = vector.multi_reduction <add>, %25, %cst_17 [2] : vector<8x8x128xf32> to vector<8x8xf32>
    %cst_18 = arith.constant dense<0xFF800000> : vector<8xf32>
    %27 = vector.multi_reduction <maximumf>, %26, %cst_18 [1] : vector<8x8xf32> to vector<8xf32>
    %28 = vector.shape_cast %27 : vector<8xf32> to vector<8x1xf32>
    %29 = vector.broadcast %28 : vector<8x1xf32> to vector<8x8xf32>
    %30 = arith.subf %26, %29 : vector<8x8xf32>
    %31 = math.exp %30 : vector<8x8xf32>
    %cst_19 = arith.constant dense<0.000000e+00> : vector<8xf32>
    %32 = vector.multi_reduction <add>, %31, %cst_19 [1] : vector<8x8xf32> to vector<8xf32>
    %33 = vector.shape_cast %32 : vector<8xf32> to vector<8x1xf32>
    %34 = vector.broadcast %33 : vector<8x1xf32> to vector<8x8xf32>
    %35 = arith.divf %31, %34 : vector<8x8xf32>
    %36 = vector.shape_cast %35 : vector<8x8xf32> to vector<8x8x1xf32>
    %37 = vector.broadcast %36 : vector<8x8x1xf32> to vector<8x8x128xf32>
    %38 = arith.mulf %37, %0 : vector<8x8x128xf32>
    %cst_20 = arith.constant dense<0.000000e+00> : vector<8x128xf32>
    %39 = vector.multi_reduction <add>, %38, %cst_20 [1] : vector<8x8x128xf32> to vector<8x128xf32>
    %c0_21 = arith.constant 0 : index
    %c0_22 = arith.constant 0 : index
    %40 = vector.load %arg8[%c0_21, %c0_22] : memref<128x128xbf16, #tpu.memory_space<vmem>>, vector<128x128xbf16>
    %41 = arith.extf %40 : vector<128x128xbf16> to vector<128x128xf32>
    %cst_23 = arith.constant dense<0.000000e+00> : vector<8x128xf32>
    %42 = tpu.matmul %1, %41, %cst_23 {dimension_numbers = #tpu.dot_dimension_numbers<[1], [0], [0], [1], [0, 0, 1, 1], [], []>} : vector<8x128xf32>, vector<128x128xf32>, vector<8x128xf32> -> vector<8x128xf32>
    %c0_24 = arith.constant 0 : index
    %c0_25 = arith.constant 0 : index
    %43 = vector.load %arg9[%c0_24, %c0_25] : memref<1x128xf32, #tpu.memory_space<vmem>>, vector<1x128xf32>
    %44 = vector.broadcast %43 : vector<1x128xf32> to vector<8x128xf32>
    %45 = arith.addf %42, %44 : vector<8x128xf32>
    %cst_26 = arith.constant 0.000000e+00 : f32
    %46 = vector.broadcast %cst_26 : f32 to vector<8x128xf32>
    %47 = arith.maximumf %45, %46 : vector<8x128xf32>
    %c0_27 = arith.constant 0 : index
    %c0_28 = arith.constant 0 : index
    %48 = vector.load %arg10[%c0_27, %c0_28] : memref<128x128xbf16, #tpu.memory_space<vmem>>, vector<128x128xbf16>
    %49 = arith.extf %48 : vector<128x128xbf16> to vector<128x128xf32>
    %cst_29 = arith.constant dense<0.000000e+00> : vector<8x128xf32>
    %50 = tpu.matmul %39, %49, %cst_29 {dimension_numbers = #tpu.dot_dimension_numbers<[1], [0], [0], [1], [0, 0, 1, 1], [], []>} : vector<8x128xf32>, vector<128x128xf32>, vector<8x128xf32> -> vector<8x128xf32>
    %c0_30 = arith.constant 0 : index
    %c0_31 = arith.constant 0 : index
    %51 = vector.load %arg11[%c0_30, %c0_31] : memref<1x128xf32, #tpu.memory_space<vmem>>, vector<1x128xf32>
    %52 = vector.broadcast %51 : vector<1x128xf32> to vector<8x128xf32>
    %53 = arith.addf %50, %52 : vector<8x128xf32>
    %cst_32 = arith.constant 0.000000e+00 : f32
    %54 = vector.broadcast %cst_32 : f32 to vector<8x128xf32>
    %55 = arith.maximumf %53, %54 : vector<8x128xf32>
    %56 = arith.mulf %47, %55 : vector<8x128xf32>
    %c0_33 = arith.constant 0 : index
    %c0_34 = arith.constant 0 : index
    %57 = vector.load %arg12[%c0_33, %c0_34] : memref<128x256xbf16, #tpu.memory_space<vmem>>, vector<128x256xbf16>
    %58 = arith.extf %57 : vector<128x256xbf16> to vector<128x256xf32>
    %cst_35 = arith.constant dense<0.000000e+00> : vector<8x256xf32>
    %59 = tpu.matmul %56, %58, %cst_35 {dimension_numbers = #tpu.dot_dimension_numbers<[1], [0], [0], [1], [0, 0, 1, 1], [], []>} : vector<8x128xf32>, vector<128x256xf32>, vector<8x256xf32> -> vector<8x256xf32>
    %c0_36 = arith.constant 0 : index
    %c0_37 = arith.constant 0 : index
    %60 = vector.load %arg13[%c0_36, %c0_37] : memref<1x256xf32, #tpu.memory_space<vmem>>, vector<1x256xf32>
    %61 = vector.broadcast %60 : vector<1x256xf32> to vector<8x256xf32>
    %62 = arith.addf %59, %61 : vector<8x256xf32>
    %cst_38 = arith.constant 0.000000e+00 : f32
    %63 = vector.broadcast %cst_38 : f32 to vector<8x256xf32>
    %64 = arith.maximumf %62, %63 : vector<8x256xf32>
    %c0_39 = arith.constant 0 : index
    %c0_40 = arith.constant 0 : index
    %65 = vector.load %arg14[%c0_39, %c0_40] : memref<8x128xf32, #tpu.memory_space<vmem>>, vector<8x128xf32>
    tpu.vector_store %arg14[%c0_39, %c0_40], %56 {strides = array<i32>} : memref<8x128xf32, #tpu.memory_space<vmem>>, vector<8x128xf32>,
    %c0_41 = arith.constant 0 : index
    %c0_42 = arith.constant 0 : index
    %66 = vector.load %arg15[%c0_41, %c0_42] : memref<8x256xf32, #tpu.memory_space<vmem>>, vector<8x256xf32>
    tpu.vector_store %arg15[%c0_41, %c0_42], %64 {strides = array<i32>} : memref<8x256xf32, #tpu.memory_space<vmem>>, vector<8x256xf32>,
    return
  }
  func.func @transform_0(%arg0: i32) -> (i32, i32, i32) {
    %c0_i32 = arith.constant 0 : i32
    %c0_i32_0 = arith.constant 0 : i32
    %c0_i32_1 = arith.constant 0 : i32
    return %arg0, %c0_i32, %c0_i32_0 : i32, i32, i32
  }
  func.func @transform_1(%arg0: i32) -> (i32, i32) {
    %c0_i32 = arith.constant 0 : i32
    %c0_i32_0 = arith.constant 0 : i32
    return %arg0, %c0_i32 : i32, i32
  }
  func.func @transform_2(%arg0: i32) -> (i32, i32) {
    %c0_i32 = arith.constant 0 : i32
    %c0_i32_0 = arith.constant 0 : i32
    %c0_i32_1 = arith.constant 0 : i32
    return %c0_i32, %c0_i32_0 : i32, i32
  }
  func.func @transform_3(%arg0: i32) -> (i32, i32) {
    %c0_i32 = arith.constant 0 : i32
    %c0_i32_0 = arith.constant 0 : i32
    %c0_i32_1 = arith.constant 0 : i32
    return %c0_i32, %c0_i32_0 : i32, i32
  }
  func.func @transform_4(%arg0: i32) -> (i32, i32) {
    %c0_i32 = arith.constant 0 : i32
    %c0_i32_0 = arith.constant 0 : i32
    %c0_i32_1 = arith.constant 0 : i32
    return %c0_i32, %c0_i32_0 : i32, i32
  }
  func.func @transform_5(%arg0: i32) -> (i32, i32) {
    %c0_i32 = arith.constant 0 : i32
    %c0_i32_0 = arith.constant 0 : i32
    %c0_i32_1 = arith.constant 0 : i32
    return %c0_i32, %c0_i32_0 : i32, i32
  }
  func.func @transform_6(%arg0: i32) -> (i32, i32) {
    %c0_i32 = arith.constant 0 : i32
    %c0_i32_0 = arith.constant 0 : i32
    %c0_i32_1 = arith.constant 0 : i32
    return %c0_i32, %c0_i32_0 : i32, i32
  }
  func.func @transform_7(%arg0: i32) -> (i32, i32) {
    %c0_i32 = arith.constant 0 : i32
    %c0_i32_0 = arith.constant 0 : i32
    %c0_i32_1 = arith.constant 0 : i32
    return %c0_i32, %c0_i32_0 : i32, i32
  }
  func.func @transform_8(%arg0: i32) -> (i32, i32) {
    %c0_i32 = arith.constant 0 : i32
    %c0_i32_0 = arith.constant 0 : i32
    %c0_i32_1 = arith.constant 0 : i32
    return %c0_i32, %c0_i32_0 : i32, i32
  }
  func.func @transform_9(%arg0: i32) -> (i32, i32) {
    %c0_i32 = arith.constant 0 : i32
    %c0_i32_0 = arith.constant 0 : i32
    %c0_i32_1 = arith.constant 0 : i32
    return %c0_i32, %c0_i32_0 : i32, i32
  }
  func.func @transform_10(%arg0: i32) -> (i32, i32) {
    %c0_i32 = arith.constant 0 : i32
    %c0_i32_0 = arith.constant 0 : i32
    %c0_i32_1 = arith.constant 0 : i32
    return %c0_i32, %c0_i32_0 : i32, i32
  }
  func.func @transform_11(%arg0: i32) -> (i32, i32) {
    %c0_i32 = arith.constant 0 : i32
    %c0_i32_0 = arith.constant 0 : i32
    %c0_i32_1 = arith.constant 0 : i32
    return %c0_i32, %c0_i32_0 : i32, i32
  }
  func.func @transform_12(%arg0: i32) -> (i32, i32) {
    %c0_i32 = arith.constant 0 : i32
    %c0_i32_0 = arith.constant 0 : i32
    %c0_i32_1 = arith.constant 0 : i32
    return %c0_i32, %c0_i32_0 : i32, i32
  }
  func.func @transform_13(%arg0: i32) -> (i32, i32) {
    %c0_i32 = arith.constant 0 : i32
    %c0_i32_0 = arith.constant 0 : i32
    return %arg0, %c0_i32 : i32, i32
  }
  func.func @transform_14(%arg0: i32) -> (i32, i32) {
    %c0_i32 = arith.constant 0 : i32
    %c0_i32_0 = arith.constant 0 : i32
    return %arg0, %c0_i32 : i32, i32
  }
}

module attributes {stable_mosaic.version = 11 : i64} {
  func.func @_linear_kernel(%arg0: i32, %arg1: i32, %arg2: memref<8x256xf32, #tpu.memory_space<vmem>>, %arg3: memref<256x128xbf16, #tpu.memory_space<vmem>>, %arg4: memref<1x128xf32, #tpu.memory_space<vmem>>, %arg5: memref<8x128xf32, #tpu.memory_space<vmem>>) attributes {dimension_semantics = [#tpu.dimension_semantics<parallel>, #tpu.dimension_semantics<parallel>], iteration_bounds = array<i64: 1, 1>, scalar_prefetch = 0 : i64, scratch_operands = 0 : i64, tpu.core_type = #tpu.core_type<tc>, window_params = [{transform_indices = @transform_0, window_bounds = array<i64: 8, 256>}, {transform_indices = @transform_1, window_bounds = array<i64: 256, 128>}, {transform_indices = @transform_2, window_bounds = array<i64: 1, 128>}, {transform_indices = @transform_3, window_bounds = array<i64: 8, 128>}]} {
    %c0 = arith.constant 0 : index
    %c0_0 = arith.constant 0 : index
    %0 = vector.load %arg2[%c0, %c0_0] : memref<8x256xf32, #tpu.memory_space<vmem>>, vector<8x256xf32>
    %c0_1 = arith.constant 0 : index
    %c0_2 = arith.constant 0 : index
    %1 = vector.load %arg3[%c0_1, %c0_2] : memref<256x128xbf16, #tpu.memory_space<vmem>>, vector<256x128xbf16>
    %2 = arith.extf %1 : vector<256x128xbf16> to vector<256x128xf32>
    %cst = arith.constant dense<0.000000e+00> : vector<8x128xf32>
    %3 = tpu.matmul %0, %2, %cst {dimension_numbers = #tpu.dot_dimension_numbers<[1], [0], [0], [1], [0, 0, 1, 1], [], []>} : vector<8x256xf32>, vector<256x128xf32>, vector<8x128xf32> -> vector<8x128xf32>
    %c0_3 = arith.constant 0 : index
    %c0_4 = arith.constant 0 : index
    %4 = vector.load %arg4[%c0_3, %c0_4] : memref<1x128xf32, #tpu.memory_space<vmem>>, vector<1x128xf32>
    %5 = vector.broadcast %4 : vector<1x128xf32> to vector<8x128xf32>
    %6 = arith.addf %3, %5 : vector<8x128xf32>
    %c0_5 = arith.constant 0 : index
    %c0_6 = arith.constant 0 : index
    %7 = vector.load %arg5[%c0_5, %c0_6] : memref<8x128xf32, #tpu.memory_space<vmem>>, vector<8x128xf32>
    tpu.vector_store %arg5[%c0_5, %c0_6], %6 {strides = array<i32>} : memref<8x128xf32, #tpu.memory_space<vmem>>, vector<8x128xf32>,
    return
  }
  func.func @transform_0(%arg0: i32, %arg1: i32) -> (i32, i32) {
    %c0_i32 = arith.constant 0 : i32
    %c0_i32_0 = arith.constant 0 : i32
    return %arg1, %c0_i32 : i32, i32
  }
  func.func @transform_1(%arg0: i32, %arg1: i32) -> (i32, i32) {
    %c0_i32 = arith.constant 0 : i32
    %c0_i32_0 = arith.constant 0 : i32
    return %c0_i32, %arg0 : i32, i32
  }
  func.func @transform_2(%arg0: i32, %arg1: i32) -> (i32, i32) {
    %c0_i32 = arith.constant 0 : i32
    %c0_i32_0 = arith.constant 0 : i32
    return %c0_i32, %arg0 : i32, i32
  }
  func.func @transform_3(%arg0: i32, %arg1: i32) -> (i32, i32) {
    %c0_i32 = arith.constant 0 : i32
    return %arg1, %arg0 : i32, i32
  }
}

module attributes {stable_mosaic.version = 11 : i64} {
  func.func @_lstm_kernel(%arg0: i32, %arg1: i32, %arg2: memref<1x8x512xf32, #tpu.memory_space<vmem>>, %arg3: memref<128x512xbf16, #tpu.memory_space<vmem>>, %arg4: memref<1x512xf32, #tpu.memory_space<vmem>>, %arg5: memref<1x8x128xf32, #tpu.memory_space<vmem>>, %arg6: memref<8x128xf32, #tpu.memory_space<vmem>>, %arg7: memref<8x128xf32, #tpu.memory_space<vmem>>) attributes {dimension_semantics = [#tpu.dimension_semantics<parallel>, #tpu.dimension_semantics<arbitrary>], iteration_bounds = array<i64: 1, 8>, scalar_prefetch = 0 : i64, scratch_operands = 2 : i64, tpu.core_type = #tpu.core_type<tc>, window_params = [{transform_indices = @transform_0, window_bounds = array<i64: 1, 8, 512>}, {pipeline_mode = #tpu.pipeline_mode<synchronous>, transform_indices = @transform_1, window_bounds = array<i64: 128, 512>}, {pipeline_mode = #tpu.pipeline_mode<synchronous>, transform_indices = @transform_2, window_bounds = array<i64: 1, 512>}, {transform_indices = @transform_3, window_bounds = array<i64: 1, 8, 128>}]} {
    %c0_i32 = arith.constant 0 : i32
    %0 = arith.cmpi eq, %arg1, %c0_i32 : i32
    %1 = arith.extui %0 : i1 to i32
    %c0_i32_0 = arith.constant 0 : i32
    %2 = arith.cmpi ne, %1, %c0_i32_0 : i32
    scf.if %2 {
      %cst_21 = arith.constant 0.000000e+00 : f32
      %43 = vector.broadcast %cst_21 : f32 to vector<8x128xf32>
      %c0_22 = arith.constant 0 : index
      %c0_23 = arith.constant 0 : index
      %44 = vector.load %arg6[%c0_22, %c0_23] : memref<8x128xf32, #tpu.memory_space<vmem>>, vector<8x128xf32>
      tpu.vector_store %arg6[%c0_22, %c0_23], %43 {strides = array<i32>} : memref<8x128xf32, #tpu.memory_space<vmem>>, vector<8x128xf32>,
      %cst_24 = arith.constant 0.000000e+00 : f32
      %45 = vector.broadcast %cst_24 : f32 to vector<8x128xf32>
      %c0_25 = arith.constant 0 : index
      %c0_26 = arith.constant 0 : index
      %46 = vector.load %arg7[%c0_25, %c0_26] : memref<8x128xf32, #tpu.memory_space<vmem>>, vector<8x128xf32>
      tpu.vector_store %arg7[%c0_25, %c0_26], %45 {strides = array<i32>} : memref<8x128xf32, #tpu.memory_space<vmem>>, vector<8x128xf32>,
    } else {
    }
    %c0 = arith.constant 0 : index
    %c0_1 = arith.constant 0 : index
    %c0_2 = arith.constant 0 : index
    %3 = vector.load %arg2[%c0, %c0_1, %c0_2] : memref<1x8x512xf32, #tpu.memory_space<vmem>>, vector<1x8x512xf32>
    %4 = vector.shape_cast %3 : vector<1x8x512xf32> to vector<8x512xf32>
    %c0_3 = arith.constant 0 : index
    %c0_4 = arith.constant 0 : index
    %5 = vector.load %arg6[%c0_3, %c0_4] : memref<8x128xf32, #tpu.memory_space<vmem>>, vector<8x128xf32>
    %c0_5 = arith.constant 0 : index
    %c0_6 = arith.constant 0 : index
    %6 = vector.load %arg7[%c0_5, %c0_6] : memref<8x128xf32, #tpu.memory_space<vmem>>, vector<8x128xf32>
    %c0_7 = arith.constant 0 : index
    %c0_8 = arith.constant 0 : index
    %7 = vector.load %arg3[%c0_7, %c0_8] : memref<128x512xbf16, #tpu.memory_space<vmem>>, vector<128x512xbf16>
    %8 = arith.extf %7 : vector<128x512xbf16> to vector<128x512xf32>
    %cst = arith.constant dense<0.000000e+00> : vector<8x512xf32>
    %9 = tpu.matmul %5, %8, %cst {dimension_numbers = #tpu.dot_dimension_numbers<[1], [0], [0], [1], [0, 0, 1, 1], [], []>} : vector<8x128xf32>, vector<128x512xf32>, vector<8x512xf32> -> vector<8x512xf32>
    %10 = arith.addf %4, %9 : vector<8x512xf32>
    %c0_9 = arith.constant 0 : index
    %c0_10 = arith.constant 0 : index
    %11 = vector.load %arg4[%c0_9, %c0_10] : memref<1x512xf32, #tpu.memory_space<vmem>>, vector<1x512xf32>
    %12 = vector.broadcast %11 : vector<1x512xf32> to vector<8x512xf32>
    %13 = arith.addf %10, %12 : vector<8x512xf32>
    %14 = vector.extract_strided_slice %13 {offsets = [0, 0], sizes = [8, 128], strides = [1, 1]} : vector<8x512xf32> to vector<8x128xf32>
    %15 = arith.negf %14 : vector<8x128xf32>
    %16 = math.exp %15 : vector<8x128xf32>
    %cst_11 = arith.constant 1.000000e+00 : f32
    %17 = vector.broadcast %cst_11 : f32 to vector<8x128xf32>
    %18 = arith.addf %17, %16 : vector<8x128xf32>
    %19 = arith.divf %17, %18 : vector<8x128xf32>
    %20 = vector.extract_strided_slice %13 {offsets = [0, 128], sizes = [8, 128], strides = [1, 1]} : vector<8x512xf32> to vector<8x128xf32>
    %21 = arith.negf %20 : vector<8x128xf32>
    %22 = math.exp %21 : vector<8x128xf32>
    %cst_12 = arith.constant 1.000000e+00 : f32
    %23 = vector.broadcast %cst_12 : f32 to vector<8x128xf32>
    %24 = arith.addf %23, %22 : vector<8x128xf32>
    %25 = arith.divf %23, %24 : vector<8x128xf32>
    %26 = vector.extract_strided_slice %13 {offsets = [0, 256], sizes = [8, 128], strides = [1, 1]} : vector<8x512xf32> to vector<8x128xf32>
    %27 = math.tanh %26 : vector<8x128xf32>
    %28 = vector.extract_strided_slice %13 {offsets = [0, 384], sizes = [8, 128], strides = [1, 1]} : vector<8x512xf32> to vector<8x128xf32>
    %29 = arith.negf %28 : vector<8x128xf32>
    %30 = math.exp %29 : vector<8x128xf32>
    %cst_13 = arith.constant 1.000000e+00 : f32
    %31 = vector.broadcast %cst_13 : f32 to vector<8x128xf32>
    %32 = arith.addf %31, %30 : vector<8x128xf32>
    %33 = arith.divf %31, %32 : vector<8x128xf32>
    %34 = arith.mulf %25, %6 : vector<8x128xf32>
    %35 = arith.mulf %19, %27 : vector<8x128xf32>
    %36 = arith.addf %34, %35 : vector<8x128xf32>
    %37 = math.tanh %36 : vector<8x128xf32>
    %38 = arith.mulf %33, %37 : vector<8x128xf32>
    %c0_14 = arith.constant 0 : index
    %c0_15 = arith.constant 0 : index
    %39 = vector.load %arg6[%c0_14, %c0_15] : memref<8x128xf32, #tpu.memory_space<vmem>>, vector<8x128xf32>
    tpu.vector_store %arg6[%c0_14, %c0_15], %38 {strides = array<i32>} : memref<8x128xf32, #tpu.memory_space<vmem>>, vector<8x128xf32>,
    %c0_16 = arith.constant 0 : index
    %c0_17 = arith.constant 0 : index
    %40 = vector.load %arg7[%c0_16, %c0_17] : memref<8x128xf32, #tpu.memory_space<vmem>>, vector<8x128xf32>
    tpu.vector_store %arg7[%c0_16, %c0_17], %36 {strides = array<i32>} : memref<8x128xf32, #tpu.memory_space<vmem>>, vector<8x128xf32>,
    %41 = vector.shape_cast %38 : vector<8x128xf32> to vector<1x8x128xf32>
    %c0_18 = arith.constant 0 : index
    %c0_19 = arith.constant 0 : index
    %c0_20 = arith.constant 0 : index
    %42 = vector.load %arg5[%c0_18, %c0_19, %c0_20] : memref<1x8x128xf32, #tpu.memory_space<vmem>>, vector<1x8x128xf32>
    tpu.vector_store %arg5[%c0_18, %c0_19, %c0_20], %41 {strides = array<i32>} : memref<1x8x128xf32, #tpu.memory_space<vmem>>, vector<1x8x128xf32>,
    return
  }
  func.func @transform_0(%arg0: i32, %arg1: i32) -> (i32, i32, i32) {
    %c0_i32 = arith.constant 0 : i32
    %c0_i32_0 = arith.constant 0 : i32
    return %arg1, %arg0, %c0_i32 : i32, i32, i32
  }
  func.func @transform_1(%arg0: i32, %arg1: i32) -> (i32, i32) {
    %c0_i32 = arith.constant 0 : i32
    %c0_i32_0 = arith.constant 0 : i32
    %c0_i32_1 = arith.constant 0 : i32
    return %c0_i32, %c0_i32_0 : i32, i32
  }
  func.func @transform_2(%arg0: i32, %arg1: i32) -> (i32, i32) {
    %c0_i32 = arith.constant 0 : i32
    %c0_i32_0 = arith.constant 0 : i32
    %c0_i32_1 = arith.constant 0 : i32
    return %c0_i32, %c0_i32_0 : i32, i32
  }
  func.func @transform_3(%arg0: i32, %arg1: i32) -> (i32, i32, i32) {
    %c0_i32 = arith.constant 0 : i32
    %c0_i32_0 = arith.constant 0 : i32
    return %arg1, %arg0, %c0_i32 : i32, i32, i32
  }
}

module attributes {stable_mosaic.version = 11 : i64} {
  func.func @_linear_kernel(%arg0: i32, %arg1: i32, %arg2: memref<64x128xf32, #tpu.memory_space<vmem>>, %arg3: memref<128x512xbf16, #tpu.memory_space<vmem>>, %arg4: memref<1x512xf32, #tpu.memory_space<vmem>>, %arg5: memref<64x512xf32, #tpu.memory_space<vmem>>) attributes {dimension_semantics = [#tpu.dimension_semantics<parallel>, #tpu.dimension_semantics<parallel>], iteration_bounds = array<i64: 1, 1>, scalar_prefetch = 0 : i64, scratch_operands = 0 : i64, tpu.core_type = #tpu.core_type<tc>, window_params = [{transform_indices = @transform_0, window_bounds = array<i64: 64, 128>}, {transform_indices = @transform_1, window_bounds = array<i64: 128, 512>}, {transform_indices = @transform_2, window_bounds = array<i64: 1, 512>}, {transform_indices = @transform_3, window_bounds = array<i64: 64, 512>}]} {
    %c0 = arith.constant 0 : index
    %c0_0 = arith.constant 0 : index
    %0 = vector.load %arg2[%c0, %c0_0] : memref<64x128xf32, #tpu.memory_space<vmem>>, vector<64x128xf32>
    %c0_1 = arith.constant 0 : index
    %c0_2 = arith.constant 0 : index
    %1 = vector.load %arg3[%c0_1, %c0_2] : memref<128x512xbf16, #tpu.memory_space<vmem>>, vector<128x512xbf16>
    %2 = arith.extf %1 : vector<128x512xbf16> to vector<128x512xf32>
    %cst = arith.constant dense<0.000000e+00> : vector<64x512xf32>
    %3 = tpu.matmul %0, %2, %cst {dimension_numbers = #tpu.dot_dimension_numbers<[1], [0], [0], [1], [0, 0, 1, 1], [], []>} : vector<64x128xf32>, vector<128x512xf32>, vector<64x512xf32> -> vector<64x512xf32>
    %c0_3 = arith.constant 0 : index
    %c0_4 = arith.constant 0 : index
    %4 = vector.load %arg4[%c0_3, %c0_4] : memref<1x512xf32, #tpu.memory_space<vmem>>, vector<1x512xf32>
    %5 = vector.broadcast %4 : vector<1x512xf32> to vector<64x512xf32>
    %6 = arith.addf %3, %5 : vector<64x512xf32>
    %c0_5 = arith.constant 0 : index
    %c0_6 = arith.constant 0 : index
    %7 = vector.load %arg5[%c0_5, %c0_6] : memref<64x512xf32, #tpu.memory_space<vmem>>, vector<64x512xf32>
    tpu.vector_store %arg5[%c0_5, %c0_6], %6 {strides = array<i32>} : memref<64x512xf32, #tpu.memory_space<vmem>>, vector<64x512xf32>,
    return
  }
  func.func @transform_0(%arg0: i32, %arg1: i32) -> (i32, i32) {
    %c0_i32 = arith.constant 0 : i32
    %c0_i32_0 = arith.constant 0 : i32
    return %arg1, %c0_i32 : i32, i32
  }
  func.func @transform_1(%arg0: i32, %arg1: i32) -> (i32, i32) {
    %c0_i32 = arith.constant 0 : i32
    %c0_i32_0 = arith.constant 0 : i32
    return %c0_i32, %arg0 : i32, i32
  }
  func.func @transform_2(%arg0: i32, %arg1: i32) -> (i32, i32) {
    %c0_i32 = arith.constant 0 : i32
    %c0_i32_0 = arith.constant 0 : i32
    return %c0_i32, %arg0 : i32, i32
  }
  func.func @transform_3(%arg0: i32, %arg1: i32) -> (i32, i32) {
    %c0_i32 = arith.constant 0 : i32
    return %arg1, %arg0 : i32, i32
  }
}

module attributes {stable_mosaic.version = 11 : i64} {
  func.func @_linear_kernel(%arg0: i32, %arg1: i32, %arg2: memref<64x128xf32, #tpu.memory_space<vmem>>, %arg3: memref<128x256xbf16, #tpu.memory_space<vmem>>, %arg4: memref<1x256xf32, #tpu.memory_space<vmem>>, %arg5: memref<64x256xf32, #tpu.memory_space<vmem>>) attributes {dimension_semantics = [#tpu.dimension_semantics<parallel>, #tpu.dimension_semantics<parallel>], iteration_bounds = array<i64: 1, 1>, scalar_prefetch = 0 : i64, scratch_operands = 0 : i64, tpu.core_type = #tpu.core_type<tc>, window_params = [{transform_indices = @transform_0, window_bounds = array<i64: 64, 128>}, {transform_indices = @transform_1, window_bounds = array<i64: 128, 256>}, {transform_indices = @transform_2, window_bounds = array<i64: 1, 256>}, {transform_indices = @transform_3, window_bounds = array<i64: 64, 256>}]} {
    %c0 = arith.constant 0 : index
    %c0_0 = arith.constant 0 : index
    %0 = vector.load %arg2[%c0, %c0_0] : memref<64x128xf32, #tpu.memory_space<vmem>>, vector<64x128xf32>
    %c0_1 = arith.constant 0 : index
    %c0_2 = arith.constant 0 : index
    %1 = vector.load %arg3[%c0_1, %c0_2] : memref<128x256xbf16, #tpu.memory_space<vmem>>, vector<128x256xbf16>
    %2 = arith.extf %1 : vector<128x256xbf16> to vector<128x256xf32>
    %cst = arith.constant dense<0.000000e+00> : vector<64x256xf32>
    %3 = tpu.matmul %0, %2, %cst {dimension_numbers = #tpu.dot_dimension_numbers<[1], [0], [0], [1], [0, 0, 1, 1], [], []>} : vector<64x128xf32>, vector<128x256xf32>, vector<64x256xf32> -> vector<64x256xf32>
    %c0_3 = arith.constant 0 : index
    %c0_4 = arith.constant 0 : index
    %4 = vector.load %arg4[%c0_3, %c0_4] : memref<1x256xf32, #tpu.memory_space<vmem>>, vector<1x256xf32>
    %5 = vector.broadcast %4 : vector<1x256xf32> to vector<64x256xf32>
    %6 = arith.addf %3, %5 : vector<64x256xf32>
    %c0_5 = arith.constant 0 : index
    %c0_6 = arith.constant 0 : index
    %7 = vector.load %arg5[%c0_5, %c0_6] : memref<64x256xf32, #tpu.memory_space<vmem>>, vector<64x256xf32>
    tpu.vector_store %arg5[%c0_5, %c0_6], %6 {strides = array<i32>} : memref<64x256xf32, #tpu.memory_space<vmem>>, vector<64x256xf32>,
    return
  }
  func.func @transform_0(%arg0: i32, %arg1: i32) -> (i32, i32) {
    %c0_i32 = arith.constant 0 : i32
    %c0_i32_0 = arith.constant 0 : i32
    return %arg1, %c0_i32 : i32, i32
  }
  func.func @transform_1(%arg0: i32, %arg1: i32) -> (i32, i32) {
    %c0_i32 = arith.constant 0 : i32
    %c0_i32_0 = arith.constant 0 : i32
    return %c0_i32, %arg0 : i32, i32
  }
  func.func @transform_2(%arg0: i32, %arg1: i32) -> (i32, i32) {
    %c0_i32 = arith.constant 0 : i32
    %c0_i32_0 = arith.constant 0 : i32
    return %c0_i32, %arg0 : i32, i32
  }
  func.func @transform_3(%arg0: i32, %arg1: i32) -> (i32, i32) {
    %c0_i32 = arith.constant 0 : i32
    return %arg1, %arg0 : i32, i32
  }
}

</mosaic_0001>

<bundles_post_ra>
// kernel: vqae_forward.10
= control target key start
LH: loop header
LB: loop body
LE: loop exit
PB: predicated region body
PF: predicated region fallthrough
CT: control target
= control target key end

     0   :  { %s392_s0 = inlined_call_operand.vmem [shape: f32[8,256], index: 0, kind: input, shape index: {}]   ;;  %s393_s1 = inlined_call_operand.vmem [shape: bf16[256,128], index: 1, kind: input, shape index: {}]   ;;  %s394_s2 = inlined_call_operand.vmem [shape: f32[1,128], index: 2, kind: input, shape index: {}]   ;;  %s395_s3 = inlined_call_operand.hbm [shape: f32[8,128], index: 3, kind: output, shape index: {}]  }
   0x1   :  { %v252_v0 = vld [vmem:[%s393_s1 + $0x78] sm:$0xff]   ;;  %v251_v2 = vld [vmem:[%s393_s1 + $0x70] sm:$0xff]   ;;  %v250_v10 = vld [vmem:[%s393_s1 + $0x68] sm:$0xff]  }
   0x2   :  { %v244_v1 = vld [vmem:[%s393_s1 + $0x38] sm:$0xff]   ;;  %v236_v3 = vunpack.c.l.bf16 %v252_v0  ;;  %v237_v4 = vunpack.c.h.bf16 %v252_v0  ;;  %v243_v6 = vld [vmem:[%s393_s1 + $0x30] sm:$0xff]   ;;  %v233_v8 = vunpack.c.h.bf16 %v251_v2  ;;  %v232_v11 = vunpack.c.l.bf16 %v251_v2  ;;  %v242_v12 = vld [vmem:[%s393_s1 + $0x28] sm:$0xff]  }
   0x3   :  { %v205_v5 = vunpack.c.h.bf16 %v244_v1  ;;  %v204_v7 = vunpack.c.l.bf16 %v244_v1  ;;  %v201_v9 = vunpack.c.h.bf16 %v243_v6  ;;  %v16_v13 = vld [vmem:[%s392_s0 + $0x8] sm:$0xff]  ;;  %v200_v14 = vunpack.c.l.bf16 %v243_v6 }
   0x4   :  { %253 = vmatprep.subr.mxu0 %v237_v4  ;;  %152 = vmatprep.mubr.f32.mxu0 %v16_v13 }
   0x5   :  { %254 = vmatpush3.msra.mxu0 %v205_v5 }
   0x6   :  { %255 = vmatprep.subr.mxu0 %v236_v3 }
   0x7   :  { %256 = vmatpush3.msra.mxu0 %v204_v7 }
   0x8   :  { %8 = vsyncpa [#allocation3], 0  ;;  %257 = vmatprep.subr.mxu0 %v233_v8  ;;  %v229_v15 = vunpack.c.h.bf16 %v250_v10  ;;  %v197_v16 = vunpack.c.h.bf16 %v242_v12  ;;  %v249_v17 = vld [vmem:[%s393_s1 + $0x60] sm:$0xff]   ;;  %v228_v18 = vunpack.c.l.bf16 %v250_v10  ;;  %v196_v20 = vunpack.c.l.bf16 %v242_v12  ;;  %v248_v23 = vld [vmem:[%s393_s1 + $0x58] sm:$0xff]   ;;  %s311_s22 = smov [#allocation2]  }
   0x9   :  { %258 = vmatpush3.msra.mxu0 %v201_v9  ;;  %v241_v19 = vld [vmem:[%s393_s1 + $0x20] sm:$0xff]   ;;  %v225_v21 = vunpack.c.h.bf16 %v249_v17  ;;  %v224_v24 = vunpack.c.l.bf16 %v249_v17  ;;  %v240_v25 = vld [vmem:[%s393_s1 + $0x18] sm:$0xff]   ;;  %v221_v27 = vunpack.c.h.bf16 %v248_v23  ;;  %v247_v29 = vld [vmem:[%s393_s1 + $0x50] sm:$0xff]   ;;  %v220_v30 = vunpack.c.l.bf16 %v248_v23  ;;  %s165_s23 = sshll.u32 %s311_s22, 4  ;;  %s166_s23 = int_to_ptr.vmem [resolvable:$true] %s165_s23 }
   0xa   :  { %259 = vmatprep.subr.mxu0 %v232_v11  ;;  %v193_v22 = vunpack.c.h.bf16 %v241_v19  ;;  %v192_v26 = vunpack.c.l.bf16 %v241_v19  ;;  %v189_v28 = vunpack.c.h.bf16 %v240_v25  ;;  %v239_v31 = vld [vmem:[%s393_s1 + $0x10] sm:$0xff]   ;;  %v188_v32 = vunpack.c.l.bf16 %v240_v25  ;;  %v246_v35 = vld [vmem:[%s393_s1 + $0x48] sm:$0xff]   ;;  %v245_v41 = vld [vmem:[%s393_s1 + $0x40] sm:$0xff]   ;;  %s289_s24 = scalar_lea.vmem %s166_s23, 128  ;;  %p294_p1 = scmp.lt.s32.totalorder %s166_s23, %s166_s23 }
   0xb   :  { %260 = vmatpush3.msra.mxu0 %v200_v14  ;;  %v217_v33 = vunpack.c.h.bf16 %v247_v29  ;;  %v185_v34 = vunpack.c.h.bf16 %v239_v31  ;;  %v216_v36 = vunpack.c.l.bf16 %v247_v29  ;;  %v238_v37 = vld [vmem:[%s393_s1 + $0x8] sm:$0xff]   ;;  %v184_v38 = vunpack.c.l.bf16 %v239_v31  ;;  %v175_v43 = vld [vmem:[%s393_s1] sm:$0xff]   ;;  %p290_p0 = scmp.ne.s32.totalorder %s166_s23, %s289_s24  ;;  %p295_p2 = scmp.lt.s32.totalorder %s289_s24, %s289_s24 }
   0xc   :  { %261 = vmatprep.subr.mxu0 %v229_v15  ;;  %v213_v39 = vunpack.c.h.bf16 %v246_v35  ;;  %v181_v40 = vunpack.c.h.bf16 %v238_v37  ;;  %v212_v42 = vunpack.c.l.bf16 %v246_v35  ;;  %v180_v44 = vunpack.c.l.bf16 %v238_v37  ;;  %v15_v49 = vld [vmem:[%s392_s0] sm:$0xff] }
   0xd   :  { %262 = vmatpush3.msra.mxu0 %v197_v16  ;;  %v209_v45 = vunpack.c.h.bf16 %v245_v41  ;;  %v177_v46 = vunpack.c.h.bf16 %v175_v43  ;;  %v208_v47 = vunpack.c.l.bf16 %v245_v41  ;;  %v176_v48 = vunpack.c.l.bf16 %v175_v43  ;;  %v173_v52 = vld [vmem:[%s394_s2] ss:$0 sm:$0xff]  ;;  %p296_p3 = por %p295_p2, %p294_p1 }
   0xe   :  { %263 = vmatprep.subr.mxu0 %v228_v18 }
   0xf   :  { %264 = vmatpush3.msra.mxu0 %v196_v20  ;;  %p297_p4 = pnand %p296_p3, %p290_p0 }
  0x10   :  { %265 = vmatprep.subr.mxu0 %v225_v21 }
  0x11   :  { %266 = vmatpush3.msra.mxu0 %v193_v22 }
  0x12   :  { %267 = vmatprep.subr.mxu0 %v224_v24 }
  0x13   :  { %268 = vmatpush3.msra.mxu0 %v192_v26 }
  0x14   :  { %269 = vmatprep.subr.mxu0 %v221_v27 }
  0x15   :  { %270 = vmatpush3.msra.mxu0 %v189_v28 }
  0x16   :  { %271 = vmatprep.subr.mxu0 %v220_v30 }
  0x17   :  { %272 = vmatpush3.msra.mxu0 %v188_v32 }
  0x18   :  { %273 = vmatprep.subr.mxu0 %v217_v33 }
  0x19   :  { %274 = vmatpush3.msra.mxu0 %v185_v34 }
  0x1a   :  { %275 = vmatprep.subr.mxu0 %v216_v36 }
  0x1b   :  { %276 = vmatpush3.msra.mxu0 %v184_v38 }
  0x1c   :  { %277 = vmatprep.subr.mxu0 %v213_v39 }
  0x1d   :  { %278 = vmatpush3.msra.mxu0 %v181_v40 }
  0x1e   :  { %279 = vmatprep.subr.mxu0 %v212_v42 }
  0x1f   :  { %280 = vmatpush3.msra.mxu0 %v180_v44 }
  0x20   :  { %281 = vmatprep.subr.mxu0 %v209_v45 }
  0x21   :  { %282 = vmatpush3.msra.mxu0 %v177_v46 }
  0x22   :  { %283 = vmatprep.subr.mxu0 %v208_v47 }
  0x23   :  { %284 = vmatpush3.msra.mxu0 %v176_v48 }
  0x24   :  { %153 = vmatmul.mubr.f32.vlgmr.msra.gmra.mxu0 %v15_v49 }
  0xe4   :  { %v285_v50 = vpop.f32.mrf.mxu0 }
  0xe6   :  { %v286_v51 = vpop.f32.mrf.mxu0 }
  0xe7   :  { %v287_v53 = vadd.f32 %v286_v51, %v285_v50 }
  0xe9   :  { %v155_v54 = vadd.f32 %v287_v53, %v173_v52 }
  0xeb   :  { %158 = vst [vmem:[#allocation2] sm:$0xff] %v155_v54 }
  0xec   :  { %300 = shalt.err (!%p297_p4)
}
  0xed   :  { %168 = dma.vmem_to_hbm [thread:$0]  %s166_s23, 128, %s395_s3, [#allocation3]  }
  0xee   :  { %309 = dma.done.wait [#allocation3], 128  }
  0xef   :  { %310 = vsyncadd [#allocation3], 4294967168 }
  0xf0   :  { %172 = vsyncpa [#allocation3], 1 }

// kernel: vqae_forward.8
= control target key start
LH: loop header
LB: loop body
LE: loop exit
PB: predicated region body
PF: predicated region fallthrough
CT: control target
= control target key end

     0   :  { %s686_s12 = smov 0   ;;  %s688_s13 = smov 0   ;;  %s823_s0 = inlined_call_operand.vmem [shape: f32[8,8,384], index: 0, kind: input, shape index: {}]   ;;  %s824_s1 = inlined_call_operand.vmem [shape: bf16[128,384], index: 1, kind: input, shape index: {}]   ;;  %s825_s2 = inlined_call_operand.vmem [shape: f32[1,384], index: 2, kind: input, shape index: {}]   ;;  %s826_s3 = inlined_call_operand.vmem [shape: f32[8,128], index: 3, kind: output, shape index: {}]  }
   0x1   :  { %s690_s14 = smov 0  }
   0x2 LB: > { %s22_s15 = sadd.s32 1, %s657_s13  ;;  %p540_p0 = scmp.ge.s32.totalorder %s661_s14, 1  ;;  %s661_s14 = sphi %s690_s14, %s13_s14   ;;  %s657_s13 = sphi %s688_s13, %s828_s13   ;;  %s653_s12 = sphi %s686_s12, %s827_s12  }
   0x3   : > { %p23_p1 = scmp.ge.s32.totalorder %s22_s15, 8  ;;  %p155_p2 = scmp.lt.s32.totalorder %s661_s14, 9 }
   0x5   : > { %s830_s15 = smov (%p23_p1, %s22_s15), 0  ;;  %p156_p3 = pnand %p540_p0, %p155_p2 }
   0x6   : > { %p182_p4 = scmp.lt.s32.totalorder (!%p156_p3), %s653_s12, 7  ;;  %p542_p5 = scmp.ne.s32.totalorder (!%p156_p3), %s653_s12, 0 }
   0x7   : > { %159 = sbr.rel (%p156_p3) target bundleno = 308 (0x134), region = 32 }
   0xc   : > { %s183_s16 = scalar_select %p182_p4, %s653_s12, 7 }
   0xd   : > { %198 = sbr.rel (%p542_p5) target bundleno = 20 (0x14), region = 36 }
   0xe   : > { %s601_s17 = smul.u32 24, %s183_s16 }
  0x10   : > { %s711_s20 = scalar_lea.vmem %s823_s0, %s601_s17 }
  0x12   : > { %v663_v0 = vmov 0.0  }
  0x13   : > { %199 = vst [vmem:[#allocation2] sm:$0xff] %v663_v0 }
  0x14 PF: > { %v234_v1 = vld [vmem:[%s824_s1 + $0xb4] sm:$0xff]  ;;  %v232_v2 = vld [vmem:[%s824_s1 + $0xa8] sm:$0xff]  ;;  %v230_v3 = vld [vmem:[%s824_s1 + $0x9c] sm:$0xff]  ;;  %v664_v7 = vmov 0.0   ;;  %vm665_vm0 = vmmov 0   ;;  %p545_p6 = scmp.ne.s32.totalorder %s653_s12, 7 }
  0x15   : > { %v282_v4 = vunpack.c.h.bf16 %v234_v1  ;;  %v281_v5 = vunpack.c.l.bf16 %v234_v1  ;;  %v279_v6 = vunpack.c.h.bf16 %v232_v2  ;;  %365 = vmatprep.mubr.f32.mxu0 %v664_v7  ;;  %566 = vmatprep.subr.mxu1 %v664_v7  ;;  %v278_v8 = vunpack.c.l.bf16 %v232_v2  ;;  %v228_v9 = vld [vmem:[%s824_s1 + $0x90] sm:$0xff]  ;;  %v226_v12 = vld [vmem:[%s824_s1 + $0x84] sm:$0xff]  ;;  %v224_v15 = vld [vmem:[%s824_s1 + $0x78] sm:$0xff] }
  0x16   : > { %598 = vmatprep.mubr.msk.f32.mxu1 %vm665_vm0, %v664_v7  ;;  %v276_v10 = vunpack.c.h.bf16 %v230_v3  ;;  %v275_v11 = vunpack.c.l.bf16 %v230_v3  ;;  %v273_v13 = vunpack.c.h.bf16 %v228_v9  ;;  %v272_v14 = vunpack.c.l.bf16 %v228_v9  ;;  %v235_v16 = vld [vmem:[%s824_s1 + $0xb0] ss:$12 sps:$4 sm:$0xff]   ;;  %v231_v20 = vld [vmem:[%s824_s1 + $0x98] ss:$12 sps:$4 sm:$0xff]   ;;  %v227_v30 = vld [vmem:[%s824_s1 + $0x80] ss:$12 sps:$4 sm:$0xff]  }
  0x17   : > { %301 = vmatprep.subr.mxu0 %v282_v4  ;;  %v270_v17 = vunpack.c.h.bf16 %v226_v12  ;;  %v269_v18 = vunpack.c.l.bf16 %v226_v12  ;;  %v222_v19 = vld [vmem:[%s824_s1 + $0x6c] sm:$0xff]  ;;  %v267_v21 = vunpack.c.h.bf16 %v224_v15  ;;  %v283_v22 = vunpack.c.h.bf16 %v235_v16  ;;  %v220_v25 = vld [vmem:[%s824_s1 + $0x60] sm:$0xff]  ;;  %v218_v29 = vld [vmem:[%s824_s1 + $0x54] sm:$0xff] }
  0x18   : > { %302 = vmatpush1.msra.mxu0 %v281_v5  ;;  %v280_v23 = vunpack.c.l.bf16 %v235_v16  ;;  %v266_v24 = vunpack.c.l.bf16 %v224_v15  ;;  %v264_v26 = vunpack.c.h.bf16 %v222_v19  ;;  %v277_v27 = vunpack.c.h.bf16 %v231_v20  ;;  %v216_v34 = vld [vmem:[%s824_s1 + $0x48] sm:$0xff]  ;;  %v214_v38 = vld [vmem:[%s824_s1 + $0x3c] sm:$0xff]  ;;  %v212_v43 = vld [vmem:[%s824_s1 + $0x30] sm:$0xff] }
  0x19   : > { %303 = vmatprep.subr.mxu0 %v279_v6  ;;  %567 = vmatpush3.msra.mxu1 %v283_v22  ;;  %v263_v28 = vunpack.c.l.bf16 %v222_v19  ;;  %v261_v31 = vunpack.c.h.bf16 %v220_v25  ;;  %v274_v32 = vunpack.c.l.bf16 %v231_v20  ;;  %v260_v33 = vunpack.c.l.bf16 %v220_v25  ;;  %v223_v39 = vld [vmem:[%s824_s1 + $0x68] ss:$12 sps:$4 sm:$0xff]   ;;  %v219_v48 = vld [vmem:[%s824_s1 + $0x50] ss:$12 sps:$4 sm:$0xff]   ;;  %v215_v57 = vld [vmem:[%s824_s1 + $0x38] ss:$12 sps:$4 sm:$0xff]  }
  0x1a   : > { %304 = vmatpush1.msra.mxu0 %v278_v8  ;;  %568 = vmatprep.subr.mxu1 %v664_v7  ;;  %v258_v35 = vunpack.c.h.bf16 %v218_v29  ;;  %v271_v36 = vunpack.c.h.bf16 %v227_v30  ;;  %v257_v37 = vunpack.c.l.bf16 %v218_v29  ;;  %v255_v40 = vunpack.c.h.bf16 %v216_v34  ;;  %v210_v47 = vld [vmem:[%s824_s1 + $0x24] sm:$0xff]  ;;  %v208_v52 = vld [vmem:[%s824_s1 + $0x18] sm:$0xff]  ;;  %v206_v56 = vld [vmem:[%s824_s1 + $0xc] sm:$0xff] }
  0x1b   : > { %305 = vmatprep.subr.mxu0 %v276_v10  ;;  %569 = vmatpush3.msra.mxu1 %v280_v23  ;;  %v268_v41 = vunpack.c.l.bf16 %v227_v30  ;;  %v254_v42 = vunpack.c.l.bf16 %v216_v34  ;;  %v252_v44 = vunpack.c.h.bf16 %v214_v38  ;;  %v265_v45 = vunpack.c.h.bf16 %v223_v39  ;;  %v204_v61 = vld [vmem:[%s824_s1] sm:$0xff]  ;;  %v207_v8 = vld [vmem:[%s824_s1 + $0x8] ss:$12 sps:$4 sm:$0xff]  }
  0x1c   : > { %306 = vmatpush1.msra.mxu0 %v275_v11  ;;  %570 = vmatprep.subr.mxu1 %v664_v7  ;;  %v251_v46 = vunpack.c.l.bf16 %v214_v38  ;;  %v249_v49 = vunpack.c.h.bf16 %v212_v43  ;;  %v262_v50 = vunpack.c.l.bf16 %v223_v39  ;;  %v248_v51 = vunpack.c.l.bf16 %v212_v43  ;;  %v211_v1 = vld [vmem:[%s824_s1 + $0x20] ss:$12 sps:$4 sm:$0xff]   ;;  %v202_v38 = vld [vmem:[%s711_s20 + $0x10] sm:$0xff] }
  0x1d   : > { %307 = vmatprep.subr.mxu0 %v273_v13  ;;  %571 = vmatpush3.msra.mxu1 %v277_v27  ;;  %v246_v53 = vunpack.c.h.bf16 %v210_v47  ;;  %v259_v54 = vunpack.c.h.bf16 %v219_v48  ;;  %v245_v55 = vunpack.c.l.bf16 %v210_v47  ;;  %v243_v58 = vunpack.c.h.bf16 %v208_v52  ;;  %v203_v6 = vld [vmem:[#allocation2] sm:$0xff]  ;;  %v201_v25 = vld [vmem:[%s711_s20 + $0x8] sm:$0xff] }
  0x1e   : > { %308 = vmatpush1.msra.mxu0 %v272_v14  ;;  %572 = vmatprep.subr.mxu1 %v664_v7  ;;  %v256_v59 = vunpack.c.l.bf16 %v219_v48  ;;  %v242_v60 = vunpack.c.l.bf16 %v208_v52  ;;  %v240_v62 = vunpack.c.h.bf16 %v206_v56  ;;  %v253_v63 = vunpack.c.h.bf16 %v215_v57  ;;  %v284_v15 = vld [vmem:[%s825_s2] sm:$0x7] }
  0x1f   : > { %309 = vmatprep.subr.mxu0 %v270_v17  ;;  %573 = vmatpush3.msra.mxu1 %v274_v32  ;;  %v239_v0 = vunpack.c.l.bf16 %v206_v56  ;;  %v237_v2 = vunpack.c.h.bf16 %v204_v61  ;;  %v250_v3 = vunpack.c.l.bf16 %v215_v57  ;;  %v236_v4 = vunpack.c.l.bf16 %v204_v61 }
  0x20   : > { %310 = vmatpush1.msra.mxu0 %v269_v18  ;;  %574 = vmatprep.subr.mxu1 %v664_v7  ;;  %v247_v5 = vunpack.c.h.bf16 %v211_v1  ;;  %v244_v9 = vunpack.c.l.bf16 %v211_v1  ;;  %v241_v10 = vunpack.c.h.bf16 %v207_v8  ;;  %v238_v11 = vunpack.c.l.bf16 %v207_v8  ;;  %v200_v18 = vld [vmem:[%s711_s20] sm:$0xff] }
  0x21   : > { %311 = vmatprep.subr.mxu0 %v267_v21  ;;  %575 = vmatpush3.msra.mxu1 %v271_v36  ;;  %v286_v12 = vlaneseq }
  0x22   : > { %312 = vmatpush1.msra.mxu0 %v266_v24  ;;  %576 = vmatprep.subr.mxu1 %v664_v7 }
  0x23   : > { %313 = vmatprep.subr.mxu0 %v264_v26  ;;  %577 = vmatpush3.msra.mxu1 %v268_v41  ;;  %v287_v13 = vshrl.u32 %v286_v12, 7 }
  0x24   : > { %314 = vmatpush1.msra.mxu0 %v263_v28  ;;  %578 = vmatprep.subr.mxu1 %v664_v7 }
  0x25   : > { %315 = vmatprep.subr.mxu0 %v261_v31  ;;  %579 = vmatpush3.msra.mxu1 %v265_v45  ;;  %v288_v14 = vsub.s32 0, %v287_v13  ;;  %v292_v17 = vsub.s32 1, %v287_v13  ;;  %v296_v32 = vsub.s32 2, %v287_v13 }
  0x26   : > { %316 = vmatpush1.msra.mxu0 %v260_v33  ;;  %580 = vmatprep.subr.mxu1 %v664_v7 }
  0x27   : > { %317 = vmatprep.subr.mxu0 %v258_v35  ;;  %581 = vmatpush3.msra.mxu1 %v262_v50  ;;  %v289_v16 = vrot.slane %v284_v15, %v288_v14  ;;  %v293_v21 = vrot.slane %v284_v15, %v292_v17  ;;  %v297_v33 = vrot.slane %v284_v15, %v296_v32 }
  0x28   : > { %318 = vmatpush1.msra.mxu0 %v257_v37  ;;  %582 = vmatprep.subr.mxu1 %v664_v7 }
  0x29   : > { %319 = vmatprep.subr.mxu0 %v255_v40  ;;  %583 = vmatpush3.msra.mxu1 %v259_v54 }
  0x2a   : > { %320 = vmatpush1.msra.mxu0 %v254_v42  ;;  %584 = vmatprep.subr.mxu1 %v664_v7 }
  0x2b   : > { %321 = vmatprep.subr.mxu0 %v252_v44  ;;  %585 = vmatpush3.msra.mxu1 %v256_v59 }
  0x2c   : > { %322 = vmatpush1.msra.mxu0 %v251_v46  ;;  %586 = vmatprep.subr.mxu1 %v664_v7 }
  0x2d   : > { %323 = vmatprep.subr.mxu0 %v249_v49  ;;  %587 = vmatpush3.msra.mxu1 %v253_v63 }
  0x2e   : > { %324 = vmatpush1.msra.mxu0 %v248_v51  ;;  %588 = vmatprep.subr.mxu1 %v664_v7 }
  0x2f   : > { %325 = vmatprep.subr.mxu0 %v246_v53  ;;  %589 = vmatpush3.msra.mxu1 %v250_v3 }
  0x30   : > { %326 = vmatpush1.msra.mxu0 %v245_v55  ;;  %590 = vmatprep.subr.mxu1 %v664_v7 }
  0x31   : > { %327 = vmatprep.subr.mxu0 %v243_v58  ;;  %591 = vmatpush3.msra.mxu1 %v247_v5 }
  0x32   : > { %328 = vmatpush1.msra.mxu0 %v242_v60  ;;  %592 = vmatprep.subr.mxu1 %v664_v7 }
  0x33   : > { %329 = vmatprep.subr.mxu0 %v240_v62  ;;  %593 = vmatpush3.msra.mxu1 %v244_v9 }
  0x34   : > { %330 = vmatpush1.msra.mxu0 %v239_v0  ;;  %594 = vmatprep.subr.mxu1 %v664_v7 }
  0x35   : > { %331 = vmatprep.subr.mxu0 %v237_v2  ;;  %595 = vmatpush3.msra.mxu1 %v241_v10 }
  0x36   : > { %332 = vmatpush1.msra.mxu0 %v236_v4  ;;  %596 = vmatprep.subr.mxu1 %v664_v7 }
  0x37   : > { %366 = vmatmul.mubr.f32.vlgmr.msra.gmra.mxu0 %v203_v6  ;;  %597 = vmatpush3.msra.mxu1 %v238_v11 }
  0x38   : > { %599 = vmatmul.mubr.f32.vlgmr.msra.gmra.mxu1 %v203_v6 }
  0xf7   : > { %v367_v19 = vpop.f32.mrf.mxu0 }
  0xf8   : > { %v368_v20 = vadd.f32 %v367_v19, %v289_v16  ;;  %v438_v26 = vpop.f32.mrf.mxu1 }
  0xf9   : > { %v369_v22 = vpop.f32.mrf.mxu0  ;;  %v439_v36 = vadd.f32 %v438_v26, %v297_v33 }
  0xfa   : > { %v442_v23 = vadd.f32 %v368_v20, %v200_v18  ;;  %v370_v7 = vadd.f32 %v369_v22, %v293_v21  ;;  %v600_v28 = vpop.f32.mrf.mxu1 }
  0xfc   : > { %v543_v24 = vmul.f32 -1.442695, %v442_v23  ;;  %v449_v27 = vadd.f32 %v370_v7, %v201_v25 }
  0xfe   : > { %629 = vpow2.f32 %v543_v24  ;;  %v544_v29 = vmul.f32 -1.442695, %v449_v27 }
 0x100   : > { %631 = vpow2.f32 %v544_v29 }
 0x10b   : > { %v630_v30 = vpop.eup %629 }
 0x10c   : > { %v446_v31 = vadd.f32 1.0, %v630_v30 }
 0x10d   : > { %v632_v34 = vpop.eup %631 }
 0x10e   : > { %633 = vrcp.f32 %v446_v31  ;;  %v453_v35 = vadd.f32 1.0, %v632_v34 }
 0x110   : > { %635 = vrcp.f32 %v453_v35 }
 0x11b   : > { %v634_v37 = vpop.eup %633 }
 0x11c   : > { %v456_v39 = vmul.f32 %v634_v37, %v439_v36 }
 0x11d   : > { %v636_v41 = vpop.eup %635 }
 0x11e   : > { %v457_v40 = vadd.f32 %v456_v39, %v202_v38  ;;  %v459_v42 = vsub.f32 1.0, %v636_v41  ;;  %v461_v44 = vmul.f32 %v636_v41, %v203_v6 }
 0x120   : > { %637 = vtanh.f32 %v457_v40 }
 0x12d   : > { %v638_v43 = vpop.eup %637 }
 0x12e   : > { %v460_v45 = vmul.f32 %v638_v43, %v459_v42  ;;  %467 = sbr.rel (%p545_p6) target bundleno = 308 (0x134), region = 40 }
 0x130   : > { %v462_v46 = vadd.f32 %v461_v44, %v460_v45 }
 0x132   : > { %463 = vst [vmem:[#allocation2] sm:$0xff] %v462_v46 }
 0x133   : > { %468 = vst [vmem:[%s826_s3] sm:$0xff] %v462_v46 }
 0x134 PF: > { %s13_s14 = sadd.s32 1, %s661_s14   ;;  %s827_s12 = smov %s657_s13 }
 0x135   : > { %p10_p7 = scmp.ge.s32.totalorder %s13_s14, 10   ;;  %s828_s13 = smov %s830_s15 }
 0x137   :  { %12 = sbr.rel (!%p10_p7) target bundleno = 2 (0x2), region = 70 }

// kernel: vqae_forward.7
= control target key start
LH: loop header
LB: loop body
LE: loop exit
PB: predicated region body
PF: predicated region fallthrough
CT: control target
= control target key end

     0   :  { %v434_v3 = vmov 0.0   ;;  %s657_s1 = inlined_call_operand.vmem [shape: bf16[128,384], index: 1, kind: input, shape index: {}]   ;;  %s658_s0 = inlined_call_operand.vmem [shape: f32[64,128], index: 0, kind: input, shape index: {}]   ;;  %s659_s2 = inlined_call_operand.vmem [shape: f32[1,384], index: 2, kind: input, shape index: {}]   ;;  %s660_s3 = inlined_call_operand.vmem [shape: f32[64,384], index: 3, kind: output, shape index: {}]  }
   0x1   :  { %v52_v0 = vld [vmem:[%s657_s1 + $0xb4] sm:$0xff]  ;;  %v50_v1 = vld [vmem:[%s657_s1 + $0xa8] sm:$0xff]  ;;  %v48_v2 = vld [vmem:[%s657_s1 + $0x9c] sm:$0xff]  ;;  %183 = vmatprep.mubr.f32.mxu0 %v434_v3 }
   0x2   :  { %v100_v4 = vunpack.c.h.bf16 %v52_v0  ;;  %v99_v5 = vunpack.c.l.bf16 %v52_v0  ;;  %v97_v6 = vunpack.c.h.bf16 %v50_v1  ;;  %v96_v7 = vunpack.c.l.bf16 %v50_v1  ;;  %v46_v8 = vld [vmem:[%s657_s1 + $0x90] sm:$0xff]  ;;  %v49_v11 = vld [vmem:[%s657_s1 + $0x98] ss:$12 sps:$4 sm:$0xff]   ;;  %v45_v21 = vld [vmem:[%s657_s1 + $0x80] ss:$12 sps:$4 sm:$0xff]  }
   0x3   :  { %v53_v9 = vld [vmem:[%s657_s1 + $0xb0] ss:$12 sps:$4 sm:$0xff]   ;;  %v94_v10 = vunpack.c.h.bf16 %v48_v2  ;;  %v93_v12 = vunpack.c.l.bf16 %v48_v2  ;;  %v44_v13 = vld [vmem:[%s657_s1 + $0x84] sm:$0xff]  ;;  %v91_v15 = vunpack.c.h.bf16 %v46_v8  ;;  %v90_v17 = vunpack.c.l.bf16 %v46_v8  ;;  %v36_v32 = vld [vmem:[%s657_s1 + $0x54] sm:$0xff] }
   0x4   :  { %119 = vmatprep.subr.mxu0 %v100_v4  ;;  %v101_v14 = vunpack.c.h.bf16 %v53_v9  ;;  %v98_v16 = vunpack.c.l.bf16 %v53_v9  ;;  %v42_v18 = vld [vmem:[%s657_s1 + $0x78] sm:$0xff]  ;;  %v95_v19 = vunpack.c.h.bf16 %v49_v11  ;;  %v88_v20 = vunpack.c.h.bf16 %v44_v13  ;;  %v40_v23 = vld [vmem:[%s657_s1 + $0x6c] sm:$0xff]  ;;  %v38_v27 = vld [vmem:[%s657_s1 + $0x60] sm:$0xff] }
   0x5   :  { %120 = vmatpush1.msra.mxu0 %v99_v5  ;;  %v87_v22 = vunpack.c.l.bf16 %v44_v13  ;;  %v92_v24 = vunpack.c.l.bf16 %v49_v11  ;;  %v85_v25 = vunpack.c.h.bf16 %v42_v18  ;;  %v84_v26 = vunpack.c.l.bf16 %v42_v18  ;;  %v41_v30 = vld [vmem:[%s657_s1 + $0x68] ss:$12 sps:$4 sm:$0xff]   ;;  %v37_v39 = vld [vmem:[%s657_s1 + $0x5c] sm:$0xf]  ;;  %v35_v44 = vld [vmem:[%s657_s1 + $0x44] ss:$12 sps:$4 sm:$0xff]  }
   0x6   :  { %121 = vmatprep.subr.mxu0 %v97_v6  ;;  %389 = vmatprep.subr.mxu1 %v101_v14  ;;  %v89_v28 = vunpack.c.h.bf16 %v45_v21  ;;  %v82_v29 = vunpack.c.h.bf16 %v40_v23  ;;  %v81_v31 = vunpack.c.l.bf16 %v40_v23  ;;  %v86_v33 = vunpack.c.l.bf16 %v45_v21  ;;  %v34_v36 = vld [vmem:[%s657_s1 + $0x48] sm:$0xff]  ;;  %v32_v41 = vld [vmem:[%s657_s1 + $0x3c] sm:$0xff]  ;;  %v30_v46 = vld [vmem:[%s657_s1 + $0x30] sm:$0xff] }
   0x7   :  { %122 = vmatpush1.msra.mxu0 %v96_v7  ;;  %390 = vmatpush3.msra.mxu1 %v101_v14  ;;  %v79_v34 = vunpack.c.h.bf16 %v38_v27  ;;  %v78_v35 = vunpack.c.l.bf16 %v38_v27  ;;  %v83_v37 = vunpack.c.h.bf16 %v41_v30  ;;  %v76_v38 = vunpack.c.h.bf16 %v36_v32  ;;  %v28_v50 = vld [vmem:[%s657_s1 + $0x24] sm:$0xff]  ;;  %v31_v53 = vld [vmem:[%s657_s1 + $0x2c] ss:$12 sps:$4 sm:$0xff]   ;;  %v27_v62 = vld [vmem:[%s657_s1 + $0x14] ss:$12 sps:$4 sm:$0xff]  }
   0x8   :  { %123 = vmatprep.subr.mxu0 %v94_v10  ;;  %391 = vmatprep.subr.mxu1 %v98_v16  ;;  %v75_v40 = vunpack.c.l.bf16 %v36_v32  ;;  %v80_v42 = vunpack.c.l.bf16 %v41_v30  ;;  %v73_v43 = vunpack.c.h.bf16 %v34_v36  ;;  %v72_v45 = vunpack.c.l.bf16 %v34_v36  ;;  %v26_v55 = vld [vmem:[%s657_s1 + $0x18] sm:$0xff]  ;;  %v24_v59 = vld [vmem:[%s657_s1 + $0xc] sm:$0xff]  ;;  %v22_v0 = vld [vmem:[%s657_s1] sm:$0xff] }
   0x9   :  { %124 = vmatpush1.msra.mxu0 %v93_v12  ;;  %392 = vmatpush3.msra.mxu1 %v98_v16  ;;  %v77_v47 = vunpack.c.l.bf16 %v37_v39  ;;  %v70_v48 = vunpack.c.h.bf16 %v32_v41  ;;  %v69_v49 = vunpack.c.l.bf16 %v32_v41  ;;  %v74_v51 = vunpack.c.h.bf16 %v35_v44  ;;  %v23_v7 = vld [vmem:[%s657_s1 + $0x8] sm:$0xf]  ;;  %v14_v10 = vld [vmem:[%s658_s0] sm:$0xff]  ;;  %v16_v13 = vld [vmem:[%s658_s0 + $0x10] sm:$0xff] }
   0xa   :  { %125 = vmatprep.subr.mxu0 %v91_v15  ;;  %393 = vmatprep.subr.mxu1 %v95_v19  ;;  %v67_v52 = vunpack.c.h.bf16 %v30_v46  ;;  %v66_v54 = vunpack.c.l.bf16 %v30_v46  ;;  %v71_v56 = vunpack.c.l.bf16 %v35_v44  ;;  %v64_v57 = vunpack.c.h.bf16 %v28_v50  ;;  %v15_v12 = vld [vmem:[%s658_s0 + $0x8] sm:$0xff]  ;;  %v17_v14 = vld [vmem:[%s658_s0 + $0x18] sm:$0xff]  ;;  %v18_v15 = vld [vmem:[%s658_s0 + $0x20] sm:$0xff] }
   0xb   :  { %126 = vmatpush1.msra.mxu0 %v90_v17  ;;  %394 = vmatpush3.msra.mxu1 %v95_v19  ;;  %v63_v58 = vunpack.c.l.bf16 %v28_v50  ;;  %v68_v60 = vunpack.c.h.bf16 %v31_v53  ;;  %v61_v61 = vunpack.c.h.bf16 %v26_v55  ;;  %v60_v63 = vunpack.c.l.bf16 %v26_v55  ;;  %v20_v16 = vld [vmem:[%s658_s0 + $0x30] sm:$0xff]  ;;  %v19_v17 = vld [vmem:[%s658_s0 + $0x28] sm:$0xff]  ;;  %v21_v18 = vld [vmem:[%s658_s0 + $0x38] sm:$0xff] }
   0xc   :  { %127 = vmatprep.subr.mxu0 %v88_v20  ;;  %395 = vmatprep.subr.mxu1 %v92_v24  ;;  %v65_v1 = vunpack.c.l.bf16 %v31_v53  ;;  %v58_v2 = vunpack.c.h.bf16 %v24_v59  ;;  %v57_v4 = vunpack.c.l.bf16 %v24_v59  ;;  %v62_v5 = vunpack.c.h.bf16 %v27_v62 }
   0xd   :  { %128 = vmatpush1.msra.mxu0 %v87_v22  ;;  %396 = vmatpush3.msra.mxu1 %v92_v24  ;;  %v55_v6 = vunpack.c.h.bf16 %v22_v0  ;;  %v54_v8 = vunpack.c.l.bf16 %v22_v0  ;;  %v59_v9 = vunpack.c.l.bf16 %v27_v62  ;;  %v56_v11 = vunpack.c.l.bf16 %v23_v7  ;;  %v102_v22 = vld [vmem:[%s659_s2] sm:$0x7] }
   0xe   :  { %129 = vmatprep.subr.mxu0 %v85_v25  ;;  %397 = vmatprep.subr.mxu1 %v89_v28  ;;  %v104_v19 = vlaneseq }
   0xf   :  { %130 = vmatpush1.msra.mxu0 %v84_v26  ;;  %398 = vmatpush3.msra.mxu1 %v89_v28 }
  0x10   :  { %131 = vmatprep.subr.mxu0 %v82_v29  ;;  %399 = vmatprep.subr.mxu1 %v86_v33  ;;  %v105_v20 = vshrl.u32 %v104_v19, 7 }
  0x11   :  { %132 = vmatpush1.msra.mxu0 %v81_v31  ;;  %400 = vmatpush3.msra.mxu1 %v86_v33 }
  0x12   :  { %133 = vmatprep.subr.mxu0 %v79_v34  ;;  %401 = vmatprep.subr.mxu1 %v83_v37  ;;  %v106_v21 = vsub.s32 0, %v105_v20  ;;  %v110_v23 = vsub.s32 1, %v105_v20  ;;  %v114_v24 = vsub.s32 2, %v105_v20 }
  0x13   :  { %134 = vmatpush1.msra.mxu0 %v78_v35  ;;  %402 = vmatpush3.msra.mxu1 %v83_v37 }
  0x14   :  { %135 = vmatprep.subr.mxu0 %v76_v38  ;;  %403 = vmatprep.subr.mxu1 %v80_v42  ;;  %v565_v25 = vrot.slane %v102_v22, %v106_v21  ;;  %v567_v26 = vrot.slane %v102_v22, %v110_v23  ;;  %v115_v28 = vrot.slane %v102_v22, %v114_v24 }
  0x15   :  { %136 = vmatpush1.msra.mxu0 %v75_v40  ;;  %404 = vmatpush3.msra.mxu1 %v80_v42 }
  0x16   :  { %137 = vmatprep.subr.mxu0 %v73_v43  ;;  %405 = vmatprep.subr.mxu1 %v77_v47 }
  0x17   :  { %138 = vmatpush1.msra.mxu0 %v72_v45  ;;  %406 = vmatpush3.msra.mxu1 %v77_v47 }
  0x18   :  { %139 = vmatprep.subr.mxu0 %v70_v48  ;;  %407 = vmatprep.subr.mxu1 %v74_v51 }
  0x19   :  { %140 = vmatpush1.msra.mxu0 %v69_v49  ;;  %408 = vmatpush3.msra.mxu1 %v74_v51 }
  0x1a   :  { %141 = vmatprep.subr.mxu0 %v67_v52  ;;  %409 = vmatprep.subr.mxu1 %v71_v56 }
  0x1b   :  { %142 = vmatpush1.msra.mxu0 %v66_v54  ;;  %410 = vmatpush3.msra.mxu1 %v71_v56 }
  0x1c   :  { %143 = vmatprep.subr.mxu0 %v64_v57  ;;  %411 = vmatprep.subr.mxu1 %v68_v60 }
  0x1d   :  { %144 = vmatpush1.msra.mxu0 %v63_v58  ;;  %412 = vmatpush3.msra.mxu1 %v68_v60 }
  0x1e   :  { %145 = vmatprep.subr.mxu0 %v61_v61  ;;  %413 = vmatprep.subr.mxu1 %v65_v1 }
  0x1f   :  { %146 = vmatpush1.msra.mxu0 %v60_v63  ;;  %414 = vmatpush3.msra.mxu1 %v65_v1 }
  0x20   :  { %147 = vmatprep.subr.mxu0 %v58_v2  ;;  %415 = vmatprep.subr.mxu1 %v62_v5 }
  0x21   :  { %148 = vmatpush1.msra.mxu0 %v57_v4  ;;  %416 = vmatpush3.msra.mxu1 %v62_v5 }
  0x22   :  { %149 = vmatprep.subr.mxu0 %v55_v6  ;;  %417 = vmatprep.subr.mxu1 %v59_v9 }
  0x23   :  { %150 = vmatpush1.msra.mxu0 %v54_v8  ;;  %418 = vmatpush3.msra.mxu1 %v59_v9 }
  0x24   :  { %184 = vmatmul.mubr.f32.vlgmr.msra.gmra.mxu0 %v14_v10  ;;  %419 = vmatprep.subr.mxu1 %v56_v11 }
  0x25   :  { %189 = vmatprep.mubr.f32.mxu0 %v434_v3  ;;  %420 = vmatpush3.msra.mxu1 %v56_v11 }
  0x26   :  { %421 = vmatprep.mubr.f32.mxu1 %v14_v10 }
  0x27   :  { %422 = vmatmul.mubr.f32.vlgmr.msra.gmra.mxu1 %v15_v12 }
  0x28   :  { %190 = vmatmul.mubr.f32.gmra.mxu0 %v15_v12  ;;  %424 = vmatprep.mubr.f32.mxu1 %v16_v13 }
  0x29   :  { %195 = vmatprep.mubr.f32.mxu0 %v434_v3 }
  0x2b   :  { %425 = vmatmul.mubr.f32.gmra.mxu1 %v17_v14 }
  0x2c   :  { %196 = vmatmul.mubr.f32.gmra.mxu0 %v16_v13  ;;  %427 = vmatprep.mubr.f32.mxu1 %v18_v15 }
  0x2d   :  { %201 = vmatprep.mubr.f32.mxu0 %v434_v3 }
  0x2f   :  { %428 = vmatmul.mubr.f32.gmra.mxu1 %v19_v17 }
  0x30   :  { %202 = vmatmul.mubr.f32.gmra.mxu0 %v17_v14  ;;  %430 = vmatprep.mubr.f32.mxu1 %v20_v16 }
  0x31   :  { %207 = vmatprep.mubr.f32.mxu0 %v434_v3 }
  0x33   :  { %431 = vmatmul.mubr.f32.gmra.mxu1 %v21_v18 }
  0x34   :  { %208 = vmatmul.mubr.f32.gmra.mxu0 %v18_v15 }
  0x35   :  { %213 = vmatprep.mubr.f32.mxu0 %v434_v3 }
  0x38   :  { %214 = vmatmul.mubr.f32.gmra.mxu0 %v19_v17 }
  0x39   :  { %219 = vmatprep.mubr.f32.mxu0 %v434_v3 }
  0x3c   :  { %220 = vmatmul.mubr.f32.gmra.mxu0 %v20_v16 }
  0x3d   :  { %225 = vmatprep.mubr.f32.mxu0 %v434_v3 }
  0x40   :  { %226 = vmatmul.mubr.f32.gmra.mxu0 %v21_v18 }
  0xe4   :  { %v185_v27 = vpop.f32.mrf.mxu0 }
  0xe5   :  { %v186_v29 = vadd.f32 %v185_v27, %v565_v25 }
  0xe6   :  { %v187_v30 = vpop.f32.mrf.mxu0 }
  0xe7   :  { %337 = vst [vmem:[%s660_s3] sm:$0xff] %v186_v29  ;;  %v188_v3 = vadd.f32 %v187_v30, %v567_v26  ;;  %v423_v31 = vpop.f32.mrf.mxu1 }
  0xe8   :  { %v191_v32 = vpop.f32.mrf.mxu0  ;;  %v304_v33 = vadd.f32 %v423_v31, %v115_v28 }
  0xe9   :  { %338 = vst [vmem:[%s660_s3 + $0x8] sm:$0xff] %v188_v3  ;;  %v192_v34 = vadd.f32 %v191_v32, %v565_v25  ;;  %v298_v35 = vpop.f32.mrf.mxu1 }
  0xea   :  { %v193_v36 = vpop.f32.mrf.mxu0  ;;  %342 = vst [vmem:[%s660_s3 + $0x28] sm:$0xff] %v304_v33  ;;  %v299_v37 = vadd.f32 %v298_v35, %v115_v28 }
  0xeb   :  { %340 = vst [vmem:[%s660_s3 + $0x18] sm:$0xff] %v192_v34  ;;  %v194_v38 = vadd.f32 %v193_v36, %v567_v26  ;;  %v426_v39 = vpop.f32.mrf.mxu1 }
  0xec   :  { %v197_v40 = vpop.f32.mrf.mxu0  ;;  %339 = vst [vmem:[%s660_s3 + $0x10] sm:$0xff] %v299_v37  ;;  %v314_v41 = vadd.f32 %v426_v39, %v115_v28 }
  0xed   :  { %341 = vst [vmem:[%s660_s3 + $0x20] sm:$0xff] %v194_v38  ;;  %v198_v42 = vadd.f32 %v197_v40, %v565_v25  ;;  %v308_v43 = vpop.f32.mrf.mxu1 }
  0xee   :  { %v199_v44 = vpop.f32.mrf.mxu0  ;;  %348 = vst [vmem:[%s660_s3 + $0x58] sm:$0xff] %v314_v41  ;;  %v309_v45 = vadd.f32 %v308_v43, %v115_v28 }
  0xef   :  { %343 = vst [vmem:[%s660_s3 + $0x30] sm:$0xff] %v198_v42  ;;  %v200_v46 = vadd.f32 %v199_v44, %v567_v26  ;;  %v429_v47 = vpop.f32.mrf.mxu1 }
  0xf0   :  { %v203_v48 = vpop.f32.mrf.mxu0  ;;  %345 = vst [vmem:[%s660_s3 + $0x40] sm:$0xff] %v309_v45  ;;  %v324_v49 = vadd.f32 %v429_v47, %v115_v28 }
  0xf1   :  { %344 = vst [vmem:[%s660_s3 + $0x38] sm:$0xff] %v200_v46  ;;  %v204_v50 = vadd.f32 %v203_v48, %v565_v25  ;;  %v318_v51 = vpop.f32.mrf.mxu1 }
  0xf2   :  { %v205_v52 = vpop.f32.mrf.mxu0  ;;  %354 = vst [vmem:[%s660_s3 + $0x88] sm:$0xff] %v324_v49  ;;  %v319_v53 = vadd.f32 %v318_v51, %v115_v28 }
  0xf3   :  { %346 = vst [vmem:[%s660_s3 + $0x48] sm:$0xff] %v204_v50  ;;  %v206_v54 = vadd.f32 %v205_v52, %v567_v26  ;;  %v432_v55 = vpop.f32.mrf.mxu1 }
  0xf4   :  { %v209_v56 = vpop.f32.mrf.mxu0  ;;  %351 = vst [vmem:[%s660_s3 + $0x70] sm:$0xff] %v319_v53  ;;  %v334_v57 = vadd.f32 %v432_v55, %v115_v28 }
  0xf5   :  { %347 = vst [vmem:[%s660_s3 + $0x50] sm:$0xff] %v206_v54  ;;  %v210_v58 = vadd.f32 %v209_v56, %v565_v25  ;;  %v328_v59 = vpop.f32.mrf.mxu1 }
  0xf6   :  { %v211_v60 = vpop.f32.mrf.mxu0  ;;  %360 = vst [vmem:[%s660_s3 + $0xb8] sm:$0xff] %v334_v57  ;;  %v329_v61 = vadd.f32 %v328_v59, %v115_v28 }
  0xf7   :  { %349 = vst [vmem:[%s660_s3 + $0x60] sm:$0xff] %v210_v58  ;;  %v212_v62 = vadd.f32 %v211_v60, %v567_v26 }
  0xf8   :  { %v215_v63 = vpop.f32.mrf.mxu0  ;;  %357 = vst [vmem:[%s660_s3 + $0xa0] sm:$0xff] %v329_v61 }
  0xf9   :  { %350 = vst [vmem:[%s660_s3 + $0x68] sm:$0xff] %v212_v62  ;;  %v216_v0 = vadd.f32 %v215_v63, %v565_v25 }
  0xfa   :  { %v217_v1 = vpop.f32.mrf.mxu0 }
  0xfb   :  { %352 = vst [vmem:[%s660_s3 + $0x78] sm:$0xff] %v216_v0  ;;  %v218_v2 = vadd.f32 %v217_v1, %v567_v26 }
  0xfc   :  { %v221_v4 = vpop.f32.mrf.mxu0 }
  0xfd   :  { %353 = vst [vmem:[%s660_s3 + $0x80] sm:$0xff] %v218_v2  ;;  %v222_v5 = vadd.f32 %v221_v4, %v565_v25 }
  0xfe   :  { %v223_v6 = vpop.f32.mrf.mxu0 }
  0xff   :  { %355 = vst [vmem:[%s660_s3 + $0x90] sm:$0xff] %v222_v5  ;;  %v224_v7 = vadd.f32 %v223_v6, %v567_v26 }
 0x100   :  { %v227_v8 = vpop.f32.mrf.mxu0 }
 0x101   :  { %356 = vst [vmem:[%s660_s3 + $0x98] sm:$0xff] %v224_v7  ;;  %v228_v9 = vadd.f32 %v227_v8, %v565_v25 }
 0x102   :  { %v229_v10 = vpop.f32.mrf.mxu0 }
 0x103   :  { %358 = vst [vmem:[%s660_s3 + $0xa8] sm:$0xff] %v228_v9  ;;  %v230_v11 = vadd.f32 %v229_v10, %v567_v26 }
 0x105   :  { %359 = vst [vmem:[%s660_s3 + $0xb0] sm:$0xff] %v230_v11 }

// kernel: vqae_forward.9
= control target key start
LH: loop header
LB: loop body
LE: loop exit
PB: predicated region body
PF: predicated region fallthrough
CT: control target
= control target key end

     0   :  { %v1595_v0 = vmov 0.0   ;;  %vm1596_vm0 = vmmov 0   ;;  %v319_v58 = vlaneseq  ;;  %v1597_v61 = vmov 1966171168   ;;  %s2089_s2 = inlined_call_operand.vmem [shape: bf16[128,128], index: 2, kind: input, shape index: {}]   ;;  %s2090_s4 = inlined_call_operand.vmem [shape: bf16[128,128], index: 4, kind: input, shape index: {}]   ;;  %s2091_s0 = inlined_call_operand.vmem [shape: f32[8,8,128], index: 0, kind: input, shape index: {}]   ;;  %s2092_s1 = inlined_call_operand.vmem [shape: f32[8,128], index: 1, kind: input, shape index: {}]   ;;  %s2093_s6 = inlined_call_operand.vmem [shape: bf16[1,128], index: 6, kind: input, shape index: {}]   ;;  %s2094_s5 = inlined_call_operand.vmem [shape: f32[1,128], index: 5, kind: input, shape index: {}]   ;;  %s2095_s3 = inlined_call_operand.vmem [shape: f32[1,128], index: 3, kind: input, shape index: {}]   ;;  %s2096_s7 = inlined_call_operand.vmem [shape: bf16[128,128], index: 7, kind: input, shape index: {}]   ;;  %s2097_s9 = inlined_call_operand.vmem [shape: bf16[128,128], index: 9, kind: input, shape index: {}]   ;;  %s2098_s11 = inlined_call_operand.vmem [shape: bf16[128,256], index: 11, kind: input, shape index: {}]   ;;  %s2099_s8 = inlined_call_operand.vmem [shape: f32[1,128], index: 8, kind: input, shape index: {}]   ;;  %s2100_s10 = inlined_call_operand.vmem [shape: f32[1,128], index: 10, kind: input, shape index: {}]   ;;  %s2101_s13 = inlined_call_operand.vmem [shape: f32[8,128], index: 13, kind: output, shape index: {0}]   ;;  %s2102_s12 = inlined_call_operand.vmem [shape: f32[1,256], index: 12, kind: input, shape index: {}]   ;;  %s2103_s14 = inlined_call_operand.vmem [shape: f32[8,256], index: 14, kind: output, shape index: {1}]  }
   0x1   :  { %1452 = vmatprep.subr.mxu1 %v1595_v0  ;;  %v1311_v1 = vld [vmem:[%s2089_s2 + $0x38] sm:$0xff]   ;;  %v1310_v3 = vld [vmem:[%s2089_s2 + $0x30] sm:$0xff]   ;;  %1484 = vmatprep.mubr.msk.f32.mxu1 %vm1596_vm0, %v1595_v0  ;;  %v1309_v11 = vld [vmem:[%s2089_s2 + $0x28] sm:$0xff]   ;;  %v327_v62 = vunpack.c.l.s4 %v1597_v61  ;;  %vm480_vm1 = vcmask 1041409   ;;  %vm482_vm2 = vcmask 1042434   ;;  %vm484_vm3 = vcmask 1043459  }
   0x2   :  { %v1318_v2 = vld [vmem:[%s2090_s4 + $0x38] sm:$0xff]   ;;  %v1207_v4 = vunpack.c.l.bf16 %v1311_v1  ;;  %v1208_v5 = vunpack.c.h.bf16 %v1311_v1  ;;  %v1317_v8 = vld [vmem:[%s2090_s4 + $0x30] sm:$0xff]   ;;  %v1204_v9 = vunpack.c.h.bf16 %v1310_v3  ;;  %v1316_v12 = vld [vmem:[%s2090_s4 + $0x28] sm:$0xff]   ;;  %v1203_v13 = vunpack.c.l.bf16 %v1310_v3 }
   0x3   :  { %v1239_v6 = vunpack.c.l.bf16 %v1318_v2  ;;  %v1240_v7 = vunpack.c.h.bf16 %v1318_v2  ;;  %v1236_v10 = vunpack.c.h.bf16 %v1317_v8  ;;  %v1235_v14 = vunpack.c.l.bf16 %v1317_v8  ;;  %v1308_v17 = vld [vmem:[%s2089_s2 + $0x20] sm:$0xff]   ;;  %v1307_v23 = vld [vmem:[%s2089_s2 + $0x18] sm:$0xff]   ;;  %v1306_v29 = vld [vmem:[%s2089_s2 + $0x10] sm:$0xff]  }
   0x4   :  { %1408 = vmatprep.subr.mxu0 %v1208_v5  ;;  %v1200_v15 = vunpack.c.h.bf16 %v1309_v11  ;;  %v1232_v16 = vunpack.c.h.bf16 %v1316_v12  ;;  %v1315_v18 = vld [vmem:[%s2090_s4 + $0x20] sm:$0xff]   ;;  %v1199_v19 = vunpack.c.l.bf16 %v1309_v11  ;;  %v1231_v20 = vunpack.c.l.bf16 %v1316_v12  ;;  %v1314_v24 = vld [vmem:[%s2090_s4 + $0x18] sm:$0xff]   ;;  %v1313_v30 = vld [vmem:[%s2090_s4 + $0x10] sm:$0xff]  }
   0x5   :  { %1453 = vmatpush3.msra.mxu1 %v1240_v7  ;;  %1409 = vmatpush3.msra.mxu0 %v1208_v5  ;;  %v1196_v21 = vunpack.c.h.bf16 %v1308_v17  ;;  %v1228_v22 = vunpack.c.h.bf16 %v1315_v18  ;;  %v1195_v25 = vunpack.c.l.bf16 %v1308_v17  ;;  %v1227_v26 = vunpack.c.l.bf16 %v1315_v18  ;;  %v1305_v35 = vld [vmem:[%s2089_s2 + $0x8] sm:$0xff]   ;;  %v1178_v41 = vld [vmem:[%s2089_s2] sm:$0xff]   ;;  %v1758_v52 = vld [vmem:[%s2091_s0 + $0x10] sm:$0xff] }
   0x6   :  { %1454 = vmatprep.subr.mxu1 %v1595_v0  ;;  %1410 = vmatprep.subr.mxu0 %v1207_v4  ;;  %v1192_v27 = vunpack.c.h.bf16 %v1307_v23  ;;  %v1224_v28 = vunpack.c.h.bf16 %v1314_v24  ;;  %v1191_v31 = vunpack.c.l.bf16 %v1307_v23  ;;  %v1223_v32 = vunpack.c.l.bf16 %v1314_v24  ;;  %v1312_v36 = vld [vmem:[%s2090_s4 + $0x8] sm:$0xff]   ;;  %v1210_v42 = vld [vmem:[%s2090_s4] sm:$0xff]   ;;  %v1767_v53 = vld [vmem:[%s2091_s0 + $0x18] sm:$0xff] }
   0x7   :  { %1455 = vmatpush3.msra.mxu1 %v1239_v6  ;;  %1411 = vmatpush3.msra.mxu0 %v1207_v4  ;;  %v1188_v33 = vunpack.c.h.bf16 %v1306_v29  ;;  %v1220_v34 = vunpack.c.h.bf16 %v1313_v30  ;;  %v1187_v37 = vunpack.c.l.bf16 %v1306_v29  ;;  %v1219_v38 = vunpack.c.l.bf16 %v1313_v30  ;;  %v1742_v49 = vld [vmem:[%s2091_s0] sm:$0xff]  ;;  %v1753_v51 = vld [vmem:[%s2091_s0 + $0x8] sm:$0xff]  ;;  %v1788_v56 = vld [vmem:[%s2091_s0 + $0x30] sm:$0xff] }
   0x8   :  { %1456 = vmatprep.subr.mxu1 %v1595_v0  ;;  %1412 = vmatprep.subr.mxu0 %v1204_v9  ;;  %v1184_v39 = vunpack.c.h.bf16 %v1305_v35  ;;  %v1216_v40 = vunpack.c.h.bf16 %v1312_v36  ;;  %v1183_v43 = vunpack.c.l.bf16 %v1305_v35  ;;  %v1215_v44 = vunpack.c.l.bf16 %v1312_v36  ;;  %v1748_v50 = vld [vmem:[%s2092_s1] sm:$0xff]  ;;  %v1783_v55 = vld [vmem:[%s2091_s0 + $0x28] sm:$0xff]  ;;  %v1795_v57 = vld [vmem:[%s2091_s0 + $0x38] sm:$0xff] }
   0x9   :  { %1457 = vmatpush3.msra.mxu1 %v1236_v10  ;;  %1413 = vmatpush3.msra.mxu0 %v1204_v9  ;;  %v1180_v45 = vunpack.c.h.bf16 %v1178_v41  ;;  %v1212_v46 = vunpack.c.h.bf16 %v1210_v42  ;;  %v1179_v47 = vunpack.c.l.bf16 %v1178_v41  ;;  %v1211_v48 = vunpack.c.l.bf16 %v1210_v42  ;;  %v1773_v54 = vld [vmem:[%s2091_s0 + $0x20] sm:$0xff] }
   0xa   :  { %1458 = vmatprep.subr.mxu1 %v1595_v0  ;;  %1414 = vmatprep.subr.mxu0 %v1203_v13  ;;  %v1801_v59 = vshrl.u32 %v319_v58, 7  ;;  %v317_v60 = vld [vmem:[%s2093_s6] sm:$0x1]  ;;  %v328_v3 = vunpack.c.0.s8 %v327_v62  ;;  %vm486_vm4 = vcmask 1044484   ;;  %vm488_vm5 = vcmask 1045509  }
   0xb   :  { %1459 = vmatpush3.msra.mxu1 %v1235_v14  ;;  %1415 = vmatpush3.msra.mxu0 %v1203_v13  ;;  %v318_v63 = vunpack.c.l.bf16 %v317_v60  ;;  %v1174_v2 = vld [vmem:[%s2094_s5] ss:$0 sm:$0xff]  ;;  %vm490_vm6 = vcmask 1046534   ;;  %vm492_vm7 = vcmask 1047559   ;;  %vm495_vm8 = vcmask 64512  }
   0xc   :  { %1460 = vmatprep.subr.mxu1 %v1595_v0  ;;  %1416 = vmatprep.subr.mxu0 %v1200_v15  ;;  %v1807_v1 = vsub.s32 0, %v1801_v59  ;;  %v331_v11 = vsub.s32 %v328_v3, %v1801_v59  ;;  %v1173_v14 = vld [vmem:[%s2095_s3] ss:$0 sm:$0xff] }
   0xd   :  { %1461 = vmatpush3.msra.mxu1 %v1232_v16  ;;  %1417 = vmatpush3.msra.mxu0 %v1200_v15 }
   0xe   :  { %1462 = vmatprep.subr.mxu1 %v1595_v0  ;;  %1418 = vmatprep.subr.mxu0 %v1199_v19  ;;  %v322_v7 = vrot.slane %v318_v63, %v1807_v1 }
   0xf   :  { %1463 = vmatpush3.msra.mxu1 %v1231_v20  ;;  %1419 = vmatpush3.msra.mxu0 %v1199_v19 }
  0x10   :  { %1464 = vmatprep.subr.mxu1 %v1595_v0  ;;  %1420 = vmatprep.subr.mxu0 %v1196_v21 }
  0x11   :  { %1465 = vmatpush3.msra.mxu1 %v1228_v22  ;;  %1421 = vmatpush3.msra.mxu0 %v1196_v21 }
  0x12   :  { %1466 = vmatprep.subr.mxu1 %v1595_v0  ;;  %1422 = vmatprep.subr.mxu0 %v1195_v25 }
  0x13   :  { %1467 = vmatpush3.msra.mxu1 %v1227_v26  ;;  %1423 = vmatpush3.msra.mxu0 %v1195_v25 }
  0x14   :  { %1468 = vmatprep.subr.mxu1 %v1595_v0  ;;  %1424 = vmatprep.subr.mxu0 %v1192_v27 }
  0x15   :  { %1469 = vmatpush3.msra.mxu1 %v1224_v28  ;;  %1425 = vmatpush3.msra.mxu0 %v1192_v27 }
  0x16   :  { %1470 = vmatprep.subr.mxu1 %v1595_v0  ;;  %1426 = vmatprep.subr.mxu0 %v1191_v31 }
  0x17   :  { %1471 = vmatpush3.msra.mxu1 %v1223_v32  ;;  %1427 = vmatpush3.msra.mxu0 %v1191_v31 }
  0x18   :  { %1472 = vmatprep.subr.mxu1 %v1595_v0  ;;  %1428 = vmatprep.subr.mxu0 %v1188_v33 }
  0x19   :  { %1473 = vmatpush3.msra.mxu1 %v1220_v34  ;;  %1429 = vmatpush3.msra.mxu0 %v1188_v33 }
  0x1a   :  { %1474 = vmatprep.subr.mxu1 %v1595_v0  ;;  %1430 = vmatprep.subr.mxu0 %v1187_v37 }
  0x1b   :  { %1475 = vmatpush3.msra.mxu1 %v1219_v38  ;;  %1431 = vmatpush3.msra.mxu0 %v1187_v37 }
  0x1c   :  { %1476 = vmatprep.subr.mxu1 %v1595_v0  ;;  %1432 = vmatprep.subr.mxu0 %v1184_v39 }
  0x1d   :  { %1477 = vmatpush3.msra.mxu1 %v1216_v40  ;;  %1433 = vmatpush3.msra.mxu0 %v1184_v39 }
  0x1e   :  { %1478 = vmatprep.subr.mxu1 %v1595_v0  ;;  %1434 = vmatprep.subr.mxu0 %v1183_v43 }
  0x1f   :  { %1479 = vmatpush3.msra.mxu1 %v1215_v44  ;;  %1435 = vmatpush3.msra.mxu0 %v1183_v43 }
  0x20   :  { %1480 = vmatprep.subr.mxu1 %v1595_v0  ;;  %1436 = vmatprep.subr.mxu0 %v1180_v45 }
  0x21   :  { %1481 = vmatpush3.msra.mxu1 %v1212_v46  ;;  %1437 = vmatpush3.msra.mxu0 %v1180_v45 }
  0x22   :  { %1482 = vmatprep.subr.mxu1 %v1595_v0  ;;  %1438 = vmatprep.subr.mxu0 %v1179_v47 }
  0x23   :  { %1483 = vmatpush3.msra.mxu1 %v1211_v48  ;;  %1439 = vmatpush3.msra.mxu0 %v1179_v47 }
  0x24   :  { %1440 = vmatprep.mubr.f32.mxu0 %v1742_v49  ;;  %1485 = vmatmul.mubr.f32.vlgmr.msra.gmra.mxu1 %v1748_v50 }
  0x25   :  { %1441 = vmatmul.mubr.f32.vlgmr.msra.gmra.mxu0 %v1753_v51  ;;  %1487 = vmatprep.subr.mxu0 %v1595_v0 }
  0x26   :  { %1443 = vmatprep.mubr.f32.mxu0 %v1758_v52  ;;  %1522 = vmatprep.subr.mxu1 %v1595_v0 }
  0x27   :  { %1554 = vmatprep.mubr.msk.f32.mxu1 %vm1596_vm0, %v1595_v0 }
  0x29   :  { %1444 = vmatmul.mubr.f32.gmra.mxu0 %v1767_v53 }
  0x2a   :  { %1446 = vmatprep.mubr.f32.mxu0 %v1773_v54 }
  0x2d   :  { %1447 = vmatmul.mubr.f32.gmra.mxu0 %v1783_v55 }
  0x2e   :  { %1449 = vmatprep.mubr.f32.mxu0 %v1788_v56 }
  0x31   :  { %1450 = vmatmul.mubr.f32.gmra.mxu0 %v1795_v57 }
  0x32   :  { %1519 = vmatprep.mubr.msk.f32.mxu0 %vm1596_vm0, %v1595_v0 }
  0xe4   :  { %v312_v4 = vpop.f32.mrf.mxu1 }
  0xe5   :  { %v1442_v5 = vpop.f32.mrf.mxu0  ;;  %v313_v6 = vadd.f32 %v1174_v2, %v312_v4 }
  0xe6   :  { %v1486_v8 = vpop.f32.mrf.mxu1  ;;  %v166_v25 = vadd.f32 %v1442_v5, %v1173_v14 }
  0xe7   :  { %v160_v9 = vpop.f32.mrf.mxu0  ;;  %v316_v10 = vmax.f32 %v313_v6, 0.0 }
  0xe8   :  { %v161_v18 = vadd.f32 %v1173_v14, %v160_v9  ;;  %v200_v42 = vmax.f32 %v166_v25, 0.0 }
  0xe9   :  { %v1445_v12 = vpop.f32.mrf.mxu0  ;;  %v323_v13 = vmul.f32 %v322_v7, %v316_v10 }
  0xea   :  { %v199_v27 = vmax.f32 %v161_v18, 0.0  ;;  %v176_v32 = vadd.f32 %v1445_v12, %v1173_v14 }
  0xeb   :  { %v170_v15 = vpop.f32.mrf.mxu0  ;;  %v325_v16 = vcombine.high %v323_v13, %v323_v13  ;;  %v332_v17 = vrot.slane %v323_v13, %v331_v11 }
  0xec   :  { %v171_v22 = vadd.f32 %v1173_v14, %v170_v15  ;;  %v202_v46 = vmax.f32 %v176_v32, 0.0 }
  0xed   :  { %v1448_v19 = vpop.f32.mrf.mxu0  ;;  %v339_v20 = vrot.slane %v325_v16, %v331_v11  ;;  %v340_v21 = vcombine.high %v332_v17, %v332_v17  ;;  %v348_v24 = vrot.slane %v332_v17, %v331_v11 }
  0xee   :  { %v201_v33 = vmax.f32 %v171_v22, 0.0  ;;  %v186_v40 = vadd.f32 %v1448_v19, %v1173_v14 }
  0xef   :  { %v180_v23 = vpop.f32.mrf.mxu0  ;;  %v362_v26 = vrot.slane %v340_v21, %v331_v11  ;;  %v377_v29 = vrot.slane %v348_v24, %v1807_v1  ;;  %v370_v30 = vcombine.high %v348_v24, %v348_v24  ;;  %v341_v31 = vcombine.high %v339_v20, %v339_v20 }
  0xf0   :  { %v181_v34 = vadd.f32 %v1173_v14, %v180_v23  ;;  %v355_v39 = vrot.slane %v339_v20, %v331_v11  ;;  %v204_v62 = vmax.f32 %v186_v40, 0.0  ;;  %v1846_v40 = vsub.s32 1, %v1801_v59 }
  0xf1   :  { %v1451_v28 = vpop.f32.mrf.mxu0  ;;  %v372_v35 = vcombine.high %v362_v26, %v362_v26  ;;  %v414_v36 = vmul.f32 %v377_v29, %v199_v27  ;;  %v385_v37 = vrot.slane %v370_v30, %v1807_v1  ;;  %v381_v38 = vrot.slane %v362_v26, %v1807_v1 }
  0xf2   :  { %v369_v45 = vrot.slane %v341_v31, %v331_v11  ;;  %v203_v47 = vmax.f32 %v181_v34, 0.0  ;;  %v393_v61 = vrot.slane %v355_v39, %v1807_v1  ;;  %v196_v63 = vadd.f32 %v1451_v28, %v1173_v14 }
  0xf3   :  { %v190_v41 = vpop.f32.mrf.mxu0  ;;  %422 = vadd.xlane.f32.xlu0 %v414_v36  ;;  %v416_v43 = vmul.f32 %v385_v37, %v201_v33  ;;  %v389_v44 = vrot.slane %v372_v35, %v1807_v1  ;;  %v415_v60 = vmul.f32 %v381_v38, %v200_v42  ;;  %v371_v4 = vcombine.high %v355_v39, %v355_v39 }
  0xf4   :  { %v191_v48 = vadd.f32 %v1173_v14, %v190_v41  ;;  %v397_v3 = vrot.slane %v369_v45, %v1807_v1  ;;  %v373_v5 = vcombine.high %v369_v45, %v369_v45  ;;  %v418_v7 = vmul.f32 %v393_v61, %v203_v47 }
  0xf5   :  { %426 = vadd.xlane.f32.xlu1 %v416_v43  ;;  %v417_v2 = vmul.f32 %v389_v44, %v202_v46  ;;  %v206_v8 = vmax.f32 %v196_v63, 0.0  ;;  %v401_v10 = vrot.slane %v371_v4, %v1807_v1  ;;  %v447_v14 = vand.u32 127, %v319_v58 }
  0xf6   :  { %v205_v6 = vmax.f32 %v191_v48, 0.0  ;;  %v419_v9 = vmul.f32 %v397_v3, %v204_v62  ;;  %v405_v11 = vrot.slane %v373_v5, %v1807_v1  ;;  %v1598_v39 = vmov 0  }
  0xf7   :  { %424 = vadd.xlane.f32.xlu0 %v415_v60  ;;  %v1827_v16 = vsub.s32 %v447_v14, %v1801_v59  ;;  %1561 = vset.pattern.permute.xlu1 %v1598_v39  ;;  %v510_v41 = vsub.s32 2, %v1801_v59  ;;  %v514_v42 = vsub.s32 3, %v1801_v59  ;;  %v518_v47 = vsub.s32 4, %v1801_v59 }
  0xf8   :  { %v420_v12 = vmul.f32 %v401_v10, %v205_v6  ;;  %v421_v13 = vmul.f32 %v405_v11, %v206_v8  ;;  %1562 = vset.pattern.permute.xlu0 %v1598_v39  ;;  %v522_v3 = vsub.s32 5, %v1801_v59  ;;  %v530_v11 = vsub.s32 7, %v1801_v59 }
  0xf9   :  { %428 = vadd.xlane.f32.xlu1 %v417_v2 }
  0xfb   :  { %430 = vadd.xlane.f32.xlu0 %v418_v7  ;;  %v526_v7 = vsub.s32 6, %v1801_v59  ;;  %v1332_v59 = vld [vmem:[%s2097_s9 + $0x38] sm:$0xff]  }
  0xfd   :  { %432 = vadd.xlane.f32.xlu1 %v419_v9 }
  0xff   :  { %434 = vadd.xlane.f32.xlu0 %v420_v12 }
 0x101   :  { %436 = vadd.xlane.f32.xlu1 %v421_v13 }
 0x17c   :  { %v423_v15 = vpop.xlane.xlu0 %422 }
 0x17d   :  { %v451_v19 = vrot.slane %v423_v15, %v1827_v16 }
 0x17e   :  { %v427_v17 = vpop.xlane.xlu1 %426 }
 0x17f   :  { %v459_v21 = vrot.slane %v427_v17, %v1827_v16 }
 0x180   :  { %v425_v18 = vpop.xlane.xlu0 %424 }
 0x181   :  { %v455_v20 = vrot.slane %v425_v18, %v1827_v16 }
 0x182   :  { %v429_v22 = vpop.xlane.xlu1 %428 }
 0x183   :  { %v481_v23 = vsel %vm480_vm1, %v455_v20, %v451_v19  ;;  %v463_v58 = vrot.slane %v429_v22, %v1827_v16 }
 0x184   :  { %v483_v24 = vsel %vm482_vm2, %v459_v21, %v481_v23  ;;  %v431_v25 = vpop.xlane.xlu0 %430 }
 0x185   :  { %v485_v26 = vsel %vm484_vm3, %v463_v58, %v483_v24  ;;  %v467_v27 = vrot.slane %v431_v25, %v1827_v16 }
 0x186   :  { %v433_v28 = vpop.xlane.xlu1 %432 }
 0x187   :  { %v487_v29 = vsel %vm486_vm4, %v467_v27, %v485_v26  ;;  %v471_v30 = vrot.slane %v433_v28, %v1827_v16 }
 0x188   :  { %v435_v31 = vpop.xlane.xlu0 %434 }
 0x189   :  { %v475_v32 = vrot.slane %v435_v31, %v1827_v16  ;;  %v489_v33 = vsel %vm488_vm5, %v471_v30, %v487_v29 }
 0x18a   :  { %v437_v34 = vpop.xlane.xlu1 %436 }
 0x18b   :  { %v479_v35 = vrot.slane %v437_v34, %v1827_v16  ;;  %v491_v36 = vsel %vm490_vm6, %v475_v32, %v489_v33 }
 0x18d   :  { %v493_v37 = vsel %vm492_vm7, %v479_v35, %v491_v36 }
 0x18e   :  { %v496_v38 = vsel %vm495_vm8, %v493_v37, -inf }
 0x18f   :  { %497 = vmax.xlane.f32.xlu0 %v496_v38 }
 0x218   :  { %v498_v43 = vpop.xlane.xlu0 %497 }
 0x219   :  { %v503_v44 = vrot.slane %v498_v43, %v1807_v1  ;;  %v507_v45 = vrot.slane %v498_v43, %v1846_v40  ;;  %v511_v46 = vrot.slane %v498_v43, %v510_v41  ;;  %v515_v48 = vrot.slane %v498_v43, %v514_v42 }
 0x21a   :  { %v519_v4 = vrot.slane %v498_v43, %v518_v47  ;;  %v523_v8 = vrot.slane %v498_v43, %v522_v3  ;;  %v527_v12 = vrot.slane %v498_v43, %v526_v7 }
 0x21b   :  { %v540_v60 = vsub.f32 %v423_v15, %v503_v44  ;;  %v541_v61 = vsub.f32 %v425_v18, %v507_v45  ;;  %v542_v62 = vsub.f32 %v427_v17, %v511_v46  ;;  %v543_v5 = vsub.f32 %v429_v22, %v515_v48 }
 0x21c   :  { %v544_v9 = vsub.f32 %v431_v25, %v519_v4  ;;  %v545_v13 = vsub.f32 %v433_v28, %v523_v8  ;;  %v531_v15 = vrot.slane %v498_v43, %v530_v11  ;;  %v546_v17 = vsub.f32 %v435_v31, %v527_v12 }
 0x21d   :  { %v548_v63 = vmul.f32 1.442695, %v540_v60  ;;  %v550_v2 = vmul.f32 1.442695, %v541_v61  ;;  %v552_v6 = vmul.f32 1.442695, %v542_v62 }
 0x21e   :  { %v554_v10 = vmul.f32 1.442695, %v543_v5  ;;  %v556_v14 = vmul.f32 1.442695, %v544_v9  ;;  %v558_v18 = vmul.f32 1.442695, %v545_v13  ;;  %v547_v21 = vsub.f32 %v437_v34, %v531_v15 }
 0x21f   :  { %1563 = vpow2.f32 %v548_v63  ;;  %v560_v22 = vmul.f32 1.442695, %v546_v17 }
 0x220   :  { %1565 = vpow2.f32 %v550_v2  ;;  %v562_v58 = vmul.f32 1.442695, %v547_v21 }
 0x221   :  { %1567 = vpow2.f32 %v552_v6 }
 0x222   :  { %1569 = vpow2.f32 %v554_v10 }
 0x223   :  { %1571 = vpow2.f32 %v556_v14 }
 0x224   :  { %1573 = vpow2.f32 %v558_v18 }
 0x225   :  { %1575 = vpow2.f32 %v560_v22 }
 0x226   :  { %1577 = vpow2.f32 %v562_v58 }
 0x22c   :  { %v1564_v19 = vpop.eup %1563 }
 0x22d   :  { %v1868_v20 = vpop.eup %1565  ;;  %573 = vperm.xlu1 %1561, %v1564_v19  }
 0x22e   :  { %576 = vperm.xlu0 %1562, %v1868_v20   ;;  %v1871_v23 = vpop.eup %1567 }
 0x22f   :  { %v1874_v24 = vpop.eup %1569 }
 0x230   :  { %v1877_v25 = vpop.eup %1571 }
 0x231   :  { %579 = vperm.xlu1 %1561, %v1871_v23   ;;  %v1880_v26 = vpop.eup %1573 }
 0x232   :  { %v1883_v27 = vpop.eup %1575 }
 0x233   :  { %v1886_v28 = vpop.eup %1577 }
 0x235   :  { %582 = vperm.xlu1 %1561, %v1874_v24  }
 0x239   :  { %585 = vperm.xlu1 %1561, %v1877_v25  }
 0x23d   :  { %588 = vperm.xlu1 %1561, %v1880_v26  }
 0x241   :  { %591 = vperm.xlu1 %1561, %v1883_v27  }
 0x245   :  { %594 = vperm.xlu1 %1561, %v1886_v28  }
 0x2a8   :  { %v574_v29 = vpop.permute.xlu1 %573 }
 0x2a9   :  { %v577_v33 = vpop.permute.xlu0 %576  ;;  %v599_v36 = vrot.slane %v574_v29, %v1827_v16 }
 0x2aa   :  { %v603_v35 = vrot.slane %v577_v33, %v1827_v16  ;;  %v1331_v33 = vld [vmem:[%s2097_s9 + $0x30] sm:$0xff]  }
 0x2ac   :  { %v580_v30 = vpop.permute.xlu1 %579  ;;  %v628_v44 = vsel %vm480_vm1, %v603_v35, %v599_v36  ;;  %v1323_v36 = vld [vmem:[%s2096_s7 + $0x28] sm:$0xff]  }
 0x2ad   :  { %v607_v37 = vrot.slane %v580_v30, %v1827_v16 }
 0x2af   :  { %v629_v46 = vsel %vm482_vm2, %v607_v37, %v628_v44 }
 0x2b0   :  { %v583_v31 = vpop.permute.xlu1 %582 }
 0x2b1   :  { %v611_v38 = vrot.slane %v583_v31, %v1827_v16 }
 0x2b3   :  { %v630_v60 = vsel %vm484_vm3, %v611_v38, %v629_v46  ;;  %v1264_v38 = vunpack.c.h.bf16 %v1323_v36  ;;  %v1322_v46 = vld [vmem:[%s2096_s7 + $0x20] sm:$0xff]  }
 0x2b4   :  { %v586_v32 = vpop.permute.xlu1 %585 }
 0x2b5   :  { %v615_v39 = vrot.slane %v586_v32, %v1827_v16  ;;  %v1303_v32 = vunpack.c.l.bf16 %v1332_v59 }
 0x2b7   :  { %v631_v61 = vsel %vm486_vm4, %v615_v39, %v630_v60  ;;  %v1299_v39 = vunpack.c.l.bf16 %v1331_v33  ;;  %v1260_v60 = vunpack.c.h.bf16 %v1322_v46 }
 0x2b8   :  { %v589_v34 = vpop.permute.xlu1 %588 }
 0x2b9   :  { %v619_v45 = vrot.slane %v589_v34, %v1827_v16  ;;  %v1300_v34 = vunpack.c.h.bf16 %v1331_v33  ;;  %v1041_v33 = vld [vmem:[%s2098_s11 + $0x60] sm:$0xff] }
 0x2bb   :  { %v632_v63 = vsel %vm488_vm5, %v619_v45, %v631_v61 }
 0x2bc   :  { %v592_v43 = vpop.permute.xlu1 %591 }
 0x2bd   :  { %v623_v48 = vrot.slane %v592_v43, %v1827_v16  ;;  %v1330_v43 = vld [vmem:[%s2097_s9 + $0x28] sm:$0xff]  }
 0x2be   :  { %v1296_v44 = vunpack.c.h.bf16 %v1330_v43  ;;  %v1295_v61 = vunpack.c.l.bf16 %v1330_v43  ;;  %v1038_v43 = vld [vmem:[%s2098_s11 + $0x48] sm:$0xff] }
 0x2bf   :  { %v633_v4 = vsel %vm490_vm6, %v623_v48, %v632_v63 }
 0x2c0   :  { %v595_v62 = vpop.permute.xlu1 %594 }
 0x2c1   :  { %v627_v2 = vrot.slane %v595_v62, %v1827_v16  ;;  %v1329_v62 = vld [vmem:[%s2097_s9 + $0x20] sm:$0xff]  }
 0x2c2   :  { %v1292_v63 = vunpack.c.h.bf16 %v1329_v62 }
 0x2c3   :  { %v634_v5 = vsel %vm492_vm7, %v627_v2, %v633_v4  ;;  %v1321_v4 = vld [vmem:[%s2096_s7 + $0x18] sm:$0xff]  }
 0x2c4   :  { %v636_v6 = vsel %vm495_vm8, %v634_v5, 0.0  ;;  %v1256_v5 = vunpack.c.h.bf16 %v1321_v4 }
 0x2c5   :  { %637 = vadd.xlane.f32.xlu1 %v636_v6  ;;  %v1291_v6 = vunpack.c.l.bf16 %v1329_v62  ;;  %v1035_v62 = vld [vmem:[%s2098_s11 + $0x30] sm:$0xff] }
 0x34e   :  { %v638_v8 = vpop.xlane.xlu1 %637 }
 0x34f   :  { %v643_v9 = vrot.slane %v638_v8, %v1807_v1  ;;  %v647_v10 = vrot.slane %v638_v8, %v1846_v40  ;;  %v651_v12 = vrot.slane %v638_v8, %v510_v41  ;;  %v655_v16 = vrot.slane %v638_v8, %v514_v42 }
 0x350   :  { %v659_v13 = vrot.slane %v638_v8, %v518_v47  ;;  %v663_v15 = vrot.slane %v638_v8, %v522_v3  ;;  %v667_v41 = vrot.slane %v638_v8, %v526_v7  ;;  %v671_v47 = vrot.slane %v638_v8, %v530_v11  ;;  %v1325_v7 = vld [vmem:[%s2096_s7 + $0x38] sm:$0xff]  }
 0x351   :  { %1579 = vrcp.f32 %v643_v9  ;;  %v1272_v29 = vunpack.c.h.bf16 %v1325_v7  ;;  %v1271_v11 = vunpack.c.l.bf16 %v1325_v7  ;;  %v1328_v8 = vld [vmem:[%s2097_s9 + $0x18] sm:$0xff]  }
 0x352   :  { %1581 = vrcp.f32 %v647_v10  ;;  %v1288_v9 = vunpack.c.h.bf16 %v1328_v8  ;;  %v1320_v10 = vld [vmem:[%s2096_s7 + $0x10] sm:$0xff]  }
 0x353   :  { %1583 = vrcp.f32 %v651_v12  ;;  %1488 = vmatpush3.msra.mxu0 %v1272_v29  ;;  %v1252_v12 = vunpack.c.h.bf16 %v1320_v10 }
 0x354   :  { %1585 = vrcp.f32 %v655_v16  ;;  %1489 = vmatprep.subr.mxu0 %v1595_v0  ;;  %v1287_v16 = vunpack.c.l.bf16 %v1328_v8 }
 0x355   :  { %1587 = vrcp.f32 %v659_v13  ;;  %1490 = vmatpush3.msra.mxu0 %v1271_v11  ;;  %v1327_v13 = vld [vmem:[%s2097_s9 + $0x10] sm:$0xff]  }
 0x356   :  { %1589 = vrcp.f32 %v663_v15  ;;  %1491 = vmatprep.subr.mxu0 %v1595_v0  ;;  %v1284_v15 = vunpack.c.h.bf16 %v1327_v13  ;;  %v1043_v11 = vld [vmem:[%s2098_s11 + $0x70] sm:$0xff] }
 0x357   :  { %1591 = vrcp.f32 %v667_v41  ;;  %v1283_v41 = vunpack.c.l.bf16 %v1327_v13 }
 0x358   :  { %1593 = vrcp.f32 %v671_v47 }
 0x35e   :  { %v1580_v14 = vpop.eup %1579 }
 0x35f   :  { %v681_v17 = vmul.f32 %v1580_v14, %v1564_v19  ;;  %v1582_v18 = vpop.eup %1581  ;;  %v1251_v14 = vunpack.c.l.bf16 %v1320_v10 }
 0x360   :  { %v683_v21 = vmul.f32 %v1582_v18, %v1868_v20  ;;  %v1584_v42 = vpop.eup %1583  ;;  %v1304_v20 = vunpack.c.h.bf16 %v1332_v59 }
 0x361   :  { %698 = vperm.xlu0 %1562, %v681_v17   ;;  %v685_v22 = vmul.f32 %v1584_v42, %v1871_v23  ;;  %v1586_v58 = vpop.eup %1585  ;;  %v1319_v17 = vld [vmem:[%s2096_s7 + $0x8] sm:$0xff]   ;;  %v1242_v42 = vld [vmem:[%s2096_s7] sm:$0xff]  }
 0x362   :  { %v687_v3 = vmul.f32 %v1586_v58, %v1874_v24  ;;  %v1588_v19 = vpop.eup %1587  ;;  %v1324_v24 = vld [vmem:[%s2096_s7 + $0x30] sm:$0xff]   ;;  %1523 = vmatpush3.msra.mxu1 %v1304_v20  ;;  %v1248_v18 = vunpack.c.h.bf16 %v1319_v17  ;;  %v1247_v47 = vunpack.c.l.bf16 %v1319_v17  ;;  %v1274_v58 = vld [vmem:[%s2097_s9] sm:$0xff]   ;;  %v1243_v29 = vunpack.c.l.bf16 %v1242_v42 }
 0x363   :  { %v689_v23 = vmul.f32 %v1588_v19, %v1877_v25  ;;  %v1590_v30 = vpop.eup %1589  ;;  %v1268_v31 = vunpack.c.h.bf16 %v1324_v24  ;;  %1524 = vmatprep.subr.mxu1 %v1595_v0  ;;  %v1267_v25 = vunpack.c.l.bf16 %v1324_v24  ;;  %v1044_v19 = vld [vmem:[%s2098_s11 + $0x78] sm:$0xff]  ;;  %v1276_v59 = vunpack.c.h.bf16 %v1274_v58 }
 0x364   :  { %v691_v35 = vmul.f32 %v1590_v30, %v1880_v26  ;;  %1525 = vmatpush3.msra.mxu1 %v1303_v32  ;;  %v1592_v37 = vpop.eup %1591  ;;  %v1263_v26 = vunpack.c.l.bf16 %v1323_v36  ;;  %v1275_v20 = vunpack.c.l.bf16 %v1274_v58  ;;  %v1075_v24 = vunpack.c.l.bf16 %v1044_v19  ;;  %v1042_v30 = vld [vmem:[%s2098_s11 + $0x68] sm:$0xff] }
 0x365   :  { %703 = vperm.xlu0 %1562, %v683_v21   ;;  %1492 = vmatpush3.msra.mxu0 %v1268_v31  ;;  %v693_v45 = vmul.f32 %v1592_v37, %v1883_v27  ;;  %v1594_v48 = vpop.eup %1593  ;;  %v1259_v27 = vunpack.c.l.bf16 %v1322_v46  ;;  %v1326_v21 = vld [vmem:[%s2097_s9 + $0x8] sm:$0xff]   ;;  %v1074_v31 = vunpack.c.h.bf16 %v1043_v11  ;;  %v1073_v32 = vunpack.c.l.bf16 %v1043_v11  ;;  %v1039_v37 = vld [vmem:[%s2098_s11 + $0x50] sm:$0xff] }
 0x366   :  { %1493 = vmatprep.subr.mxu0 %v1595_v0  ;;  %1526 = vmatprep.subr.mxu1 %v1595_v0  ;;  %v695_v2 = vmul.f32 %v1594_v48, %v1886_v28  ;;  %v1255_v28 = vunpack.c.l.bf16 %v1321_v4  ;;  %v1279_v7 = vunpack.c.l.bf16 %v1326_v21  ;;  %v1069_v36 = vunpack.c.l.bf16 %v1041_v33  ;;  %v1036_v48 = vld [vmem:[%s2098_s11 + $0x38] sm:$0xff] }
 0x367   :  { %1494 = vmatpush3.msra.mxu0 %v1267_v25  ;;  %1527 = vmatpush3.msra.mxu1 %v1300_v34  ;;  %v1072_v25 = vunpack.c.h.bf16 %v1042_v30  ;;  %v1071_v34 = vunpack.c.l.bf16 %v1042_v30  ;;  %v1063_v46 = vunpack.c.l.bf16 %v1038_v43  ;;  %v1058_v4 = vunpack.c.h.bf16 %v1035_v62 }
 0x368   :  { %1495 = vmatprep.subr.mxu0 %v1595_v0  ;;  %1528 = vmatprep.subr.mxu1 %v1595_v0 }
 0x369   :  { %708 = vperm.xlu0 %1562, %v685_v22   ;;  %1496 = vmatpush3.msra.mxu0 %v1264_v38  ;;  %v1280_v22 = vunpack.c.h.bf16 %v1326_v21 }
 0x36a   :  { %1529 = vmatpush3.msra.mxu1 %v1299_v39  ;;  %1497 = vmatprep.subr.mxu0 %v1595_v0 }
 0x36b   :  { %1530 = vmatprep.subr.mxu1 %v1595_v0  ;;  %1498 = vmatpush3.msra.mxu0 %v1263_v26  ;;  %v1066_v26 = vunpack.c.h.bf16 %v1039_v37 }
 0x36c   :  { %1531 = vmatpush3.msra.mxu1 %v1296_v44  ;;  %1499 = vmatprep.subr.mxu0 %v1595_v0  ;;  %v1037_v44 = vld [vmem:[%s2098_s11 + $0x40] sm:$0xff] }
 0x36d   :  { %713 = vperm.xlu0 %1562, %v687_v3   ;;  %1532 = vmatprep.subr.mxu1 %v1595_v0  ;;  %v1244_v3 = vunpack.c.h.bf16 %v1242_v42 }
 0x36e   :  { %1500 = vmatpush3.msra.mxu0 %v1260_v60  ;;  %1533 = vmatpush3.msra.mxu1 %v1295_v61  ;;  %v1062_v60 = vunpack.c.h.bf16 %v1037_v44  ;;  %v1061_v61 = vunpack.c.l.bf16 %v1037_v44 }
 0x36f   :  { %1501 = vmatprep.subr.mxu0 %v1595_v0  ;;  %1534 = vmatprep.subr.mxu1 %v1595_v0 }
 0x370   :  { %1502 = vmatpush3.msra.mxu0 %v1259_v27  ;;  %1535 = vmatpush3.msra.mxu1 %v1292_v63  ;;  %v1060_v27 = vunpack.c.h.bf16 %v1036_v48  ;;  %v1059_v63 = vunpack.c.l.bf16 %v1036_v48 }
 0x371   :  { %718 = vperm.xlu0 %1562, %v689_v23   ;;  %1503 = vmatprep.subr.mxu0 %v1595_v0  ;;  %v1076_v23 = vunpack.c.h.bf16 %v1044_v19 }
 0x372   :  { %1536 = vmatprep.subr.mxu1 %v1595_v0  ;;  %1504 = vmatpush3.msra.mxu0 %v1256_v5  ;;  %v1057_v5 = vunpack.c.l.bf16 %v1035_v62 }
 0x373   :  { %1537 = vmatpush3.msra.mxu1 %v1291_v6  ;;  %1505 = vmatprep.subr.mxu0 %v1595_v0  ;;  %v1033_v6 = vld [vmem:[%s2098_s11 + $0x20] sm:$0xff] }
 0x374   :  { %1538 = vmatprep.subr.mxu1 %v1595_v0  ;;  %1506 = vmatpush3.msra.mxu0 %v1255_v28  ;;  %v1053_v10 = vunpack.c.l.bf16 %v1033_v6 }
 0x375   :  { %723 = vperm.xlu0 %1562, %v691_v35   ;;  %1539 = vmatpush3.msra.mxu1 %v1288_v9  ;;  %v1040_v35 = vld [vmem:[%s2098_s11 + $0x58] sm:$0xff]  ;;  %v1054_v9 = vunpack.c.h.bf16 %v1033_v6 }
 0x376   :  { %1507 = vmatprep.subr.mxu0 %v1595_v0  ;;  %1540 = vmatprep.subr.mxu1 %v1595_v0  ;;  %v1068_v38 = vunpack.c.h.bf16 %v1040_v35  ;;  %v1067_v39 = vunpack.c.l.bf16 %v1040_v35 }
 0x377   :  { %1508 = vmatpush3.msra.mxu0 %v1252_v12  ;;  %1541 = vmatpush3.msra.mxu1 %v1287_v16  ;;  %v1032_v12 = vld [vmem:[%s2098_s11 + $0x18] sm:$0xff] }
 0x378   :  { %1509 = vmatprep.subr.mxu0 %v1595_v0  ;;  %1542 = vmatprep.subr.mxu1 %v1595_v0  ;;  %v1051_v16 = vunpack.c.l.bf16 %v1032_v12  ;;  %v1052_v13 = vunpack.c.h.bf16 %v1032_v12 }
 0x379   :  { %728 = vperm.xlu0 %1562, %v693_v45   ;;  %1510 = vmatpush3.msra.mxu0 %v1251_v14  ;;  %v1064_v45 = vunpack.c.h.bf16 %v1038_v43 }
 0x37a   :  { %1543 = vmatpush3.msra.mxu1 %v1284_v15  ;;  %1511 = vmatprep.subr.mxu0 %v1595_v0 }
 0x37b   :  { %1544 = vmatprep.subr.mxu1 %v1595_v0  ;;  %1512 = vmatpush3.msra.mxu0 %v1248_v18 }
 0x37c   :  { %1545 = vmatpush3.msra.mxu1 %v1283_v41  ;;  %1513 = vmatprep.subr.mxu0 %v1595_v0 }
 0x37d   :  { %733 = vperm.xlu0 %1562, %v695_v2   ;;  %1546 = vmatprep.subr.mxu1 %v1595_v0  ;;  %v1034_v2 = vld [vmem:[%s2098_s11 + $0x28] sm:$0xff] }
 0x37e   :  { %1514 = vmatpush3.msra.mxu0 %v1247_v47  ;;  %1547 = vmatpush3.msra.mxu1 %v1280_v22  ;;  %v1056_v8 = vunpack.c.h.bf16 %v1034_v2  ;;  %v1055_v28 = vunpack.c.l.bf16 %v1034_v2 }
 0x37f   :  { %1515 = vmatprep.subr.mxu0 %v1595_v0  ;;  %1548 = vmatprep.subr.mxu1 %v1595_v0 }
 0x380   :  { %1516 = vmatpush3.msra.mxu0 %v1244_v3  ;;  %1549 = vmatpush3.msra.mxu1 %v1279_v7 }
 0x381   :  { %1517 = vmatprep.subr.mxu0 %v1595_v0  ;;  %1550 = vmatprep.subr.mxu1 %v1595_v0 }
 0x382   :  { %1518 = vmatpush3.msra.mxu0 %v1243_v29  ;;  %1551 = vmatpush3.msra.mxu1 %v1276_v59 }
 0x383   :  { %1520 = vmatmul.mubr.f32.vlgmr.msra.gmra.mxu0 %v1748_v50  ;;  %1552 = vmatprep.subr.mxu1 %v1595_v0  ;;  %v1070_v50 = vunpack.c.h.bf16 %v1041_v33 }
 0x384   :  { %1553 = vmatpush3.msra.mxu1 %v1275_v20  ;;  %1089 = vmatprep.subr.mxu0 %v1076_v23 }
 0x385   :  { %1090 = vmatpush1.msra.mxu0 %v1075_v24  ;;  %1153 = vmatprep.mubr.f32.mxu0 %v1595_v0  ;;  %v1065_v0 = vunpack.c.l.bf16 %v1039_v37 }
 0x386   :  { %1091 = vmatprep.subr.mxu0 %v1074_v31 }
 0x387   :  { %1092 = vmatpush1.msra.mxu0 %v1073_v32 }
 0x388   :  { %1093 = vmatprep.subr.mxu0 %v1072_v25 }
 0x389   :  { %1094 = vmatpush1.msra.mxu0 %v1071_v34 }
 0x38a   :  { %1095 = vmatprep.subr.mxu0 %v1070_v50 }
 0x38b   :  { %1096 = vmatpush1.msra.mxu0 %v1069_v36 }
 0x38c   :  { %1097 = vmatprep.subr.mxu0 %v1068_v38 }
 0x38d   :  { %1098 = vmatpush1.msra.mxu0 %v1067_v39 }
 0x38e   :  { %1099 = vmatprep.subr.mxu0 %v1066_v26 }
 0x38f   :  { %1100 = vmatpush1.msra.mxu0 %v1065_v0 }
 0x390   :  { %1101 = vmatprep.subr.mxu0 %v1064_v45 }
 0x391   :  { %1102 = vmatpush1.msra.mxu0 %v1063_v46 }
 0x392   :  { %1103 = vmatprep.subr.mxu0 %v1062_v60 }
 0x393   :  { %1104 = vmatpush1.msra.mxu0 %v1061_v61 }
 0x394   :  { %1105 = vmatprep.subr.mxu0 %v1060_v27 }
 0x395   :  { %1106 = vmatpush1.msra.mxu0 %v1059_v63 }
 0x396   :  { %1107 = vmatprep.subr.mxu0 %v1058_v4 }
 0x397   :  { %1108 = vmatpush1.msra.mxu0 %v1057_v5 }
 0x398   :  { %1109 = vmatprep.subr.mxu0 %v1056_v8 }
 0x399   :  { %1110 = vmatpush1.msra.mxu0 %v1055_v28 }
 0x39a   :  { %1111 = vmatprep.subr.mxu0 %v1054_v9 }
 0x39b   :  { %1112 = vmatpush1.msra.mxu0 %v1053_v10 }
 0x39c   :  { %1113 = vmatprep.subr.mxu0 %v1052_v13 }
 0x39d   :  { %1114 = vmatpush1.msra.mxu0 %v1051_v16 }
 0x3dc   :  { %v699_v14 = vpop.permute.xlu0 %698 }
 0x3dd   :  { %v736_v21 = vmul.f32 %v699_v14, %v1742_v49 }
 0x3df   :  { %v744_v3 = vrot.slane %v736_v21, 4 }
 0x3e0   :  { %v704_v15 = vpop.permute.xlu0 %703 }
 0x3e1   :  { %v737_v18 = vmul.f32 %v704_v15, %v1753_v51  ;;  %v745_v20 = vadd.f32 %v744_v3, %v736_v21 }
 0x3e3   :  { %v750_v47 = vrot.slane %v737_v18, 4  ;;  %v746_v32 = vrot.slane %v745_v20, 2 }
 0x3e4   :  { %v709_v17 = vpop.permute.xlu0 %708 }
 0x3e5   :  { %v738_v41 = vmul.f32 %v709_v17, %v1758_v52  ;;  %v751_v29 = vadd.f32 %v750_v47, %v737_v18  ;;  %v747_v37 = vadd.f32 %v746_v32, %v745_v20 }
 0x3e7   :  { %v756_v58 = vrot.slane %v738_v41, 4  ;;  %v752_v30 = vrot.slane %v751_v29, 2  ;;  %v748_v60 = vrot.slane %v747_v37, 1 }
 0x3e8   :  { %v714_v42 = vpop.permute.xlu0 %713 }
 0x3e9   :  { %v739_v22 = vmul.f32 %v714_v42, %v1767_v53  ;;  %v757_v11 = vadd.f32 %v756_v58, %v738_v41  ;;  %v753_v35 = vadd.f32 %v752_v30, %v751_v29  ;;  %v749_v8 = vadd.f32 %v748_v60, %v747_v37  ;;  %v1031_v58 = vld [vmem:[%s2098_s11 + $0x10] sm:$0xff]  ;;  %v1030_v29 = vld [vmem:[%s2098_s11 + $0x8] sm:$0xff]  ;;  %v1175_v30 = vld [vmem:[%s2099_s8] ss:$0 sm:$0xff] }
 0x3ea   :  { %v1050_v3 = vunpack.c.h.bf16 %v1031_v58  ;;  %v1048_v20 = vunpack.c.h.bf16 %v1030_v29 }
 0x3eb   :  { %v762_v7 = vrot.slane %v739_v22, 4  ;;  %v758_v31 = vrot.slane %v757_v11, 2  ;;  %v754_v44 = vrot.slane %v753_v35, 1 }
 0x3ec   :  { %v719_v19 = vpop.permute.xlu0 %718  ;;  %1115 = vmatprep.subr.mxu0 %v1050_v3 }
 0x3ed   :  { %v740_v59 = vmul.f32 %v719_v19, %v1773_v54  ;;  %v763_v23 = vadd.f32 %v762_v7, %v739_v22  ;;  %v759_v54 = vadd.f32 %v758_v31, %v757_v11  ;;  %v755_v2 = vadd.f32 %v754_v44, %v753_v35  ;;  %v1077_v35 = vld [vmem:[%s2102_s12] sm:$0x3] }
 0x3ee   :  { %v1049_v19 = vunpack.c.l.bf16 %v1031_v58  ;;  %v1047_v11 = vunpack.c.l.bf16 %v1030_v29 }
 0x3ef   :  { %v768_v24 = vrot.slane %v740_v59, 4  ;;  %v764_v33 = vrot.slane %v763_v23, 2  ;;  %v760_v48 = vrot.slane %v759_v54, 1  ;;  %v949_v16 = vsel %vm480_vm1, %v755_v2, %v749_v8 }
 0x3f0   :  { %v724_v51 = vpop.permute.xlu0 %723  ;;  %1116 = vmatpush1.msra.mxu0 %v1049_v19 }
 0x3f1   :  { %v769_v52 = vadd.f32 %v768_v24, %v740_v59  ;;  %v741_v49 = vmul.f32 %v724_v51, %v1783_v55  ;;  %v765_v38 = vadd.f32 %v764_v33, %v763_v23  ;;  %v761_v6 = vadd.f32 %v760_v48, %v759_v54  ;;  %v1029_v59 = vld [vmem:[%s2098_s11] sm:$0xff]  ;;  %1117 = vmatprep.subr.mxu0 %v1048_v20 }
 0x3f2   :  { %v1045_v24 = vunpack.c.l.bf16 %v1029_v59  ;;  %v1046_v51 = vunpack.c.h.bf16 %v1029_v59  ;;  %1118 = vmatpush1.msra.mxu0 %v1047_v11 }
 0x3f3   :  { %v774_v53 = vrot.slane %v741_v49, 4  ;;  %v770_v25 = vrot.slane %v769_v52, 2  ;;  %v766_v61 = vrot.slane %v765_v38, 1  ;;  %v950_v14 = vsel %vm482_vm2, %v761_v6, %v949_v16 }
 0x3f4   :  { %v729_v34 = vpop.permute.xlu0 %728  ;;  %1119 = vmatprep.subr.mxu0 %v1046_v51 }
 0x3f5   :  { %v775_v50 = vadd.f32 %v774_v53, %v741_v49  ;;  %v742_v36 = vmul.f32 %v729_v34, %v1788_v56  ;;  %v771_v26 = vadd.f32 %v770_v25, %v769_v52  ;;  %v767_v28 = vadd.f32 %v766_v61, %v765_v38  ;;  %1120 = vmatpush1.msra.mxu0 %v1045_v24  ;;  %v1176_v49 = vld [vmem:[%s2100_s10] ss:$0 sm:$0xff] }
 0x3f7   :  { %v776_v39 = vrot.slane %v775_v50, 2  ;;  %v780_v43 = vrot.slane %v742_v36, 4  ;;  %v772_v63 = vrot.slane %v771_v26, 1  ;;  %v951_v17 = vsel %vm484_vm3, %v767_v28, %v950_v14 }
 0x3f8   :  { %v734_v0 = vpop.permute.xlu0 %733 }
 0x3f9   :  { %v777_v45 = vadd.f32 %v776_v39, %v775_v50  ;;  %v781_v55 = vadd.f32 %v780_v43, %v742_v36  ;;  %v743_v46 = vmul.f32 %v734_v0, %v1795_v57  ;;  %v773_v12 = vadd.f32 %v772_v63, %v771_v26 }
 0x3fa   :  { %v1082_v50 = vrot.slane %v1077_v35, %v1807_v1  ;;  %v1086_v36 = vrot.slane %v1077_v35, %v1846_v40 }
 0x3fb   :  { %v782_v62 = vrot.slane %v781_v55, 2  ;;  %v786_v27 = vrot.slane %v743_v46, 4  ;;  %v778_v56 = vrot.slane %v777_v45, 1  ;;  %v952_v41 = vsel %vm486_vm4, %v773_v12, %v951_v17 }
 0x3fd   :  { %v783_v4 = vadd.f32 %v782_v62, %v781_v55  ;;  %v787_v5 = vadd.f32 %v786_v27, %v743_v46  ;;  %v779_v13 = vadd.f32 %v778_v56, %v777_v45 }
 0x3ff   :  { %v784_v9 = vrot.slane %v783_v4, 1  ;;  %v788_v10 = vrot.slane %v787_v5, 2  ;;  %v953_v42 = vsel %vm488_vm5, %v779_v13, %v952_v41 }
 0x401   :  { %v789_v57 = vadd.f32 %v788_v10, %v787_v5  ;;  %v785_v15 = vadd.f32 %v784_v9, %v783_v4 }
 0x403   :  { %v790_v18 = vrot.slane %v789_v57, 1  ;;  %v954_v47 = vsel %vm490_vm6, %v785_v15, %v953_v42 }
 0x405   :  { %v791_v21 = vadd.f32 %v790_v18, %v789_v57 }
 0x407   :  { %v955_v22 = vsel %vm492_vm7, %v791_v21, %v954_v47 }
 0x408   :  { %1555 = vmatmul.mubr.f32.vlgmr.msra.gmra.mxu1 %v955_v22 }
 0x443   :  { %v897_v7 = vpop.f32.mrf.mxu0 }
 0x444   :  { %v898_v52 = vadd.f32 %v1175_v30, %v897_v7 }
 0x445   :  { %v1521_v23 = vpop.f32.mrf.mxu0 }
 0x446   :  { %v901_v32 = vmax.f32 %v898_v52, 0.0 }
 0x4c8   :  { %v1023_v31 = vpop.f32.mrf.mxu1 }
 0x4c9   :  { %v1024_v33 = vadd.f32 %v1176_v49, %v1023_v31 }
 0x4ca   :  { %v1556_v53 = vpop.f32.mrf.mxu1 }
 0x4cb   :  { %v1027_v25 = vmax.f32 %v1024_v33, 0.0 }
 0x4cd   :  { %v1028_v34 = vmul.f32 %v1027_v25, %v901_v32 }
 0x4cf   :  { %1162 = vst [vmem:[%s2101_s13] sm:$0xff] %v1028_v34  ;;  %1154 = vmatmul.mubr.f32.vlgmr.msra.gmra.mxu0 %v1028_v34 }
 0x58f   :  { %v1155_v54 = vpop.f32.mrf.mxu0 }
 0x590   :  { %v1156_v37 = vadd.f32 %v1155_v54, %v1082_v50 }
 0x591   :  { %v1157_v38 = vpop.f32.mrf.mxu0 }
 0x592   :  { %v1160_v39 = vmax.f32 %v1156_v37, 0.0  ;;  %v1158_v43 = vadd.f32 %v1157_v38, %v1086_v36 }
 0x594   :  { %1163 = vst [vmem:[%s2103_s14] sm:$0xff] %v1160_v39  ;;  %v1161_v26 = vmax.f32 %v1158_v43, 0.0 }
 0x596   :  { %1164 = vst [vmem:[%s2103_s14 + $0x8] sm:$0xff] %v1161_v26 }

// kernel: vqae_forward.12
= control target key start
LH: loop header
LB: loop body
LE: loop exit
PB: predicated region body
PF: predicated region fallthrough
CT: control target
= control target key end

     0   :  { %s693_s12 = smov 0   ;;  %s695_s13 = smov 0   ;;  %s834_s0 = inlined_call_operand.vmem [shape: f32[8,8,512], index: 0, kind: input, shape index: {}]   ;;  %s835_s1 = inlined_call_operand.vmem [shape: bf16[128,512], index: 1, kind: input, shape index: {}]   ;;  %s836_s2 = inlined_call_operand.vmem [shape: f32[1,512], index: 2, kind: input, shape index: {}]   ;;  %s837_s3 = inlined_call_operand.vmem [shape: f32[8,8,128], index: 3, kind: output, shape index: {}]  }
   0x1   :  { %s697_s14 = smov 0  }
   0x2 LB: > { %s22_s15 = sadd.s32 1, %s665_s13  ;;  %p594_p0 = scmp.ge.s32.totalorder %s669_s14, 1  ;;  %s669_s14 = sphi %s697_s14, %s13_s14   ;;  %s665_s13 = sphi %s695_s13, %s839_s13   ;;  %s661_s12 = sphi %s693_s12, %s838_s12  }
   0x3   : > { %p23_p1 = scmp.ge.s32.totalorder %s22_s15, 8  ;;  %p157_p2 = scmp.lt.s32.totalorder %s669_s14, 9 }
   0x5   : > { %s841_s15 = smov (%p23_p1, %s22_s15), 0  ;;  %p158_p3 = pnand %p594_p0, %p157_p2 }
   0x6   : > { %p187_p4 = scmp.lt.s32.totalorder (!%p158_p3), %s661_s12, 7  ;;  %p598_p5 = scmp.ne.s32.totalorder (!%p158_p3), %s661_s12, 0 }
   0x7   : > { %161 = sbr.rel (%p158_p3) target bundleno = 307 (0x133), region = 32 }
   0xc   : > { %s188_s16 = scalar_select %p187_p4, %s661_s12, 7 }
   0xd   : > { %206 = sbr.rel (%p598_p5) target bundleno = 20 (0x14), region = 36 }
   0xe   : > { %s604_s17 = sshll.u32 %s188_s16, 5  ;;  %s597_s18 = sshll.u32 %s188_s16, 3 }
   0xf   : > { %s714_s21 = scalar_lea.vmem %s834_s0, %s604_s17  ;;  %s719_s24 = scalar_lea.vmem %s837_s3, %s597_s18 }
  0x12   : > { %v671_v0 = vmov 0.0  }
  0x13   : > { %207 = vst [vmem:[#allocation2] sm:$0xff] %v671_v0  ;;  %208 = vst [vmem:[#allocation3] sm:$0xff] %v671_v0 }
  0x14 PF: > { %v245_v1 = vld [vmem:[%s835_s1 + $0xf0] sm:$0xff]  ;;  %v243_v2 = vld [vmem:[%s835_s1 + $0xe0] sm:$0xff]  ;;  %v672_v7 = vmov 0.0   ;;  %v246_v11 = vld [vmem:[%s835_s1 + $0xf8] sm:$0xff] }
  0x15   : > { %v241_v3 = vld [vmem:[%s835_s1 + $0xd0] sm:$0xff]  ;;  %v308_v4 = vunpack.c.h.bf16 %v245_v1  ;;  %v307_v5 = vunpack.c.l.bf16 %v245_v1  ;;  %v304_v6 = vunpack.c.h.bf16 %v243_v2  ;;  %375 = vmatprep.mubr.f32.mxu0 %v672_v7  ;;  %446 = vmatprep.mubr.f32.mxu1 %v672_v7  ;;  %v303_v8 = vunpack.c.l.bf16 %v243_v2  ;;  %v239_v9 = vld [vmem:[%s835_s1 + $0xc0] sm:$0xff]  ;;  %v244_v12 = vld [vmem:[%s835_s1 + $0xe8] sm:$0xff] }
  0x16   : > { %v300_v10 = vunpack.c.h.bf16 %v241_v3  ;;  %v299_v13 = vunpack.c.l.bf16 %v241_v3  ;;  %v237_v14 = vld [vmem:[%s835_s1 + $0xb0] sm:$0xff]  ;;  %v242_v15 = vld [vmem:[%s835_s1 + $0xd8] sm:$0xff]  ;;  %v296_v16 = vunpack.c.h.bf16 %v239_v9  ;;  %v310_v17 = vunpack.c.h.bf16 %v246_v11  ;;  %v235_v20 = vld [vmem:[%s835_s1 + $0xa0] sm:$0xff] }
  0x17   : > { %311 = vmatprep.subr.mxu0 %v308_v4  ;;  %v309_v18 = vunpack.c.l.bf16 %v246_v11  ;;  %v295_v19 = vunpack.c.l.bf16 %v239_v9  ;;  %v306_v21 = vunpack.c.h.bf16 %v244_v12  ;;  %v305_v22 = vunpack.c.l.bf16 %v244_v12  ;;  %v240_v23 = vld [vmem:[%s835_s1 + $0xc8] sm:$0xff]  ;;  %v233_v27 = vld [vmem:[%s835_s1 + $0x90] sm:$0xff]  ;;  %v238_v29 = vld [vmem:[%s835_s1 + $0xb8] sm:$0xff] }
  0x18   : > { %312 = vmatpush1.msra.mxu0 %v307_v5  ;;  %v292_v24 = vunpack.c.h.bf16 %v237_v14  ;;  %382 = vmatprep.subr.mxu1 %v310_v17  ;;  %v302_v25 = vunpack.c.h.bf16 %v242_v15  ;;  %v291_v26 = vunpack.c.l.bf16 %v237_v14  ;;  %v301_v28 = vunpack.c.l.bf16 %v242_v15  ;;  %v231_v33 = vld [vmem:[%s835_s1 + $0x80] sm:$0xff]  ;;  %v236_v35 = vld [vmem:[%s835_s1 + $0xa8] sm:$0xff]  ;;  %v229_v39 = vld [vmem:[%s835_s1 + $0x70] sm:$0xff] }
  0x19   : > { %313 = vmatprep.subr.mxu0 %v304_v6  ;;  %383 = vmatpush1.msra.mxu1 %v309_v18  ;;  %v288_v30 = vunpack.c.h.bf16 %v235_v20  ;;  %v298_v31 = vunpack.c.h.bf16 %v240_v23  ;;  %v287_v32 = vunpack.c.l.bf16 %v235_v20  ;;  %v297_v34 = vunpack.c.l.bf16 %v240_v23  ;;  %v234_v41 = vld [vmem:[%s835_s1 + $0x98] sm:$0xff]  ;;  %v227_v45 = vld [vmem:[%s835_s1 + $0x60] sm:$0xff]  ;;  %v232_v47 = vld [vmem:[%s835_s1 + $0x88] sm:$0xff] }
  0x1a   : > { %314 = vmatpush1.msra.mxu0 %v303_v8  ;;  %384 = vmatprep.subr.mxu1 %v306_v21  ;;  %v284_v36 = vunpack.c.h.bf16 %v233_v27  ;;  %v294_v37 = vunpack.c.h.bf16 %v238_v29  ;;  %v283_v38 = vunpack.c.l.bf16 %v233_v27  ;;  %v293_v40 = vunpack.c.l.bf16 %v238_v29  ;;  %v225_v51 = vld [vmem:[%s835_s1 + $0x50] sm:$0xff]  ;;  %v230_v53 = vld [vmem:[%s835_s1 + $0x78] sm:$0xff]  ;;  %v223_v57 = vld [vmem:[%s835_s1 + $0x40] sm:$0xff] }
  0x1b   : > { %315 = vmatprep.subr.mxu0 %v300_v10  ;;  %385 = vmatpush1.msra.mxu1 %v305_v22  ;;  %v280_v42 = vunpack.c.h.bf16 %v231_v33  ;;  %v290_v43 = vunpack.c.h.bf16 %v236_v35  ;;  %v279_v44 = vunpack.c.l.bf16 %v231_v33  ;;  %v289_v46 = vunpack.c.l.bf16 %v236_v35  ;;  %v228_v59 = vld [vmem:[%s835_s1 + $0x68] sm:$0xff]  ;;  %v221_v63 = vld [vmem:[%s835_s1 + $0x30] sm:$0xff]  ;;  %v226_v1 = vld [vmem:[%s835_s1 + $0x58] sm:$0xff] }
  0x1c   : > { %316 = vmatpush1.msra.mxu0 %v299_v13  ;;  %386 = vmatprep.subr.mxu1 %v302_v25  ;;  %v276_v48 = vunpack.c.h.bf16 %v229_v39  ;;  %v286_v49 = vunpack.c.h.bf16 %v234_v41  ;;  %v275_v50 = vunpack.c.l.bf16 %v229_v39  ;;  %v285_v52 = vunpack.c.l.bf16 %v234_v41  ;;  %v219_v5 = vld [vmem:[%s835_s1 + $0x20] sm:$0xff]  ;;  %v224_v7 = vld [vmem:[%s835_s1 + $0x48] sm:$0xff]  ;;  %v217_v11 = vld [vmem:[%s835_s1 + $0x10] sm:$0xff] }
  0x1d   : > { %317 = vmatprep.subr.mxu0 %v296_v16  ;;  %387 = vmatpush1.msra.mxu1 %v301_v28  ;;  %v272_v54 = vunpack.c.h.bf16 %v227_v45  ;;  %v282_v55 = vunpack.c.h.bf16 %v232_v47  ;;  %v271_v56 = vunpack.c.l.bf16 %v227_v45  ;;  %v281_v58 = vunpack.c.l.bf16 %v232_v47  ;;  %v222_v13 = vld [vmem:[%s835_s1 + $0x38] sm:$0xff]  ;;  %v215_v17 = vld [vmem:[%s835_s1] sm:$0xff]  ;;  %v216_v29 = vld [vmem:[%s835_s1 + $0x8] sm:$0xff] }
  0x1e   : > { %318 = vmatpush1.msra.mxu0 %v295_v19  ;;  %388 = vmatprep.subr.mxu1 %v298_v31  ;;  %v268_v60 = vunpack.c.h.bf16 %v225_v51  ;;  %v278_v61 = vunpack.c.h.bf16 %v230_v53  ;;  %v267_v62 = vunpack.c.l.bf16 %v225_v51  ;;  %v277_v0 = vunpack.c.l.bf16 %v230_v53  ;;  %v220_v19 = vld [vmem:[%s835_s1 + $0x28] sm:$0xff]  ;;  %v213_v31 = vld [vmem:[#allocation2] sm:$0xff] }
  0x1f   : > { %319 = vmatprep.subr.mxu0 %v292_v24  ;;  %389 = vmatpush1.msra.mxu1 %v297_v34  ;;  %v264_v2 = vunpack.c.h.bf16 %v223_v57  ;;  %v274_v3 = vunpack.c.h.bf16 %v228_v59  ;;  %v263_v4 = vunpack.c.l.bf16 %v223_v57  ;;  %v273_v6 = vunpack.c.l.bf16 %v228_v59  ;;  %v218_v24 = vld [vmem:[%s835_s1 + $0x18] sm:$0xff]  ;;  %v211_v57 = vld [vmem:[%s714_s21 + $0x10] sm:$0xff] }
  0x20   : > { %320 = vmatpush1.msra.mxu0 %v291_v26  ;;  %390 = vmatprep.subr.mxu1 %v294_v37  ;;  %v260_v8 = vunpack.c.h.bf16 %v221_v63  ;;  %v270_v9 = vunpack.c.h.bf16 %v226_v1  ;;  %v259_v10 = vunpack.c.l.bf16 %v221_v63  ;;  %v269_v12 = vunpack.c.l.bf16 %v226_v1 }
  0x21   : > { %321 = vmatprep.subr.mxu0 %v288_v30  ;;  %391 = vmatpush1.msra.mxu1 %v293_v40  ;;  %v256_v14 = vunpack.c.h.bf16 %v219_v5  ;;  %v266_v15 = vunpack.c.h.bf16 %v224_v7  ;;  %v255_v16 = vunpack.c.l.bf16 %v219_v5  ;;  %v265_v18 = vunpack.c.l.bf16 %v224_v7  ;;  %v209_v40 = vld [vmem:[%s714_s21] sm:$0xff] }
  0x22   : > { %322 = vmatpush1.msra.mxu0 %v287_v32  ;;  %392 = vmatprep.subr.mxu1 %v290_v43  ;;  %v252_v20 = vunpack.c.h.bf16 %v217_v11  ;;  %v262_v21 = vunpack.c.h.bf16 %v222_v13  ;;  %v251_v22 = vunpack.c.l.bf16 %v217_v11  ;;  %v261_v23 = vunpack.c.l.bf16 %v222_v13  ;;  %v210_v43 = vld [vmem:[%s714_s21 + $0x8] sm:$0xff] }
  0x23   : > { %323 = vmatprep.subr.mxu0 %v284_v36  ;;  %393 = vmatpush1.msra.mxu1 %v289_v46  ;;  %v248_v25 = vunpack.c.h.bf16 %v215_v17  ;;  %v258_v26 = vunpack.c.h.bf16 %v220_v19  ;;  %v247_v27 = vunpack.c.l.bf16 %v215_v17  ;;  %v257_v28 = vunpack.c.l.bf16 %v220_v19 }
  0x24   : > { %324 = vmatpush1.msra.mxu0 %v283_v38  ;;  %394 = vmatprep.subr.mxu1 %v286_v49  ;;  %v254_v30 = vunpack.c.h.bf16 %v218_v24  ;;  %v253_v32 = vunpack.c.l.bf16 %v218_v24  ;;  %v250_v33 = vunpack.c.h.bf16 %v216_v29  ;;  %v249_v34 = vunpack.c.l.bf16 %v216_v29  ;;  %v457_v38 = vld [vmem:[%s836_s2] sm:$0xf] }
  0x25   : > { %325 = vmatprep.subr.mxu0 %v280_v42  ;;  %395 = vmatpush1.msra.mxu1 %v285_v52  ;;  %v459_v35 = vlaneseq }
  0x26   : > { %326 = vmatpush1.msra.mxu0 %v279_v44  ;;  %396 = vmatprep.subr.mxu1 %v282_v55 }
  0x27   : > { %327 = vmatprep.subr.mxu0 %v276_v48  ;;  %397 = vmatpush1.msra.mxu1 %v281_v58  ;;  %v460_v36 = vshrl.u32 %v459_v35, 7 }
  0x28   : > { %328 = vmatpush1.msra.mxu0 %v275_v50  ;;  %398 = vmatprep.subr.mxu1 %v278_v61 }
  0x29   : > { %329 = vmatprep.subr.mxu0 %v272_v54  ;;  %399 = vmatpush1.msra.mxu1 %v277_v0  ;;  %v461_v37 = vsub.s32 0, %v460_v36  ;;  %v465_v39 = vsub.s32 1, %v460_v36  ;;  %v473_v52 = vsub.s32 3, %v460_v36  ;;  %v212_v54 = vld [vmem:[%s714_s21 + $0x18] sm:$0xff] }
  0x2a   : > { %330 = vmatpush1.msra.mxu0 %v271_v56  ;;  %400 = vmatprep.subr.mxu1 %v274_v3  ;;  %v469_v56 = vsub.s32 2, %v460_v36 }
  0x2b   : > { %331 = vmatprep.subr.mxu0 %v268_v60  ;;  %401 = vmatpush1.msra.mxu1 %v273_v6  ;;  %v462_v41 = vrot.slane %v457_v38, %v461_v37  ;;  %v466_v45 = vrot.slane %v457_v38, %v465_v39  ;;  %v474_v59 = vrot.slane %v457_v38, %v473_v52 }
  0x2c   : > { %332 = vmatpush1.msra.mxu0 %v267_v62  ;;  %402 = vmatprep.subr.mxu1 %v270_v9  ;;  %v470_v61 = vrot.slane %v457_v38, %v469_v56 }
  0x2d   : > { %333 = vmatprep.subr.mxu0 %v264_v2  ;;  %403 = vmatpush1.msra.mxu1 %v269_v12 }
  0x2e   : > { %334 = vmatpush1.msra.mxu0 %v263_v4  ;;  %404 = vmatprep.subr.mxu1 %v266_v15 }
  0x2f   : > { %335 = vmatprep.subr.mxu0 %v260_v8  ;;  %405 = vmatpush1.msra.mxu1 %v265_v18  ;;  %v214_v8 = vld [vmem:[#allocation3] sm:$0xff] }
  0x30   : > { %336 = vmatpush1.msra.mxu0 %v259_v10  ;;  %406 = vmatprep.subr.mxu1 %v262_v21 }
  0x31   : > { %337 = vmatprep.subr.mxu0 %v256_v14  ;;  %407 = vmatpush1.msra.mxu1 %v261_v23 }
  0x32   : > { %338 = vmatpush1.msra.mxu0 %v255_v16  ;;  %408 = vmatprep.subr.mxu1 %v258_v26 }
  0x33   : > { %339 = vmatprep.subr.mxu0 %v252_v20  ;;  %409 = vmatpush1.msra.mxu1 %v257_v28 }
  0x34   : > { %340 = vmatpush1.msra.mxu0 %v251_v22  ;;  %410 = vmatprep.subr.mxu1 %v254_v30 }
  0x35   : > { %341 = vmatprep.subr.mxu0 %v248_v25  ;;  %411 = vmatpush1.msra.mxu1 %v253_v32 }
  0x36   : > { %342 = vmatpush1.msra.mxu0 %v247_v27  ;;  %412 = vmatprep.subr.mxu1 %v250_v33 }
  0x37   : > { %376 = vmatmul.mubr.f32.vlgmr.msra.gmra.mxu0 %v213_v31  ;;  %413 = vmatpush1.msra.mxu1 %v249_v34 }
  0x38   : > { %447 = vmatmul.mubr.f32.vlgmr.msra.gmra.mxu1 %v213_v31 }
  0xf7   : > { %v377_v42 = vpop.f32.mrf.mxu0 }
  0xf8   : > { %v453_v44 = vadd.f32 %v377_v42, %v209_v40  ;;  %v448_v49 = vpop.f32.mrf.mxu1 }
  0xf9   : > { %v379_v46 = vpop.f32.mrf.mxu0  ;;  %v455_v60 = vadd.f32 %v448_v49, %v211_v57 }
  0xfa   : > { %v479_v47 = vadd.f32 %v462_v41, %v453_v44  ;;  %v454_v48 = vadd.f32 %v379_v46, %v210_v43  ;;  %v450_v55 = vpop.f32.mrf.mxu1 }
  0xfb   : > { %v456_v58 = vadd.f32 %v450_v55, %v212_v54  ;;  %v481_v63 = vadd.f32 %v470_v61, %v455_v60 }
  0xfc   : > { %v599_v50 = vmul.f32 -1.442695, %v479_v47  ;;  %v480_v51 = vadd.f32 %v466_v45, %v454_v48 }
  0xfd   : > { %v482_v62 = vadd.f32 %v474_v59, %v456_v58 }
  0xfe   : > { %631 = vpow2.f32 %v599_v50  ;;  %v600_v53 = vmul.f32 -1.442695, %v480_v51 }
  0xff   : > { %v601_v0 = vmul.f32 -1.442695, %v482_v62 }
 0x100   : > { %633 = vpow2.f32 %v600_v53 }
 0x101   : > { %635 = vtanh.f32 %v481_v63 }
 0x102   : > { %637 = vpow2.f32 %v601_v0 }
 0x10b   : > { %v632_v1 = vpop.eup %631 }
 0x10c   : > { %v486_v2 = vadd.f32 1.0, %v632_v1 }
 0x10d   : > { %v634_v3 = vpop.eup %633 }
 0x10e   : > { %639 = vrcp.f32 %v486_v2  ;;  %v492_v4 = vadd.f32 1.0, %v634_v3  ;;  %v636_v5 = vpop.eup %635 }
 0x10f   : > { %v638_v6 = vpop.eup %637 }
 0x110   : > { %641 = vrcp.f32 %v492_v4  ;;  %v499_v10 = vadd.f32 1.0, %v638_v6 }
 0x112   : > { %643 = vrcp.f32 %v499_v10 }
 0x11b   : > { %v640_v7 = vpop.eup %639 }
 0x11c   : > { %v503_v12 = vmul.f32 %v640_v7, %v636_v5 }
 0x11d   : > { %v642_v9 = vpop.eup %641 }
 0x11e   : > { %v502_v11 = vmul.f32 %v642_v9, %v214_v8 }
 0x11f   : > { %v644_v14 = vpop.eup %643 }
 0x120   : > { %v504_v13 = vadd.f32 %v503_v12, %v502_v11 }
 0x122   : > { %645 = vtanh.f32 %v504_v13  ;;  %508 = vst [vmem:[#allocation3] sm:$0xff] %v504_v13 }
 0x12f   : > { %v646_v15 = vpop.eup %645 }
 0x130   : > { %v506_v16 = vmul.f32 %v646_v15, %v644_v14 }
 0x132   : > { %507 = vst [vmem:[#allocation2] sm:$0xff] %v506_v16  ;;  %509 = vst [vmem:[%s719_s24] sm:$0xff] %v506_v16 }
 0x133 PF: > { %s13_s14 = sadd.s32 1, %s669_s14   ;;  %s838_s12 = smov %s665_s13 }
 0x134   : > { %p10_p6 = scmp.ge.s32.totalorder %s13_s14, 10   ;;  %s839_s13 = smov %s841_s15 }
 0x136   :  { %12 = sbr.rel (!%p10_p6) target bundleno = 2 (0x2), region = 66 }

// kernel: vqae_forward.11
= control target key start
LH: loop header
LB: loop body
LE: loop exit
PB: predicated region body
PF: predicated region fallthrough
CT: control target
= control target key end

     0   :  { %v403_v3 = vmov 0.0   ;;  %s699_s1 = inlined_call_operand.vmem [shape: bf16[128,512], index: 1, kind: input, shape index: {}]   ;;  %s700_s0 = inlined_call_operand.vmem [shape: f32[64,128], index: 0, kind: input, shape index: {}]   ;;  %s701_s2 = inlined_call_operand.vmem [shape: f32[1,512], index: 2, kind: input, shape index: {}]   ;;  %s702_s3 = inlined_call_operand.vmem [shape: f32[64,512], index: 3, kind: output, shape index: {}]  }
   0x1   :  { %v52_v0 = vld [vmem:[%s699_s1 + $0xf0] sm:$0xff]  ;;  %v53_v1 = vld [vmem:[%s699_s1 + $0xf8] sm:$0xff]  ;;  %v50_v2 = vld [vmem:[%s699_s1 + $0xe0] sm:$0xff]  ;;  %204 = vmatprep.mubr.f32.mxu0 %v403_v3  ;;  %317 = vmatprep.mubr.f32.mxu1 %v403_v3 }
   0x2   :  { %v115_v4 = vunpack.c.h.bf16 %v52_v0  ;;  %v117_v5 = vunpack.c.h.bf16 %v53_v1  ;;  %v114_v6 = vunpack.c.l.bf16 %v52_v0  ;;  %v116_v7 = vunpack.c.l.bf16 %v53_v1  ;;  %v51_v8 = vld [vmem:[%s699_s1 + $0xe8] sm:$0xff]  ;;  %v48_v9 = vld [vmem:[%s699_s1 + $0xd0] sm:$0xff]  ;;  %v49_v10 = vld [vmem:[%s699_s1 + $0xd8] sm:$0xff] }
   0x3   :  { %v111_v11 = vunpack.c.h.bf16 %v50_v2  ;;  %v113_v12 = vunpack.c.h.bf16 %v51_v8  ;;  %v110_v13 = vunpack.c.l.bf16 %v50_v2  ;;  %v112_v14 = vunpack.c.l.bf16 %v51_v8  ;;  %v46_v15 = vld [vmem:[%s699_s1 + $0xc0] sm:$0xff]  ;;  %v47_v16 = vld [vmem:[%s699_s1 + $0xc8] sm:$0xff]  ;;  %v44_v21 = vld [vmem:[%s699_s1 + $0xb0] sm:$0xff] }
   0x4   :  { %140 = vmatprep.subr.mxu0 %v115_v4  ;;  %253 = vmatprep.subr.mxu1 %v117_v5  ;;  %v107_v17 = vunpack.c.h.bf16 %v48_v9  ;;  %v109_v18 = vunpack.c.h.bf16 %v49_v10  ;;  %v106_v19 = vunpack.c.l.bf16 %v48_v9  ;;  %v108_v20 = vunpack.c.l.bf16 %v49_v10  ;;  %v45_v22 = vld [vmem:[%s699_s1 + $0xb8] sm:$0xff]  ;;  %v42_v27 = vld [vmem:[%s699_s1 + $0xa0] sm:$0xff]  ;;  %v43_v28 = vld [vmem:[%s699_s1 + $0xa8] sm:$0xff] }
   0x5   :  { %141 = vmatpush1.msra.mxu0 %v114_v6  ;;  %254 = vmatpush1.msra.mxu1 %v116_v7  ;;  %v103_v23 = vunpack.c.h.bf16 %v46_v15  ;;  %v105_v24 = vunpack.c.h.bf16 %v47_v16  ;;  %v102_v25 = vunpack.c.l.bf16 %v46_v15  ;;  %v104_v26 = vunpack.c.l.bf16 %v47_v16  ;;  %v40_v33 = vld [vmem:[%s699_s1 + $0x90] sm:$0xff]  ;;  %v41_v34 = vld [vmem:[%s699_s1 + $0x98] sm:$0xff]  ;;  %v38_v39 = vld [vmem:[%s699_s1 + $0x80] sm:$0xff] }
   0x6   :  { %142 = vmatprep.subr.mxu0 %v111_v11  ;;  %255 = vmatprep.subr.mxu1 %v113_v12  ;;  %v99_v29 = vunpack.c.h.bf16 %v44_v21  ;;  %v101_v30 = vunpack.c.h.bf16 %v45_v22  ;;  %v98_v31 = vunpack.c.l.bf16 %v44_v21  ;;  %v100_v32 = vunpack.c.l.bf16 %v45_v22  ;;  %v39_v40 = vld [vmem:[%s699_s1 + $0x88] sm:$0xff]  ;;  %v36_v45 = vld [vmem:[%s699_s1 + $0x70] sm:$0xff]  ;;  %v37_v46 = vld [vmem:[%s699_s1 + $0x78] sm:$0xff] }
   0x7   :  { %143 = vmatpush1.msra.mxu0 %v110_v13  ;;  %256 = vmatpush1.msra.mxu1 %v112_v14  ;;  %v95_v35 = vunpack.c.h.bf16 %v42_v27  ;;  %v97_v36 = vunpack.c.h.bf16 %v43_v28  ;;  %v94_v37 = vunpack.c.l.bf16 %v42_v27  ;;  %v96_v38 = vunpack.c.l.bf16 %v43_v28  ;;  %v34_v51 = vld [vmem:[%s699_s1 + $0x60] sm:$0xff]  ;;  %v35_v52 = vld [vmem:[%s699_s1 + $0x68] sm:$0xff]  ;;  %v32_v57 = vld [vmem:[%s699_s1 + $0x50] sm:$0xff] }
   0x8   :  { %144 = vmatprep.subr.mxu0 %v107_v17  ;;  %257 = vmatprep.subr.mxu1 %v109_v18  ;;  %v91_v41 = vunpack.c.h.bf16 %v40_v33  ;;  %v93_v42 = vunpack.c.h.bf16 %v41_v34  ;;  %v90_v43 = vunpack.c.l.bf16 %v40_v33  ;;  %v92_v44 = vunpack.c.l.bf16 %v41_v34  ;;  %v33_v58 = vld [vmem:[%s699_s1 + $0x58] sm:$0xff]  ;;  %v30_v63 = vld [vmem:[%s699_s1 + $0x40] sm:$0xff]  ;;  %v31_v0 = vld [vmem:[%s699_s1 + $0x48] sm:$0xff] }
   0x9   :  { %145 = vmatpush1.msra.mxu0 %v106_v19  ;;  %258 = vmatpush1.msra.mxu1 %v108_v20  ;;  %v87_v47 = vunpack.c.h.bf16 %v38_v39  ;;  %v89_v48 = vunpack.c.h.bf16 %v39_v40  ;;  %v86_v49 = vunpack.c.l.bf16 %v38_v39  ;;  %v88_v50 = vunpack.c.l.bf16 %v39_v40  ;;  %v28_v6 = vld [vmem:[%s699_s1 + $0x30] sm:$0xff]  ;;  %v29_v7 = vld [vmem:[%s699_s1 + $0x38] sm:$0xff]  ;;  %v26_v12 = vld [vmem:[%s699_s1 + $0x20] sm:$0xff] }
   0xa   :  { %146 = vmatprep.subr.mxu0 %v103_v23  ;;  %259 = vmatprep.subr.mxu1 %v105_v24  ;;  %v83_v53 = vunpack.c.h.bf16 %v36_v45  ;;  %v85_v54 = vunpack.c.h.bf16 %v37_v46  ;;  %v82_v55 = vunpack.c.l.bf16 %v36_v45  ;;  %v84_v56 = vunpack.c.l.bf16 %v37_v46  ;;  %v27_v13 = vld [vmem:[%s699_s1 + $0x28] sm:$0xff]  ;;  %v24_v18 = vld [vmem:[%s699_s1 + $0x10] sm:$0xff]  ;;  %v25_v19 = vld [vmem:[%s699_s1 + $0x18] sm:$0xff] }
   0xb   :  { %147 = vmatpush1.msra.mxu0 %v102_v25  ;;  %260 = vmatpush1.msra.mxu1 %v104_v26  ;;  %v79_v59 = vunpack.c.h.bf16 %v34_v51  ;;  %v81_v60 = vunpack.c.h.bf16 %v35_v52  ;;  %v78_v61 = vunpack.c.l.bf16 %v34_v51  ;;  %v80_v62 = vunpack.c.l.bf16 %v35_v52  ;;  %v22_v24 = vld [vmem:[%s699_s1] sm:$0xff]  ;;  %v23_v25 = vld [vmem:[%s699_s1 + $0x8] sm:$0xff]  ;;  %v20_v40 = vld [vmem:[%s700_s0 + $0x30] sm:$0xff] }
   0xc   :  { %148 = vmatprep.subr.mxu0 %v99_v29  ;;  %261 = vmatprep.subr.mxu1 %v101_v30  ;;  %v75_v1 = vunpack.c.h.bf16 %v32_v57  ;;  %v77_v2 = vunpack.c.h.bf16 %v33_v58  ;;  %v74_v4 = vunpack.c.l.bf16 %v32_v57  ;;  %v76_v5 = vunpack.c.l.bf16 %v33_v58  ;;  %v14_v34 = vld [vmem:[%s700_s0] sm:$0xff]  ;;  %v19_v39 = vld [vmem:[%s700_s0 + $0x28] sm:$0xff] }
   0xd   :  { %149 = vmatpush1.msra.mxu0 %v98_v31  ;;  %262 = vmatpush1.msra.mxu1 %v100_v32  ;;  %v71_v8 = vunpack.c.h.bf16 %v30_v63  ;;  %v73_v9 = vunpack.c.h.bf16 %v31_v0  ;;  %v70_v10 = vunpack.c.l.bf16 %v30_v63  ;;  %v72_v11 = vunpack.c.l.bf16 %v31_v0  ;;  %v118_v46 = vld [vmem:[%s701_s2] sm:$0xf] }
   0xe   :  { %150 = vmatprep.subr.mxu0 %v95_v35  ;;  %263 = vmatprep.subr.mxu1 %v97_v36  ;;  %v67_v14 = vunpack.c.h.bf16 %v28_v6  ;;  %v69_v15 = vunpack.c.h.bf16 %v29_v7  ;;  %v66_v16 = vunpack.c.l.bf16 %v28_v6  ;;  %v68_v17 = vunpack.c.l.bf16 %v29_v7  ;;  %v15_v35 = vld [vmem:[%s700_s0 + $0x8] sm:$0xff]  ;;  %v16_v36 = vld [vmem:[%s700_s0 + $0x10] sm:$0xff] }
   0xf   :  { %151 = vmatpush1.msra.mxu0 %v94_v37  ;;  %264 = vmatpush1.msra.mxu1 %v96_v38  ;;  %v63_v20 = vunpack.c.h.bf16 %v26_v12  ;;  %v65_v21 = vunpack.c.h.bf16 %v27_v13  ;;  %v62_v22 = vunpack.c.l.bf16 %v26_v12  ;;  %v64_v23 = vunpack.c.l.bf16 %v27_v13  ;;  %v17_v37 = vld [vmem:[%s700_s0 + $0x18] sm:$0xff]  ;;  %v18_v38 = vld [vmem:[%s700_s0 + $0x20] sm:$0xff] }
  0x10   :  { %152 = vmatprep.subr.mxu0 %v91_v41  ;;  %265 = vmatprep.subr.mxu1 %v93_v42  ;;  %v59_v26 = vunpack.c.h.bf16 %v24_v18  ;;  %v61_v27 = vunpack.c.h.bf16 %v25_v19  ;;  %v58_v28 = vunpack.c.l.bf16 %v24_v18  ;;  %v60_v29 = vunpack.c.l.bf16 %v25_v19  ;;  %v21_v41 = vld [vmem:[%s700_s0 + $0x38] sm:$0xff] }
  0x11   :  { %153 = vmatpush1.msra.mxu0 %v90_v43  ;;  %266 = vmatpush1.msra.mxu1 %v92_v44  ;;  %v55_v30 = vunpack.c.h.bf16 %v22_v24  ;;  %v57_v31 = vunpack.c.h.bf16 %v23_v25  ;;  %v54_v32 = vunpack.c.l.bf16 %v22_v24  ;;  %v56_v33 = vunpack.c.l.bf16 %v23_v25 }
  0x12   :  { %154 = vmatprep.subr.mxu0 %v87_v47  ;;  %267 = vmatprep.subr.mxu1 %v89_v48  ;;  %v120_v42 = vlaneseq }
  0x13   :  { %155 = vmatpush1.msra.mxu0 %v86_v49  ;;  %268 = vmatpush1.msra.mxu1 %v88_v50 }
  0x14   :  { %156 = vmatprep.subr.mxu0 %v83_v53  ;;  %269 = vmatprep.subr.mxu1 %v85_v54  ;;  %v121_v43 = vshrl.u32 %v120_v42, 7 }
  0x15   :  { %157 = vmatpush1.msra.mxu0 %v82_v55  ;;  %270 = vmatpush1.msra.mxu1 %v84_v56 }
  0x16   :  { %158 = vmatprep.subr.mxu0 %v79_v59  ;;  %271 = vmatprep.subr.mxu1 %v81_v60  ;;  %v122_v44 = vsub.s32 0, %v121_v43  ;;  %v130_v45 = vsub.s32 2, %v121_v43  ;;  %v126_v47 = vsub.s32 1, %v121_v43  ;;  %v134_v48 = vsub.s32 3, %v121_v43 }
  0x17   :  { %159 = vmatpush1.msra.mxu0 %v78_v61  ;;  %272 = vmatpush1.msra.mxu1 %v80_v62 }
  0x18   :  { %160 = vmatprep.subr.mxu0 %v75_v1  ;;  %273 = vmatprep.subr.mxu1 %v77_v2  ;;  %v563_v49 = vrot.slane %v118_v46, %v122_v44  ;;  %v565_v50 = vrot.slane %v118_v46, %v130_v45  ;;  %v569_v51 = vrot.slane %v118_v46, %v134_v48 }
  0x19   :  { %161 = vmatpush1.msra.mxu0 %v74_v4  ;;  %274 = vmatpush1.msra.mxu1 %v76_v5 }
  0x1a   :  { %162 = vmatprep.subr.mxu0 %v71_v8  ;;  %275 = vmatprep.subr.mxu1 %v73_v9 }
  0x1b   :  { %163 = vmatpush1.msra.mxu0 %v70_v10  ;;  %276 = vmatpush1.msra.mxu1 %v72_v11 }
  0x1c   :  { %164 = vmatprep.subr.mxu0 %v67_v14  ;;  %277 = vmatprep.subr.mxu1 %v69_v15 }
  0x1d   :  { %165 = vmatpush1.msra.mxu0 %v66_v16  ;;  %278 = vmatpush1.msra.mxu1 %v68_v17 }
  0x1e   :  { %166 = vmatprep.subr.mxu0 %v63_v20  ;;  %279 = vmatprep.subr.mxu1 %v65_v21 }
  0x1f   :  { %167 = vmatpush1.msra.mxu0 %v62_v22  ;;  %280 = vmatpush1.msra.mxu1 %v64_v23 }
  0x20   :  { %168 = vmatprep.subr.mxu0 %v59_v26  ;;  %281 = vmatprep.subr.mxu1 %v61_v27 }
  0x21   :  { %169 = vmatpush1.msra.mxu0 %v58_v28  ;;  %282 = vmatpush1.msra.mxu1 %v60_v29 }
  0x22   :  { %170 = vmatprep.subr.mxu0 %v55_v30  ;;  %283 = vmatprep.subr.mxu1 %v57_v31 }
  0x23   :  { %171 = vmatpush1.msra.mxu0 %v54_v32  ;;  %284 = vmatpush1.msra.mxu1 %v56_v33 }
  0x24   :  { %205 = vmatmul.mubr.f32.vlgmr.msra.gmra.mxu0 %v14_v34  ;;  %318 = vmatmul.mubr.f32.vlgmr.msra.gmra.mxu1 %v14_v34 }
  0x25   :  { %210 = vmatprep.mubr.f32.mxu0 %v403_v3  ;;  %323 = vmatprep.mubr.f32.mxu1 %v403_v3 }
  0x28   :  { %211 = vmatmul.mubr.f32.gmra.mxu0 %v15_v35  ;;  %324 = vmatmul.mubr.f32.gmra.mxu1 %v15_v35 }
  0x29   :  { %216 = vmatprep.mubr.f32.mxu0 %v403_v3  ;;  %329 = vmatprep.mubr.f32.mxu1 %v403_v3 }
  0x2c   :  { %217 = vmatmul.mubr.f32.gmra.mxu0 %v16_v36  ;;  %330 = vmatmul.mubr.f32.gmra.mxu1 %v16_v36 }
  0x2d   :  { %222 = vmatprep.mubr.f32.mxu0 %v403_v3  ;;  %335 = vmatprep.mubr.f32.mxu1 %v403_v3 }
  0x30   :  { %223 = vmatmul.mubr.f32.gmra.mxu0 %v17_v37  ;;  %336 = vmatmul.mubr.f32.gmra.mxu1 %v17_v37 }
  0x31   :  { %228 = vmatprep.mubr.f32.mxu0 %v403_v3  ;;  %341 = vmatprep.mubr.f32.mxu1 %v403_v3 }
  0x34   :  { %229 = vmatmul.mubr.f32.gmra.mxu0 %v18_v38  ;;  %342 = vmatmul.mubr.f32.gmra.mxu1 %v18_v38 }
  0x35   :  { %234 = vmatprep.mubr.f32.mxu0 %v403_v3  ;;  %347 = vmatprep.mubr.f32.mxu1 %v403_v3 }
  0x38   :  { %235 = vmatmul.mubr.f32.gmra.mxu0 %v19_v39  ;;  %348 = vmatmul.mubr.f32.gmra.mxu1 %v19_v39 }
  0x39   :  { %240 = vmatprep.mubr.f32.mxu0 %v403_v3  ;;  %353 = vmatprep.mubr.f32.mxu1 %v403_v3 }
  0x3c   :  { %241 = vmatmul.mubr.f32.gmra.mxu0 %v20_v40  ;;  %354 = vmatmul.mubr.f32.gmra.mxu1 %v20_v40 }
  0x3d   :  { %246 = vmatprep.mubr.f32.mxu0 %v403_v3  ;;  %359 = vmatprep.mubr.f32.mxu1 %v403_v3  ;;  %v567_v3 = vrot.slane %v118_v46, %v126_v47 }
  0x40   :  { %247 = vmatmul.mubr.f32.gmra.mxu0 %v21_v41  ;;  %360 = vmatmul.mubr.f32.gmra.mxu1 %v21_v41 }
  0xe4   :  { %v206_v52 = vpop.f32.mrf.mxu0  ;;  %v319_v53 = vpop.f32.mrf.mxu1 }
  0xe5   :  { %v207_v54 = vadd.f32 %v206_v52, %v563_v49  ;;  %v320_v55 = vadd.f32 %v319_v53, %v565_v50 }
  0xe6   :  { %v208_v56 = vpop.f32.mrf.mxu0  ;;  %v321_v57 = vpop.f32.mrf.mxu1 }
  0xe7   :  { %366 = vst [vmem:[%s702_s3] sm:$0xff] %v207_v54  ;;  %368 = vst [vmem:[%s702_s3 + $0x10] sm:$0xff] %v320_v55  ;;  %v209_v58 = vadd.f32 %v208_v56, %v567_v3  ;;  %v322_v59 = vadd.f32 %v321_v57, %v569_v51 }
  0xe8   :  { %v212_v60 = vpop.f32.mrf.mxu0  ;;  %v325_v61 = vpop.f32.mrf.mxu1 }
  0xe9   :  { %367 = vst [vmem:[%s702_s3 + $0x8] sm:$0xff] %v209_v58  ;;  %369 = vst [vmem:[%s702_s3 + $0x18] sm:$0xff] %v322_v59  ;;  %v213_v62 = vadd.f32 %v212_v60, %v563_v49  ;;  %v326_v63 = vadd.f32 %v325_v61, %v565_v50 }
  0xea   :  { %v214_v0 = vpop.f32.mrf.mxu0  ;;  %v327_v1 = vpop.f32.mrf.mxu1 }
  0xeb   :  { %370 = vst [vmem:[%s702_s3 + $0x20] sm:$0xff] %v213_v62  ;;  %372 = vst [vmem:[%s702_s3 + $0x30] sm:$0xff] %v326_v63  ;;  %v215_v2 = vadd.f32 %v214_v0, %v567_v3  ;;  %v328_v4 = vadd.f32 %v327_v1, %v569_v51 }
  0xec   :  { %v218_v5 = vpop.f32.mrf.mxu0  ;;  %v331_v6 = vpop.f32.mrf.mxu1 }
  0xed   :  { %371 = vst [vmem:[%s702_s3 + $0x28] sm:$0xff] %v215_v2  ;;  %373 = vst [vmem:[%s702_s3 + $0x38] sm:$0xff] %v328_v4  ;;  %v219_v7 = vadd.f32 %v218_v5, %v563_v49  ;;  %v332_v8 = vadd.f32 %v331_v6, %v565_v50 }
  0xee   :  { %v220_v9 = vpop.f32.mrf.mxu0  ;;  %v333_v10 = vpop.f32.mrf.mxu1 }
  0xef   :  { %374 = vst [vmem:[%s702_s3 + $0x40] sm:$0xff] %v219_v7  ;;  %376 = vst [vmem:[%s702_s3 + $0x50] sm:$0xff] %v332_v8  ;;  %v221_v11 = vadd.f32 %v220_v9, %v567_v3  ;;  %v334_v12 = vadd.f32 %v333_v10, %v569_v51 }
  0xf0   :  { %v224_v13 = vpop.f32.mrf.mxu0  ;;  %v337_v14 = vpop.f32.mrf.mxu1 }
  0xf1   :  { %375 = vst [vmem:[%s702_s3 + $0x48] sm:$0xff] %v221_v11  ;;  %377 = vst [vmem:[%s702_s3 + $0x58] sm:$0xff] %v334_v12  ;;  %v225_v15 = vadd.f32 %v224_v13, %v563_v49  ;;  %v338_v16 = vadd.f32 %v337_v14, %v565_v50 }
  0xf2   :  { %v226_v17 = vpop.f32.mrf.mxu0  ;;  %v339_v18 = vpop.f32.mrf.mxu1 }
  0xf3   :  { %378 = vst [vmem:[%s702_s3 + $0x60] sm:$0xff] %v225_v15  ;;  %380 = vst [vmem:[%s702_s3 + $0x70] sm:$0xff] %v338_v16  ;;  %v227_v19 = vadd.f32 %v226_v17, %v567_v3  ;;  %v340_v20 = vadd.f32 %v339_v18, %v569_v51 }
  0xf4   :  { %v230_v21 = vpop.f32.mrf.mxu0  ;;  %v343_v22 = vpop.f32.mrf.mxu1 }
  0xf5   :  { %379 = vst [vmem:[%s702_s3 + $0x68] sm:$0xff] %v227_v19  ;;  %381 = vst [vmem:[%s702_s3 + $0x78] sm:$0xff] %v340_v20  ;;  %v231_v23 = vadd.f32 %v230_v21, %v563_v49  ;;  %v344_v24 = vadd.f32 %v343_v22, %v565_v50 }
  0xf6   :  { %v232_v25 = vpop.f32.mrf.mxu0  ;;  %v345_v26 = vpop.f32.mrf.mxu1 }
  0xf7   :  { %382 = vst [vmem:[%s702_s3 + $0x80] sm:$0xff] %v231_v23  ;;  %384 = vst [vmem:[%s702_s3 + $0x90] sm:$0xff] %v344_v24  ;;  %v233_v27 = vadd.f32 %v232_v25, %v567_v3  ;;  %v346_v28 = vadd.f32 %v345_v26, %v569_v51 }
  0xf8   :  { %v236_v29 = vpop.f32.mrf.mxu0  ;;  %v349_v30 = vpop.f32.mrf.mxu1 }
  0xf9   :  { %383 = vst [vmem:[%s702_s3 + $0x88] sm:$0xff] %v233_v27  ;;  %385 = vst [vmem:[%s702_s3 + $0x98] sm:$0xff] %v346_v28  ;;  %v237_v31 = vadd.f32 %v236_v29, %v563_v49  ;;  %v350_v32 = vadd.f32 %v349_v30, %v565_v50 }
  0xfa   :  { %v238_v33 = vpop.f32.mrf.mxu0  ;;  %v351_v34 = vpop.f32.mrf.mxu1 }
  0xfb   :  { %386 = vst [vmem:[%s702_s3 + $0xa0] sm:$0xff] %v237_v31  ;;  %388 = vst [vmem:[%s702_s3 + $0xb0] sm:$0xff] %v350_v32  ;;  %v239_v35 = vadd.f32 %v238_v33, %v567_v3  ;;  %v352_v36 = vadd.f32 %v351_v34, %v569_v51 }
  0xfc   :  { %v242_v37 = vpop.f32.mrf.mxu0  ;;  %v355_v38 = vpop.f32.mrf.mxu1 }
  0xfd   :  { %387 = vst [vmem:[%s702_s3 + $0xa8] sm:$0xff] %v239_v35  ;;  %389 = vst [vmem:[%s702_s3 + $0xb8] sm:$0xff] %v352_v36  ;;  %v243_v39 = vadd.f32 %v242_v37, %v563_v49  ;;  %v356_v40 = vadd.f32 %v355_v38, %v565_v50 }
  0xfe   :  { %v244_v41 = vpop.f32.mrf.mxu0  ;;  %v357_v42 = vpop.f32.mrf.mxu1 }
  0xff   :  { %390 = vst [vmem:[%s702_s3 + $0xc0] sm:$0xff] %v243_v39  ;;  %392 = vst [vmem:[%s702_s3 + $0xd0] sm:$0xff] %v356_v40  ;;  %v245_v43 = vadd.f32 %v244_v41, %v567_v3  ;;  %v358_v44 = vadd.f32 %v357_v42, %v569_v51 }
 0x100   :  { %v248_v45 = vpop.f32.mrf.mxu0  ;;  %v361_v46 = vpop.f32.mrf.mxu1 }
 0x101   :  { %391 = vst [vmem:[%s702_s3 + $0xc8] sm:$0xff] %v245_v43  ;;  %393 = vst [vmem:[%s702_s3 + $0xd8] sm:$0xff] %v358_v44  ;;  %v249_v47 = vadd.f32 %v248_v45, %v563_v49  ;;  %v362_v48 = vadd.f32 %v361_v46, %v565_v50 }
 0x102   :  { %v250_v52 = vpop.f32.mrf.mxu0  ;;  %v363_v53 = vpop.f32.mrf.mxu1 }
 0x103   :  { %394 = vst [vmem:[%s702_s3 + $0xe0] sm:$0xff] %v249_v47  ;;  %396 = vst [vmem:[%s702_s3 + $0xf0] sm:$0xff] %v362_v48  ;;  %v251_v54 = vadd.f32 %v250_v52, %v567_v3  ;;  %v364_v55 = vadd.f32 %v363_v53, %v569_v51 }
 0x105   :  { %395 = vst [vmem:[%s702_s3 + $0xe8] sm:$0xff] %v251_v54  ;;  %397 = vst [vmem:[%s702_s3 + $0xf8] sm:$0xff] %v364_v55 }

// kernel: vqae_forward.13
= control target key start
LH: loop header
LB: loop body
LE: loop exit
PB: predicated region body
PF: predicated region fallthrough
CT: control target
= control target key end

     0   :  { %v286_v6 = vmov 0.0   ;;  %s396_s0 = inlined_call_operand.vmem [shape: f32[64,128], index: 0, kind: input, shape index: {}]   ;;  %s397_s1 = inlined_call_operand.vmem [shape: bf16[128,256], index: 1, kind: input, shape index: {}]   ;;  %s398_s2 = inlined_call_operand.vmem [shape: f32[1,256], index: 2, kind: input, shape index: {}]   ;;  %s399_s3 = inlined_call_operand.hbm [shape: f32[64,256], index: 3, kind: output, shape index: {}]  }
   0x1   :  { %v38_v0 = vld [vmem:[%s397_s1 + $0x78] sm:$0xff]  ;;  %v37_v1 = vld [vmem:[%s397_s1 + $0x70] sm:$0xff]  ;;  %v36_v2 = vld [vmem:[%s397_s1 + $0x68] sm:$0xff]  ;;  %147 = vmatprep.mubr.f32.mxu0 %v286_v6  ;;  %171 = vmatprep.mubr.f32.mxu1 %v286_v6 }
   0x2   :  { %v70_v3 = vunpack.c.h.bf16 %v38_v0  ;;  %v69_v4 = vunpack.c.l.bf16 %v38_v0  ;;  %v68_v5 = vunpack.c.h.bf16 %v37_v1  ;;  %v67_v7 = vunpack.c.l.bf16 %v37_v1  ;;  %v35_v8 = vld [vmem:[%s397_s1 + $0x60] sm:$0xff]  ;;  %v34_v11 = vld [vmem:[%s397_s1 + $0x58] sm:$0xff]  ;;  %v33_v14 = vld [vmem:[%s397_s1 + $0x50] sm:$0xff] }
   0x3   :  { %v66_v9 = vunpack.c.h.bf16 %v36_v2  ;;  %v65_v10 = vunpack.c.l.bf16 %v36_v2  ;;  %v64_v12 = vunpack.c.h.bf16 %v35_v8  ;;  %v63_v13 = vunpack.c.l.bf16 %v35_v8  ;;  %v32_v17 = vld [vmem:[%s397_s1 + $0x48] sm:$0xff] }
   0x4   :  { %83 = vmatprep.subr.mxu0 %v70_v3  ;;  %228 = vmatprep.subr.mxu1 %v70_v3  ;;  %v62_v15 = vunpack.c.h.bf16 %v34_v11  ;;  %v61_v16 = vunpack.c.l.bf16 %v34_v11 }
   0x5   :  { %84 = vmatpush1.msra.mxu0 %v69_v4  ;;  %244 = vmatpush1.msra.mxu1 %v69_v4 }
   0x6   :  { %85 = vmatprep.subr.mxu0 %v68_v5  ;;  %229 = vmatprep.subr.mxu1 %v68_v5 }
   0x7   :  { %86 = vmatpush1.msra.mxu0 %v67_v7  ;;  %245 = vmatpush1.msra.mxu1 %v67_v7 }
   0x8   :  { %87 = vmatprep.subr.mxu0 %v66_v9  ;;  %230 = vmatprep.subr.mxu1 %v66_v9 }
   0x9   :  { %88 = vmatpush1.msra.mxu0 %v65_v10  ;;  %246 = vmatpush1.msra.mxu1 %v65_v10 }
   0xa   :  { %8 = vsyncpa [#allocation3], 0  ;;  %89 = vmatprep.subr.mxu0 %v64_v12  ;;  %231 = vmatprep.subr.mxu1 %v64_v12  ;;  %v60_v18 = vunpack.c.h.bf16 %v33_v14  ;;  %v59_v19 = vunpack.c.l.bf16 %v33_v14  ;;  %v31_v20 = vld [vmem:[%s397_s1 + $0x40] sm:$0xff]  ;;  %v58_v21 = vunpack.c.h.bf16 %v32_v17  ;;  %v57_v22 = vunpack.c.l.bf16 %v32_v17  ;;  %v30_v23 = vld [vmem:[%s397_s1 + $0x38] sm:$0xff] }
   0xb   :  { %90 = vmatpush1.msra.mxu0 %v63_v13  ;;  %247 = vmatpush1.msra.mxu1 %v63_v13  ;;  %v56_v24 = vunpack.c.h.bf16 %v31_v20  ;;  %v55_v25 = vunpack.c.l.bf16 %v31_v20  ;;  %v29_v26 = vld [vmem:[%s397_s1 + $0x30] sm:$0xff]  ;;  %v54_v27 = vunpack.c.h.bf16 %v30_v23  ;;  %v53_v28 = vunpack.c.l.bf16 %v30_v23  ;;  %v28_v29 = vld [vmem:[%s397_s1 + $0x28] sm:$0xff]  ;;  %v27_v32 = vld [vmem:[%s397_s1 + $0x20] sm:$0xff] }
   0xc   :  { %91 = vmatprep.subr.mxu0 %v62_v15  ;;  %232 = vmatprep.subr.mxu1 %v62_v15  ;;  %v52_v30 = vunpack.c.h.bf16 %v29_v26  ;;  %v51_v31 = vunpack.c.l.bf16 %v29_v26  ;;  %v50_v33 = vunpack.c.h.bf16 %v28_v29  ;;  %v49_v34 = vunpack.c.l.bf16 %v28_v29  ;;  %v26_v35 = vld [vmem:[%s397_s1 + $0x18] sm:$0xff]  ;;  %v25_v38 = vld [vmem:[%s397_s1 + $0x10] sm:$0xff]  ;;  %v24_v41 = vld [vmem:[%s397_s1 + $0x8] sm:$0xff] }
   0xd   :  { %92 = vmatpush1.msra.mxu0 %v61_v16  ;;  %248 = vmatpush1.msra.mxu1 %v61_v16  ;;  %v48_v36 = vunpack.c.h.bf16 %v27_v32  ;;  %v47_v37 = vunpack.c.l.bf16 %v27_v32  ;;  %v46_v39 = vunpack.c.h.bf16 %v26_v35  ;;  %v45_v40 = vunpack.c.l.bf16 %v26_v35  ;;  %v23_v44 = vld [vmem:[%s397_s1] sm:$0xff]  ;;  %v16_v51 = vld [vmem:[%s396_s0 + $0x8] sm:$0xff]  ;;  %v17_v53 = vld [vmem:[%s396_s0 + $0x10] sm:$0xff] }
   0xe   :  { %93 = vmatprep.subr.mxu0 %v60_v18  ;;  %233 = vmatprep.subr.mxu1 %v60_v18  ;;  %v44_v42 = vunpack.c.h.bf16 %v25_v38  ;;  %v43_v43 = vunpack.c.l.bf16 %v25_v38  ;;  %v42_v45 = vunpack.c.h.bf16 %v24_v41  ;;  %v41_v46 = vunpack.c.l.bf16 %v24_v41  ;;  %v15_v49 = vld [vmem:[%s396_s0] sm:$0xff]  ;;  %v20_v52 = vld [vmem:[%s396_s0 + $0x28] sm:$0xff]  ;;  %v21_v54 = vld [vmem:[%s396_s0 + $0x30] sm:$0xff] }
   0xf   :  { %94 = vmatpush1.msra.mxu0 %v59_v19  ;;  %249 = vmatpush1.msra.mxu1 %v59_v19  ;;  %v40_v47 = vunpack.c.h.bf16 %v23_v44  ;;  %v39_v48 = vunpack.c.l.bf16 %v23_v44  ;;  %v19_v50 = vld [vmem:[%s396_s0 + $0x20] sm:$0xff]  ;;  %v18_v55 = vld [vmem:[%s396_s0 + $0x18] sm:$0xff]  ;;  %v73_v57 = vlaneseq }
  0x10   :  { %95 = vmatprep.subr.mxu0 %v58_v21  ;;  %234 = vmatprep.subr.mxu1 %v58_v21  ;;  %v22_v56 = vld [vmem:[%s396_s0 + $0x38] sm:$0xff]  ;;  %v71_v60 = vld [vmem:[%s398_s2] sm:$0x3]  ;;  %s287_s0 = smov [#allocation2]  }
  0x11   :  { %96 = vmatpush1.msra.mxu0 %v57_v22  ;;  %250 = vmatpush1.msra.mxu1 %v57_v22  ;;  %v74_v58 = vshrl.u32 %v73_v57, 7  ;;  %s217_s2 = sshll.u32 %s287_s0, 4  ;;  %s218_s2 = int_to_ptr.vmem [resolvable:$true] %s217_s2 }
  0x12   :  { %97 = vmatprep.subr.mxu0 %v56_v24  ;;  %235 = vmatprep.subr.mxu1 %v56_v24  ;;  %s264_s7 = scalar_lea.vmem %s218_s2, 2048  ;;  %p269_p1 = scmp.lt.s32.totalorder %s218_s2, %s218_s2 }
  0x13   :  { %98 = vmatpush1.msra.mxu0 %v55_v25  ;;  %251 = vmatpush1.msra.mxu1 %v55_v25  ;;  %v75_v59 = vsub.s32 0, %v74_v58  ;;  %v79_v61 = vsub.s32 1, %v74_v58  ;;  %p265_p0 = scmp.ne.s32.totalorder %s218_s2, %s264_s7  ;;  %p270_p2 = scmp.lt.s32.totalorder %s264_s7, %s264_s7 }
  0x14   :  { %99 = vmatprep.subr.mxu0 %v54_v27  ;;  %236 = vmatprep.subr.mxu1 %v54_v27 }
  0x15   :  { %100 = vmatpush1.msra.mxu0 %v53_v28  ;;  %252 = vmatpush1.msra.mxu1 %v53_v28  ;;  %v76_v62 = vrot.slane %v71_v60, %v75_v59  ;;  %v80_v63 = vrot.slane %v71_v60, %v79_v61  ;;  %p271_p3 = por %p270_p2, %p269_p1 }
  0x16   :  { %101 = vmatprep.subr.mxu0 %v52_v30  ;;  %237 = vmatprep.subr.mxu1 %v52_v30 }
  0x17   :  { %102 = vmatpush1.msra.mxu0 %v51_v31  ;;  %253 = vmatpush1.msra.mxu1 %v51_v31  ;;  %p272_p4 = pnand %p271_p3, %p265_p0 }
  0x18   :  { %103 = vmatprep.subr.mxu0 %v50_v33  ;;  %238 = vmatprep.subr.mxu1 %v50_v33 }
  0x19   :  { %104 = vmatpush1.msra.mxu0 %v49_v34  ;;  %254 = vmatpush1.msra.mxu1 %v49_v34 }
  0x1a   :  { %105 = vmatprep.subr.mxu0 %v48_v36  ;;  %239 = vmatprep.subr.mxu1 %v48_v36 }
  0x1b   :  { %106 = vmatpush1.msra.mxu0 %v47_v37  ;;  %255 = vmatpush1.msra.mxu1 %v47_v37 }
  0x1c   :  { %107 = vmatprep.subr.mxu0 %v46_v39  ;;  %240 = vmatprep.subr.mxu1 %v46_v39 }
  0x1d   :  { %108 = vmatpush1.msra.mxu0 %v45_v40  ;;  %256 = vmatpush1.msra.mxu1 %v45_v40 }
  0x1e   :  { %109 = vmatprep.subr.mxu0 %v44_v42  ;;  %241 = vmatprep.subr.mxu1 %v44_v42 }
  0x1f   :  { %110 = vmatpush1.msra.mxu0 %v43_v43  ;;  %257 = vmatpush1.msra.mxu1 %v43_v43 }
  0x20   :  { %111 = vmatprep.subr.mxu0 %v42_v45  ;;  %242 = vmatprep.subr.mxu1 %v42_v45 }
  0x21   :  { %112 = vmatpush1.msra.mxu0 %v41_v46  ;;  %258 = vmatpush1.msra.mxu1 %v41_v46 }
  0x22   :  { %113 = vmatprep.subr.mxu0 %v40_v47  ;;  %243 = vmatprep.subr.mxu1 %v40_v47 }
  0x23   :  { %114 = vmatpush1.msra.mxu0 %v39_v48  ;;  %259 = vmatpush1.msra.mxu1 %v39_v48 }
  0x24   :  { %148 = vmatmul.mubr.f32.vlgmr.msra.gmra.mxu0 %v15_v49  ;;  %172 = vmatmul.mubr.f32.vlgmr.msra.gmra.mxu1 %v19_v50 }
  0x25   :  { %153 = vmatprep.mubr.f32.mxu0 %v286_v6  ;;  %177 = vmatprep.mubr.f32.mxu1 %v286_v6 }
  0x28   :  { %154 = vmatmul.mubr.f32.gmra.mxu0 %v16_v51  ;;  %178 = vmatmul.mubr.f32.gmra.mxu1 %v20_v52 }
  0x29   :  { %159 = vmatprep.mubr.f32.mxu0 %v286_v6  ;;  %183 = vmatprep.mubr.f32.mxu1 %v286_v6 }
  0x2c   :  { %160 = vmatmul.mubr.f32.gmra.mxu0 %v17_v53  ;;  %184 = vmatmul.mubr.f32.gmra.mxu1 %v21_v54 }
  0x2d   :  { %165 = vmatprep.mubr.f32.mxu0 %v286_v6  ;;  %189 = vmatprep.mubr.f32.mxu1 %v286_v6 }
  0x30   :  { %166 = vmatmul.mubr.f32.gmra.mxu0 %v18_v55  ;;  %190 = vmatmul.mubr.f32.gmra.mxu1 %v22_v56 }
  0xe4   :  { %v149_v0 = vpop.f32.mrf.mxu0  ;;  %v173_v1 = vpop.f32.mrf.mxu1 }
  0xe5   :  { %v150_v2 = vadd.f32 %v149_v0, %v76_v62  ;;  %v174_v3 = vadd.f32 %v173_v1, %v76_v62 }
  0xe6   :  { %v151_v4 = vpop.f32.mrf.mxu0  ;;  %v175_v5 = vpop.f32.mrf.mxu1 }
  0xe7   :  { %196 = vst [vmem:[#allocation2] sm:$0xff] %v150_v2  ;;  %204 = vst [vmem:[#allocation2 + $0x40] sm:$0xff] %v174_v3  ;;  %v152_v6 = vadd.f32 %v151_v4, %v80_v63  ;;  %v176_v7 = vadd.f32 %v175_v5, %v80_v63 }
  0xe8   :  { %v155_v8 = vpop.f32.mrf.mxu0  ;;  %v179_v9 = vpop.f32.mrf.mxu1 }
  0xe9   :  { %197 = vst [vmem:[#allocation2 + $0x8] sm:$0xff] %v152_v6  ;;  %205 = vst [vmem:[#allocation2 + $0x48] sm:$0xff] %v176_v7  ;;  %v156_v10 = vadd.f32 %v155_v8, %v76_v62  ;;  %v180_v11 = vadd.f32 %v179_v9, %v76_v62 }
  0xea   :  { %v157_v12 = vpop.f32.mrf.mxu0  ;;  %v181_v13 = vpop.f32.mrf.mxu1 }
  0xeb   :  { %198 = vst [vmem:[#allocation2 + $0x10] sm:$0xff] %v156_v10  ;;  %206 = vst [vmem:[#allocation2 + $0x50] sm:$0xff] %v180_v11  ;;  %v158_v14 = vadd.f32 %v157_v12, %v80_v63  ;;  %v182_v15 = vadd.f32 %v181_v13, %v80_v63 }
  0xec   :  { %v161_v16 = vpop.f32.mrf.mxu0  ;;  %v185_v17 = vpop.f32.mrf.mxu1 }
  0xed   :  { %199 = vst [vmem:[#allocation2 + $0x18] sm:$0xff] %v158_v14  ;;  %207 = vst [vmem:[#allocation2 + $0x58] sm:$0xff] %v182_v15  ;;  %v162_v18 = vadd.f32 %v161_v16, %v76_v62  ;;  %v186_v19 = vadd.f32 %v185_v17, %v76_v62 }
  0xee   :  { %v163_v20 = vpop.f32.mrf.mxu0  ;;  %v187_v21 = vpop.f32.mrf.mxu1 }
  0xef   :  { %200 = vst [vmem:[#allocation2 + $0x20] sm:$0xff] %v162_v18  ;;  %208 = vst [vmem:[#allocation2 + $0x60] sm:$0xff] %v186_v19  ;;  %v164_v22 = vadd.f32 %v163_v20, %v80_v63  ;;  %v188_v23 = vadd.f32 %v187_v21, %v80_v63 }
  0xf0   :  { %v167_v24 = vpop.f32.mrf.mxu0  ;;  %v191_v25 = vpop.f32.mrf.mxu1 }
  0xf1   :  { %201 = vst [vmem:[#allocation2 + $0x28] sm:$0xff] %v164_v22  ;;  %209 = vst [vmem:[#allocation2 + $0x68] sm:$0xff] %v188_v23  ;;  %v168_v26 = vadd.f32 %v167_v24, %v76_v62  ;;  %v192_v27 = vadd.f32 %v191_v25, %v76_v62 }
  0xf2   :  { %v169_v28 = vpop.f32.mrf.mxu0  ;;  %v193_v29 = vpop.f32.mrf.mxu1 }
  0xf3   :  { %202 = vst [vmem:[#allocation2 + $0x30] sm:$0xff] %v168_v26  ;;  %210 = vst [vmem:[#allocation2 + $0x70] sm:$0xff] %v192_v27  ;;  %v170_v30 = vadd.f32 %v169_v28, %v80_v63  ;;  %v194_v31 = vadd.f32 %v193_v29, %v80_v63 }
  0xf5   :  { %203 = vst [vmem:[#allocation2 + $0x38] sm:$0xff] %v170_v30  ;;  %211 = vst [vmem:[#allocation2 + $0x78] sm:$0xff] %v194_v31 }
  0xf6   :  { %275 = shalt.err (!%p272_p4)
}
  0xf7   :  { %s288_s8 = smov 256   ;;  %s289_s9 = smov 16  }
  0xf8   :  { %223 = dma.vmem_to_hbm [thread:$0]  %s218_s2, 2048, %s399_s3, [#allocation3], %s288_s8, %s288_s8, %s289_s9  }
  0xf9   :  { %284 = dma.done.wait [#allocation3], 2048  }
  0xfa   :  { %285 = vsyncadd [#allocation3], 4294965248 }
  0xfb   :  { %227 = vsyncpa [#allocation3], 1 }

</bundles_post_ra>
